<compile_context>
chip_gen: v5e
topology: v5e:2x2
jax: 0.10.0
libtpu: 0.0.40
codegen_flags: <defaults>
</compile_context>

<pallas_src>
import jax
import jax.numpy as jnp
from jax.experimental import pallas as pl
from jax.experimental.pallas import tpu as pltpu

IN_PAD = 16     # input features padded 5 -> 16 (bf16 sublane packing)
OUT_PAD = 8     # output features padded 5 -> 8  (narrow final matmul; store is tiny)
TB_MAX = 256    # max batch tile (fills the 256-wide MXU on v6e/v7x)


# ---------------------------------------------------------------------------
# Kernel: full forward for one (tb, ·) batch tile. Weights are VMEM-resident
# bf16; matmul accumulation, bias add and sigmoid are f32; ReLU outputs are
# cast to bf16 once so the next matmul reads a bf16 slab directly.
# ---------------------------------------------------------------------------
def _autoencoder_kernel(x_ref,
                        w1_ref, b1_ref, w2_ref, b2_ref, w3_ref, b3_ref,
                        w4_ref, b4_ref, w5_ref, b5_ref, w6_ref, b6_ref,
                        o_ref):
    def linear(h_bf16, w_ref, b_ref):
        # bf16 x bf16 on the MXU, f32 accumulation, f32 bias add on the VPU.
        return jnp.dot(h_bf16, w_ref[...],
                       preferred_element_type=jnp.float32) + b_ref[...]

    def relu_bf16(y_f32):
        return jnp.maximum(y_f32, 0.0).astype(jnp.bfloat16)

    h = x_ref[...]                                   # (tb, 16) bf16
    # encoder
    h = relu_bf16(linear(h, w1_ref, b1_ref))         # (tb, 1024)
    h = relu_bf16(linear(h, w2_ref, b2_ref))         # (tb, 512)
    h = relu_bf16(linear(h, w3_ref, b3_ref))         # (tb, 256)
    # decoder
    h = relu_bf16(linear(h, w4_ref, b4_ref))         # (tb, 512)
    h = relu_bf16(linear(h, w5_ref, b5_ref))         # (tb, 1024)
    y = linear(h, w6_ref, b6_ref)                    # (tb, 8) f32
    o_ref[...] = jax.nn.sigmoid(y)


# ---------------------------------------------------------------------------
# Wrapper-side parameter preparation: pad degenerate dims, cast weights bf16.
# ---------------------------------------------------------------------------
def prepare_params(params):
    (w1, b1), (w2, b2), (w3, b3), (w4, b4), (w5, b5), (w6, b6) = params
    # Pad W1 rows 5 -> 16 with zeros (matches the zero-padded input columns).
    w1p = jnp.zeros((IN_PAD, w1.shape[1]), w1.dtype).at[:w1.shape[0], :].set(w1)
    # Pad W6 columns / b6 5 -> 8 (narrow final matmul; extra cols are zero).
    w6p = jnp.zeros((w6.shape[0], OUT_PAD), w6.dtype).at[:, :w6.shape[1]].set(w6)
    b6p = jnp.zeros((1, OUT_PAD), b6.dtype).at[:, :b6.shape[1]].set(b6)
    padded = [(w1p, b1), (w2, b2), (w3, b3), (w4, b4), (w5, b5), (w6p, b6p)]
    # Weights bf16 (bandwidth + MXU), biases stay f32 (f32 VPU add).
    return [(w.astype(jnp.bfloat16), b.astype(jnp.float32)) for w, b in padded]


def _pick_tb(B):
    # Full 256-wide MXU tile for large batches; shrink (multiple of 8) for tiny
    # batches so padded rows don't burn compute. B > TB_MAX automatically yields
    # >= 2 grid steps, which the 'parallel' axis splits across v7x's two cores.
    return min(TB_MAX, max(8, ((B + 7) // 8) * 8))


def autoencoder_forward(x, prepared):
    """x: (B, 5) f32.  prepared: output of prepare_params()."""
    B, f_in = x.shape
    tb = _pick_tb(B)
    n_blocks = pl.cdiv(B, tb)
    b_pad = n_blocks * tb

    # Pre-cast to bf16 in the wrapper (removes a per-step cast, halves x DMA).
    x_pad = jnp.zeros((b_pad, IN_PAD), jnp.bfloat16).at[:B, :f_in].set(
        x.astype(jnp.bfloat16))

    flat = []
    for w, b in prepared:
        flat.append(w)
        flat.append(b)

    # Weights/biases: full-array blocks, constant block index -> loaded once,
    # stay VMEM-resident across grid steps while activation tiles pipeline.
    def const_spec(a):
        return pl.BlockSpec(a.shape, lambda i: (0, 0))

    in_specs = [pl.BlockSpec((tb, IN_PAD), lambda i: (i, 0))] + \
               [const_spec(a) for a in flat]
    out_spec = pl.BlockSpec((tb, OUT_PAD), lambda i: (i, 0))

    # Derive the scoped-VMEM limit from actual residency:
    #   2x (double-buffered) resident weights/biases + a few (tb, 1024) f32
    #   activation slabs + headroom.  ~16 MiB at tb=256 (fits v5e's default).
    weight_bytes = sum(int(a.size) * a.dtype.itemsize for a in flat)
    vmem_limit = 2 * weight_bytes + 6 * tb * 1024 * 4 + (4 << 20)

    out = pl.pallas_call(
        _autoencoder_kernel,
        out_shape=jax.ShapeDtypeStruct((b_pad, OUT_PAD), jnp.float32),
        grid=(n_blocks,),
        in_specs=in_specs,
        out_specs=out_spec,
        compiler_params=pltpu.CompilerParams(
            dimension_semantics=("parallel",),   # megacore batch split on v7x
            vmem_limit_bytes=int(vmem_limit),
        ),
    )(x_pad, *flat)

    return out[:B, :5]


# ---------------------------------------------------------------------------
# Deterministic parameter initialization (mirrors nn.Linear shapes/init).
# ---------------------------------------------------------------------------
def init_params(key):
    dims = [(5, 1024), (1024, 512), (512, 256),   # encoder
            (256, 512), (512, 1024), (1024, 5)]   # decoder
    params = []
    for (fan_in, fan_out) in dims:
        key, kw, kb = jax.random.split(key, 3)
        bound = 1.0 / jnp.sqrt(fan_in)
        # PyTorch nn.Linear weight is (out, in); store transposed (in, out) for x @ W.
        w = jax.random.uniform(kw, (fan_in, fan_out), jnp.float32, -bound, bound)
        b = jax.random.uniform(kb, (1, fan_out), jnp.float32, -bound, bound)
        params.append((w, b))
    return params


def reference_forward(x, params):
    """Pure-JAX reference with the identical bf16-weight / f32-accumulate scheme."""
    h = x
    for i, (w, b) in enumerate(params):
        y = jnp.dot(h.astype(jnp.bfloat16), w.astype(jnp.bfloat16),
                    preferred_element_type=jnp.float32) + b
        h = jnp.maximum(y, 0.0) if i < 5 else jax.nn.sigmoid(y)
    return h


if __name__ == "__main__":
    key = jax.random.PRNGKey(0)
    key, kx = jax.random.split(key)
    B = 8
    x = jax.random.normal(kx, (B, 5), jnp.float32)
    params = init_params(key)
    prepared = prepare_params(params)

    out = autoencoder_forward(x, prepared)
    out = jax.block_until_ready(out)

    ref = reference_forward(x, params)
    assert out.shape == (B, 5)
    assert jnp.allclose(out, ref, atol=2e-3, rtol=2e-3), "mismatch vs reference"
    print("KERNEL_OK")
</pallas_src>

<mosaic_0001>
module attributes {stable_mosaic.version = 11 : i64} {
  func.func @_autoencoder_kernel(%arg0: i32, %arg1: memref<8x16xbf16, #tpu.memory_space<vmem>>, %arg2: memref<16x1024xbf16, #tpu.memory_space<vmem>>, %arg3: memref<1x1024xf32, #tpu.memory_space<vmem>>, %arg4: memref<1024x512xbf16, #tpu.memory_space<vmem>>, %arg5: memref<1x512xf32, #tpu.memory_space<vmem>>, %arg6: memref<512x256xbf16, #tpu.memory_space<vmem>>, %arg7: memref<1x256xf32, #tpu.memory_space<vmem>>, %arg8: memref<256x512xbf16, #tpu.memory_space<vmem>>, %arg9: memref<1x512xf32, #tpu.memory_space<vmem>>, %arg10: memref<512x1024xbf16, #tpu.memory_space<vmem>>, %arg11: memref<1x1024xf32, #tpu.memory_space<vmem>>, %arg12: memref<1024x8xbf16, #tpu.memory_space<vmem>>, %arg13: memref<1x8xf32, #tpu.memory_space<vmem>>, %arg14: memref<8x8xf32, #tpu.memory_space<vmem>>) attributes {dimension_semantics = [#tpu.dimension_semantics<parallel>], iteration_bounds = array<i64: 1>, scalar_prefetch = 0 : i64, scratch_operands = 0 : i64, tpu.core_type = #tpu.core_type<tc>, window_params = [{transform_indices = @transform_0, window_bounds = array<i64: 8, 16>}, {pipeline_mode = #tpu.pipeline_mode<synchronous>, transform_indices = @transform_1, window_bounds = array<i64: 16, 1024>}, {pipeline_mode = #tpu.pipeline_mode<synchronous>, transform_indices = @transform_2, window_bounds = array<i64: 1, 1024>}, {pipeline_mode = #tpu.pipeline_mode<synchronous>, transform_indices = @transform_3, window_bounds = array<i64: 1024, 512>}, {pipeline_mode = #tpu.pipeline_mode<synchronous>, transform_indices = @transform_4, window_bounds = array<i64: 1, 512>}, {pipeline_mode = #tpu.pipeline_mode<synchronous>, transform_indices = @transform_5, window_bounds = array<i64: 512, 256>}, {pipeline_mode = #tpu.pipeline_mode<synchronous>, transform_indices = @transform_6, window_bounds = array<i64: 1, 256>}, {pipeline_mode = #tpu.pipeline_mode<synchronous>, transform_indices = @transform_7, window_bounds = array<i64: 256, 512>}, {pipeline_mode = #tpu.pipeline_mode<synchronous>, transform_indices = @transform_8, window_bounds = array<i64: 1, 512>}, {pipeline_mode = #tpu.pipeline_mode<synchronous>, transform_indices = @transform_9, window_bounds = array<i64: 512, 1024>}, {pipeline_mode = #tpu.pipeline_mode<synchronous>, transform_indices = @transform_10, window_bounds = array<i64: 1, 1024>}, {pipeline_mode = #tpu.pipeline_mode<synchronous>, transform_indices = @transform_11, window_bounds = array<i64: 1024, 8>}, {pipeline_mode = #tpu.pipeline_mode<synchronous>, transform_indices = @transform_12, window_bounds = array<i64: 1, 8>}, {transform_indices = @transform_13, window_bounds = array<i64: 8, 8>}]} {
    %c0 = arith.constant 0 : index
    %c0_0 = arith.constant 0 : index
    %0 = vector.load %arg1[%c0, %c0_0] : memref<8x16xbf16, #tpu.memory_space<vmem>>, vector<8x16xbf16>
    %c0_1 = arith.constant 0 : index
    %c0_2 = arith.constant 0 : index
    %1 = vector.load %arg2[%c0_1, %c0_2] : memref<16x1024xbf16, #tpu.memory_space<vmem>>, vector<16x1024xbf16>
    %cst = arith.constant dense<0.000000e+00> : vector<8x1024xf32>
    %2 = tpu.matmul %0, %1, %cst {dimension_numbers = #tpu.dot_dimension_numbers<[1], [0], [0], [1], [0, 0, 1, 1], [], []>} : vector<8x16xbf16>, vector<16x1024xbf16>, vector<8x1024xf32> -> vector<8x1024xf32>
    %c0_3 = arith.constant 0 : index
    %c0_4 = arith.constant 0 : index
    %3 = vector.load %arg3[%c0_3, %c0_4] : memref<1x1024xf32, #tpu.memory_space<vmem>>, vector<1x1024xf32>
    %4 = vector.broadcast %3 : vector<1x1024xf32> to vector<8x1024xf32>
    %5 = arith.addf %2, %4 : vector<8x1024xf32>
    %cst_5 = arith.constant 0.000000e+00 : f32
    %6 = vector.broadcast %cst_5 : f32 to vector<8x1024xf32>
    %7 = arith.maximumf %5, %6 : vector<8x1024xf32>
    %8 = arith.truncf %7 : vector<8x1024xf32> to vector<8x1024xbf16>
    %c0_6 = arith.constant 0 : index
    %c0_7 = arith.constant 0 : index
    %9 = vector.load %arg4[%c0_6, %c0_7] : memref<1024x512xbf16, #tpu.memory_space<vmem>>, vector<1024x512xbf16>
    %cst_8 = arith.constant dense<0.000000e+00> : vector<8x512xf32>
    %10 = tpu.matmul %8, %9, %cst_8 {dimension_numbers = #tpu.dot_dimension_numbers<[1], [0], [0], [1], [0, 0, 1, 1], [], []>} : vector<8x1024xbf16>, vector<1024x512xbf16>, vector<8x512xf32> -> vector<8x512xf32>
    %c0_9 = arith.constant 0 : index
    %c0_10 = arith.constant 0 : index
    %11 = vector.load %arg5[%c0_9, %c0_10] : memref<1x512xf32, #tpu.memory_space<vmem>>, vector<1x512xf32>
    %12 = vector.broadcast %11 : vector<1x512xf32> to vector<8x512xf32>
    %13 = arith.addf %10, %12 : vector<8x512xf32>
    %cst_11 = arith.constant 0.000000e+00 : f32
    %14 = vector.broadcast %cst_11 : f32 to vector<8x512xf32>
    %15 = arith.maximumf %13, %14 : vector<8x512xf32>
    %16 = arith.truncf %15 : vector<8x512xf32> to vector<8x512xbf16>
    %c0_12 = arith.constant 0 : index
    %c0_13 = arith.constant 0 : index
    %17 = vector.load %arg6[%c0_12, %c0_13] : memref<512x256xbf16, #tpu.memory_space<vmem>>, vector<512x256xbf16>
    %cst_14 = arith.constant dense<0.000000e+00> : vector<8x256xf32>
    %18 = tpu.matmul %16, %17, %cst_14 {dimension_numbers = #tpu.dot_dimension_numbers<[1], [0], [0], [1], [0, 0, 1, 1], [], []>} : vector<8x512xbf16>, vector<512x256xbf16>, vector<8x256xf32> -> vector<8x256xf32>
    %c0_15 = arith.constant 0 : index
    %c0_16 = arith.constant 0 : index
    %19 = vector.load %arg7[%c0_15, %c0_16] : memref<1x256xf32, #tpu.memory_space<vmem>>, vector<1x256xf32>
    %20 = vector.broadcast %19 : vector<1x256xf32> to vector<8x256xf32>
    %21 = arith.addf %18, %20 : vector<8x256xf32>
    %cst_17 = arith.constant 0.000000e+00 : f32
    %22 = vector.broadcast %cst_17 : f32 to vector<8x256xf32>
    %23 = arith.maximumf %21, %22 : vector<8x256xf32>
    %24 = arith.truncf %23 : vector<8x256xf32> to vector<8x256xbf16>
    %c0_18 = arith.constant 0 : index
    %c0_19 = arith.constant 0 : index
    %25 = vector.load %arg8[%c0_18, %c0_19] : memref<256x512xbf16, #tpu.memory_space<vmem>>, vector<256x512xbf16>
    %cst_20 = arith.constant dense<0.000000e+00> : vector<8x512xf32>
    %26 = tpu.matmul %24, %25, %cst_20 {dimension_numbers = #tpu.dot_dimension_numbers<[1], [0], [0], [1], [0, 0, 1, 1], [], []>} : vector<8x256xbf16>, vector<256x512xbf16>, vector<8x512xf32> -> vector<8x512xf32>
    %c0_21 = arith.constant 0 : index
    %c0_22 = arith.constant 0 : index
    %27 = vector.load %arg9[%c0_21, %c0_22] : memref<1x512xf32, #tpu.memory_space<vmem>>, vector<1x512xf32>
    %28 = vector.broadcast %27 : vector<1x512xf32> to vector<8x512xf32>
    %29 = arith.addf %26, %28 : vector<8x512xf32>
    %cst_23 = arith.constant 0.000000e+00 : f32
    %30 = vector.broadcast %cst_23 : f32 to vector<8x512xf32>
    %31 = arith.maximumf %29, %30 : vector<8x512xf32>
    %32 = arith.truncf %31 : vector<8x512xf32> to vector<8x512xbf16>
    %c0_24 = arith.constant 0 : index
    %c0_25 = arith.constant 0 : index
    %33 = vector.load %arg10[%c0_24, %c0_25] : memref<512x1024xbf16, #tpu.memory_space<vmem>>, vector<512x1024xbf16>
    %cst_26 = arith.constant dense<0.000000e+00> : vector<8x1024xf32>
    %34 = tpu.matmul %32, %33, %cst_26 {dimension_numbers = #tpu.dot_dimension_numbers<[1], [0], [0], [1], [0, 0, 1, 1], [], []>} : vector<8x512xbf16>, vector<512x1024xbf16>, vector<8x1024xf32> -> vector<8x1024xf32>
    %c0_27 = arith.constant 0 : index
    %c0_28 = arith.constant 0 : index
    %35 = vector.load %arg11[%c0_27, %c0_28] : memref<1x1024xf32, #tpu.memory_space<vmem>>, vector<1x1024xf32>
    %36 = vector.broadcast %35 : vector<1x1024xf32> to vector<8x1024xf32>
    %37 = arith.addf %34, %36 : vector<8x1024xf32>
    %cst_29 = arith.constant 0.000000e+00 : f32
    %38 = vector.broadcast %cst_29 : f32 to vector<8x1024xf32>
    %39 = arith.maximumf %37, %38 : vector<8x1024xf32>
    %40 = arith.truncf %39 : vector<8x1024xf32> to vector<8x1024xbf16>
    %c0_30 = arith.constant 0 : index
    %c0_31 = arith.constant 0 : index
    %41 = vector.load %arg12[%c0_30, %c0_31] : memref<1024x8xbf16, #tpu.memory_space<vmem>>, vector<1024x8xbf16>
    %cst_32 = arith.constant dense<0.000000e+00> : vector<8x8xf32>
    %42 = tpu.matmul %40, %41, %cst_32 {dimension_numbers = #tpu.dot_dimension_numbers<[1], [0], [0], [1], [0, 0, 1, 1], [], []>} : vector<8x1024xbf16>, vector<1024x8xbf16>, vector<8x8xf32> -> vector<8x8xf32>
    %c0_33 = arith.constant 0 : index
    %c0_34 = arith.constant 0 : index
    %43 = vector.load %arg13[%c0_33, %c0_34] : memref<1x8xf32, #tpu.memory_space<vmem>>, vector<1x8xf32>
    %44 = vector.broadcast %43 : vector<1x8xf32> to vector<8x8xf32>
    %45 = arith.addf %42, %44 : vector<8x8xf32>
    %46 = arith.negf %45 : vector<8x8xf32>
    %47 = math.exp %46 : vector<8x8xf32>
    %cst_35 = arith.constant 1.000000e+00 : f32
    %48 = vector.broadcast %cst_35 : f32 to vector<8x8xf32>
    %49 = arith.addf %48, %47 : vector<8x8xf32>
    %50 = arith.divf %48, %49 : vector<8x8xf32>
    %c0_36 = arith.constant 0 : index
    %c0_37 = arith.constant 0 : index
    %51 = vector.load %arg14[%c0_36, %c0_37] : memref<8x8xf32, #tpu.memory_space<vmem>>, vector<8x8xf32>
    tpu.vector_store %arg14[%c0_36, %c0_37], %50 {strides = array<i32>} : memref<8x8xf32, #tpu.memory_space<vmem>>, vector<8x8xf32>,
    return
  }
  func.func @transform_0(%arg0: i32) -> (i32, i32) {
    %c0_i32 = arith.constant 0 : i32
    %c0_i32_0 = arith.constant 0 : i32
    return %arg0, %c0_i32 : i32, i32
  }
  func.func @transform_1(%arg0: i32) -> (i32, i32) {
    %c0_i32 = arith.constant 0 : i32
    %c0_i32_0 = arith.constant 0 : i32
    %c0_i32_1 = arith.constant 0 : i32
    return %c0_i32, %c0_i32_0 : i32, i32
  }
  func.func @transform_2(%arg0: i32) -> (i32, i32) {
    %c0_i32 = arith.constant 0 : i32
    %c0_i32_0 = arith.constant 0 : i32
    %c0_i32_1 = arith.constant 0 : i32
    return %c0_i32, %c0_i32_0 : i32, i32
  }
  func.func @transform_3(%arg0: i32) -> (i32, i32) {
    %c0_i32 = arith.constant 0 : i32
    %c0_i32_0 = arith.constant 0 : i32
    %c0_i32_1 = arith.constant 0 : i32
    return %c0_i32, %c0_i32_0 : i32, i32
  }
  func.func @transform_4(%arg0: i32) -> (i32, i32) {
    %c0_i32 = arith.constant 0 : i32
    %c0_i32_0 = arith.constant 0 : i32
    %c0_i32_1 = arith.constant 0 : i32
    return %c0_i32, %c0_i32_0 : i32, i32
  }
  func.func @transform_5(%arg0: i32) -> (i32, i32) {
    %c0_i32 = arith.constant 0 : i32
    %c0_i32_0 = arith.constant 0 : i32
    %c0_i32_1 = arith.constant 0 : i32
    return %c0_i32, %c0_i32_0 : i32, i32
  }
  func.func @transform_6(%arg0: i32) -> (i32, i32) {
    %c0_i32 = arith.constant 0 : i32
    %c0_i32_0 = arith.constant 0 : i32
    %c0_i32_1 = arith.constant 0 : i32
    return %c0_i32, %c0_i32_0 : i32, i32
  }
  func.func @transform_7(%arg0: i32) -> (i32, i32) {
    %c0_i32 = arith.constant 0 : i32
    %c0_i32_0 = arith.constant 0 : i32
    %c0_i32_1 = arith.constant 0 : i32
    return %c0_i32, %c0_i32_0 : i32, i32
  }
  func.func @transform_8(%arg0: i32) -> (i32, i32) {
    %c0_i32 = arith.constant 0 : i32
    %c0_i32_0 = arith.constant 0 : i32
    %c0_i32_1 = arith.constant 0 : i32
    return %c0_i32, %c0_i32_0 : i32, i32
  }
  func.func @transform_9(%arg0: i32) -> (i32, i32) {
    %c0_i32 = arith.constant 0 : i32
    %c0_i32_0 = arith.constant 0 : i32
    %c0_i32_1 = arith.constant 0 : i32
    return %c0_i32, %c0_i32_0 : i32, i32
  }
  func.func @transform_10(%arg0: i32) -> (i32, i32) {
    %c0_i32 = arith.constant 0 : i32
    %c0_i32_0 = arith.constant 0 : i32
    %c0_i32_1 = arith.constant 0 : i32
    return %c0_i32, %c0_i32_0 : i32, i32
  }
  func.func @transform_11(%arg0: i32) -> (i32, i32) {
    %c0_i32 = arith.constant 0 : i32
    %c0_i32_0 = arith.constant 0 : i32
    %c0_i32_1 = arith.constant 0 : i32
    return %c0_i32, %c0_i32_0 : i32, i32
  }
  func.func @transform_12(%arg0: i32) -> (i32, i32) {
    %c0_i32 = arith.constant 0 : i32
    %c0_i32_0 = arith.constant 0 : i32
    %c0_i32_1 = arith.constant 0 : i32
    return %c0_i32, %c0_i32_0 : i32, i32
  }
  func.func @transform_13(%arg0: i32) -> (i32, i32) {
    %c0_i32 = arith.constant 0 : i32
    %c0_i32_0 = arith.constant 0 : i32
    return %arg0, %c0_i32 : i32, i32
  }
}

</mosaic_0001>

<bundles_post_ra>
// kernel: tpu_custom_call.1
= control target key start
LH: loop header
LB: loop body
LE: loop exit
PB: predicated region body
PF: predicated region fallthrough
CT: control target
= control target key end

     0   :  { %18 = vsyncpa [#allocation3], 0  ;;  %s10570_s0 = inlined_call_operand.vmem [shape: bf16[8,16], index: 0, kind: input, shape index: {}]   ;;  %s10571_s1 = inlined_call_operand.hbm [shape: bf16[16,1024], index: 1, kind: input, shape index: {}]   ;;  %s10572_s2 = inlined_call_operand.vmem [shape: f32[1,1024], index: 2, kind: input, shape index: {}]   ;;  %s10573_s3 = inlined_call_operand.hbm [shape: bf16[1024,512], index: 3, kind: input, shape index: {}]   ;;  %s10574_s4 = inlined_call_operand.vmem [shape: f32[1,512], index: 4, kind: input, shape index: {}]   ;;  %s10575_s5 = inlined_call_operand.vmem [shape: bf16[512,256], index: 5, kind: input, shape index: {}]   ;;  %s10576_s6 = inlined_call_operand.vmem [shape: f32[1,256], index: 6, kind: input, shape index: {}]   ;;  %s10577_s7 = inlined_call_operand.hbm [shape: bf16[256,512], index: 7, kind: input, shape index: {}]   ;;  %s10578_s8 = inlined_call_operand.vmem [shape: f32[1,512], index: 8, kind: input, shape index: {}]   ;;  %s10579_s9 = inlined_call_operand.hbm [shape: bf16[512,1024], index: 9, kind: input, shape index: {}]   ;;  %s10580_s10 = inlined_call_operand.vmem [shape: f32[1,1024], index: 10, kind: input, shape index: {}]   ;;  %s10581_s11 = inlined_call_operand.vmem [shape: bf16[1024,8], index: 11, kind: input, shape index: {}]   ;;  %s10582_s12 = inlined_call_operand.vmem [shape: f32[1,8], index: 12, kind: input, shape index: {}]   ;;  %s10583_s13 = inlined_call_operand.hbm [shape: f32[8,8], index: 13, kind: output, shape index: {}]  }
   0x1   :  { %19 = vsyncpa [#allocation6], 0 }
   0x2   :  { %20 = vsyncpa [#allocation9], 0  ;;  %s43_s27 = sshll.u32 %s10573_s3, 4  ;;  %s44_s27 = int_to_ptr.hbm [resolvable:$true] %s43_s27 }
   0x3   :  { %21 = vsyncpa [#allocation4], 0  ;;  %s9632_s28 = smov [#allocation5]   ;;  %s28_s15 = sshll.u32 %s10571_s1, 4  ;;  %s29_s15 = int_to_ptr.hbm [resolvable:$true] %s28_s15 }
   0x4   :  { %s45_s29 = sshll.u32 %s9632_s28, 4  ;;  %s9633_s16 = smov 256   ;;  %s46_s29 = int_to_ptr.vmem [resolvable:$true] %s45_s29 }
   0x5   :  { %s9634_s17 = smov 16   ;;  %s9635_s18 = smov [#allocation2]  }
   0x6   :  { %51 = dma.hbm_to_vmem [thread:$0]  %s44_s27, 32768, %s46_s29, [#allocation6], %s9633_s16, %s9633_s16, %s9634_s17  }
   0x7   :  { %s30_s19 = sshll.u32 %s9635_s18, 4  ;;  %s9636_s20 = smov 512   ;;  %s31_s19 = int_to_ptr.vmem [resolvable:$true] %s30_s19 }
   0x8   :  { %s9637_s21 = smov 32   ;;  %s62_s23 = sshll.u32 %s10577_s7, 4  ;;  %s63_s23 = int_to_ptr.hbm [resolvable:$true] %s62_s23 }
   0x9   :  { %36 = dma.hbm_to_vmem [thread:$0]  %s29_s15, 1024, %s31_s19, [#allocation3], %s9636_s20, %s9636_s20, %s9637_s21  }
   0xa   :  { %s9638_s24 = smov [#allocation7]   ;;  %s77_s28 = sshll.u32 %s10579_s9, 4  ;;  %s78_s28 = int_to_ptr.hbm [resolvable:$true] %s77_s28 }
   0xb   :  { %s64_s25 = sshll.u32 %s9638_s24, 4  ;;  %s9639_s27 = smov [#allocation8]   ;;  %s65_s25 = int_to_ptr.vmem [resolvable:$true] %s64_s25 }
   0xc   :  { %70 = dma.hbm_to_vmem [thread:$0]  %s63_s23, 8192, %s65_s25, [#allocation6], %s9633_s16, %s9633_s16, %s9634_s17  }
   0xd   :  { %s79_s29 = sshll.u32 %s9639_s27, 4  ;;  %s80_s29 = int_to_ptr.vmem [resolvable:$true] %s79_s29 }
   0xe   :  { %85 = dma.hbm_to_vmem [thread:$0]  %s78_s28, 32768, %s80_s29, [#allocation9], %s9636_s20, %s9636_s20, %s9637_s21  }
   0xf   :  { %9624 = dma.done.wait [#allocation3], 1024  }
  0x10   :  { %9625 = vsyncadd [#allocation3], 4294966272 }
  0x11   :  { %9626 = dma.done.wait [#allocation6], 40960  }
  0x12   :  { %9627 = vsyncadd [#allocation6], 4294926336 }
  0x13   :  { %9628 = dma.done.wait [#allocation9], 32768  }
  0x14   :  { %9629 = vsyncadd [#allocation9], 4294934528  ;;  %vm176_vm0 = vcmask 130048   ;;  %v5922_v0 = vld [vmem:[#allocation2] sm:$0xf]  ;;  %vm5899_vm4 = vcmask 64512  }
  0x15   :  { %v8781_v1 = vld [vmem:[#allocation2 + $0x1c] sm:$0xf0]  ;;  %v8777_v2 = vld [vmem:[#allocation2 + $0x4] sm:$0xf]  ;;  %v5930_v5 = vld [vmem:[#allocation2 + $0x8] sm:$0xf] }
  0x16   :  { %v5923_v3 = vor.u32 %v8781_v1, %v5922_v0  ;;  %v5924_v4 = vld [vmem:[#allocation2 + $0x20] sm:$0xf0]  ;;  %v8782_v6 = vld [vmem:[#allocation2 + $0x24] sm:$0xf0]  ;;  %v8778_v9 = vld [vmem:[#allocation2 + $0xc] sm:$0xf] }
  0x17   :  { %v5927_v7 = vor.u32 %v8777_v2, %v5924_v4  ;;  %v5931_v8 = vor.u32 %v8782_v6, %v5930_v5  ;;  %v5932_v10 = vld [vmem:[#allocation2 + $0x28] sm:$0xf0]  ;;  %v9726_v11 = vld [vmem:[%s10570_s0] sm:$0xf]  ;;  %v5938_v13 = vld [vmem:[#allocation2 + $0x10] sm:$0xf] }
  0x18   :  { %187 = vmatpush.bf16.msra.mxu0 %v5923_v3  ;;  %v5935_v12 = vor.u32 %v8778_v9, %v5932_v10  ;;  %v8783_v14 = vld [vmem:[#allocation2 + $0x2c] sm:$0xf0]  ;;  %v8779_v15 = vld [vmem:[#allocation2 + $0x14] sm:$0xf]  ;;  %v5946_v18 = vld [vmem:[#allocation2 + $0x18] sm:$0xf] }
  0x19   :  { %200 = vmatpush.bf16.msra.mxu1 %v5927_v7  ;;  %213 = vmatpush.bf16.msra.mxu2 %v5931_v8  ;;  %v5939_v16 = vor.u32 %v8783_v14, %v5938_v13  ;;  %v5940_v17 = vld [vmem:[#allocation2 + $0x30] sm:$0xf0]  ;;  %v8784_v19 = vld [vmem:[#allocation2 + $0x34] sm:$0xf0]  ;;  %v8780_v22 = vld [vmem:[#allocation2 + $0x1c] sm:$0xf] }
  0x1a   :  { %226 = vmatpush.bf16.msra.mxu3 %v5935_v12  ;;  %v5943_v20 = vor.u32 %v8779_v15, %v5940_v17  ;;  %v5947_v21 = vor.u32 %v8784_v19, %v5946_v18  ;;  %v5948_v23 = vld [vmem:[#allocation2 + $0x38] sm:$0xf0]  ;;  %v6074_v24 = vld [vmem:[#allocation5 + $0xe0] sm:$0xf]  ;;  %v8815_v26 = vld [vmem:[#allocation5 + $0xec] sm:$0xf0] }
  0x1b   :  { %5952 = vmatmul.msk.bf16.vlgmr.msra.gmra.mxu0 %vm176_vm0, %v9726_v11  ;;  %v5951_v25 = vor.u32 %v8780_v22, %v5948_v23  ;;  %v6202_v27 = vld [vmem:[#allocation5 + $0x1e0] sm:$0xf]  ;;  %v8847_v28 = vld [vmem:[#allocation5 + $0x1ec] sm:$0xf0]  ;;  %v6075_v29 = vor.u32 %v8815_v26, %v6074_v24 }
  0x1c   :  { %5953 = vmatmul.msk.bf16.vlgmr.msra.gmra.mxu1 %vm176_vm0, %v9726_v11  ;;  %5954 = vmatmul.msk.bf16.vlgmr.msra.gmra.mxu2 %vm176_vm0, %v9726_v11  ;;  %v6203_v30 = vor.u32 %v8847_v28, %v6202_v27  ;;  %v6058_v31 = vld [vmem:[#allocation5 + $0xc0] sm:$0xf]  ;;  %v8811_v32 = vld [vmem:[#allocation5 + $0xcc] sm:$0xf0] }
  0x1d   :  { %v6186_v33 = vld [vmem:[#allocation5 + $0x1c0] sm:$0xf]  ;;  %5955 = vmatmul.msk.bf16.vlgmr.msra.gmra.mxu3 %vm176_vm0, %v9726_v11  ;;  %239 = vmatpush.bf16.msrb.mxu0 %v5939_v16  ;;  %v8843_v34 = vld [vmem:[#allocation5 + $0x1cc] sm:$0xf0]  ;;  %v6059_v40 = vor.u32 %v8811_v32, %v6058_v31 }
  0x1e   :  { %v6330_v35 = vld [vmem:[#allocation5 + $0x2e0] sm:$0xf]  ;;  %v8879_v36 = vld [vmem:[#allocation5 + $0x2ec] sm:$0xf0]  ;;  %252 = vmatpush.bf16.msrb.mxu1 %v5943_v20  ;;  %265 = vmatpush.bf16.msrb.mxu2 %v5947_v21  ;;  %v6187_v44 = vor.u32 %v8843_v34, %v6186_v33 }
  0x1f   :  { %v6331_v37 = vor.u32 %v8879_v36, %v6330_v35  ;;  %v6458_v38 = vld [vmem:[#allocation5 + $0x3e0] sm:$0xf]  ;;  %v8911_v39 = vld [vmem:[#allocation5 + $0x3ec] sm:$0xf0]  ;;  %278 = vmatpush.bf16.msrb.mxu3 %v5951_v25 }
  0x20   :  { %v6459_v41 = vor.u32 %v8911_v39, %v6458_v38  ;;  %v6042_v42 = vld [vmem:[#allocation5 + $0xa0] sm:$0xf]  ;;  %v8807_v43 = vld [vmem:[#allocation5 + $0xac] sm:$0xf0] }
  0x21   :  { %1846 = vmatpush.bf16.msra.mxu0 %v6075_v29  ;;  %v6314_v45 = vld [vmem:[#allocation5 + $0x2c0] sm:$0xf]  ;;  %v8875_v46 = vld [vmem:[#allocation5 + $0x2cc] sm:$0xf0]  ;;  %v6043_v54 = vor.u32 %v8807_v43, %v6042_v42 }
  0x22   :  { %1859 = vmatpush.bf16.msra.mxu1 %v6203_v30  ;;  %1872 = vmatpush.bf16.msra.mxu2 %v6331_v37  ;;  %v6442_v47 = vld [vmem:[#allocation5 + $0x3c0] sm:$0xf]  ;;  %v8839_v49 = vld [vmem:[#allocation5 + $0x1ac] sm:$0xf0]  ;;  %v6315_v50 = vor.u32 %v8875_v46, %v6314_v45 }
  0x23   :  { %1885 = vmatpush.bf16.msra.mxu3 %v6459_v41  ;;  %v6170_v48 = vld [vmem:[#allocation5 + $0x1a0] sm:$0xf]  ;;  %v8907_v51 = vld [vmem:[#allocation5 + $0x3cc] sm:$0xf0] }
  0x24   :  { %v6443_v52 = vor.u32 %v8907_v51, %v6442_v47  ;;  %v6298_v53 = vld [vmem:[#allocation5 + $0x2a0] sm:$0xf]  ;;  %v8871_v55 = vld [vmem:[#allocation5 + $0x2ac] sm:$0xf0]  ;;  %v6171_v58 = vor.u32 %v8839_v49, %v6170_v48 }
  0x25   :  { %1847 = vmatpush.bf16.msra.mxu0 %v6059_v40  ;;  %v6426_v56 = vld [vmem:[#allocation5 + $0x3a0] sm:$0xf]  ;;  %v8903_v57 = vld [vmem:[#allocation5 + $0x3ac] sm:$0xf0]  ;;  %v6299_v59 = vor.u32 %v8871_v55, %v6298_v53 }
  0x26   :  { %1860 = vmatpush.bf16.msra.mxu1 %v6187_v44  ;;  %1873 = vmatpush.bf16.msra.mxu2 %v6315_v50  ;;  %v6427_v60 = vor.u32 %v8903_v57, %v6426_v56  ;;  %v6026_v61 = vld [vmem:[#allocation5 + $0x80] sm:$0xf]  ;;  %v8803_v62 = vld [vmem:[#allocation5 + $0x8c] sm:$0xf0] }
  0x27   :  { %1886 = vmatpush.bf16.msra.mxu3 %v6443_v52  ;;  %v6154_v63 = vld [vmem:[#allocation5 + $0x180] sm:$0xf]  ;;  %v8835_v0 = vld [vmem:[#allocation5 + $0x18c] sm:$0xf0]  ;;  %v6027_v5 = vor.u32 %v8803_v62, %v6026_v61 }
  0x28   :  { %v6282_v1 = vld [vmem:[#allocation5 + $0x280] sm:$0xf]  ;;  %v8867_v2 = vld [vmem:[#allocation5 + $0x28c] sm:$0xf0]  ;;  %v6155_v6 = vor.u32 %v8835_v0, %v6154_v63 }
  0x29   :  { %1848 = vmatpush.bf16.msra.mxu0 %v6043_v54  ;;  %v6410_v3 = vld [vmem:[#allocation5 + $0x380] sm:$0xf]  ;;  %v8899_v4 = vld [vmem:[#allocation5 + $0x38c] sm:$0xf0]  ;;  %v6283_v10 = vor.u32 %v8867_v2, %v6282_v1 }
  0x2a   :  { %1861 = vmatpush.bf16.msra.mxu1 %v6171_v58  ;;  %1874 = vmatpush.bf16.msra.mxu2 %v6299_v59  ;;  %v6010_v7 = vld [vmem:[#allocation5 + $0x60] sm:$0xf]  ;;  %v8799_v8 = vld [vmem:[#allocation5 + $0x6c] sm:$0xf0]  ;;  %v6411_v13 = vor.u32 %v8899_v4, %v6410_v3 }
  0x2b   :  { %1887 = vmatpush.bf16.msra.mxu3 %v6427_v60  ;;  %v6138_v9 = vld [vmem:[#allocation5 + $0x160] sm:$0xf]  ;;  %5956 = vmatmul.msk.bf16.vlgmr.msrb.gmra.mxu0 %vm176_vm0, %v9726_v11  ;;  %v8831_v12 = vld [vmem:[#allocation5 + $0x16c] sm:$0xf0]  ;;  %v6011_v18 = vor.u32 %v8799_v8, %v6010_v7 }
  0x2c   :  { %v6266_v14 = vld [vmem:[#allocation5 + $0x260] sm:$0xf]  ;;  %v8863_v15 = vld [vmem:[#allocation5 + $0x26c] sm:$0xf0]  ;;  %5957 = vmatmul.msk.bf16.vlgmr.msrb.gmra.mxu1 %vm176_vm0, %v9726_v11  ;;  %5958 = vmatmul.msk.bf16.vlgmr.msrb.gmra.mxu2 %vm176_vm0, %v9726_v11  ;;  %v6139_v19 = vor.u32 %v8831_v12, %v6138_v9 }
  0x2d   :  { %v6394_v16 = vld [vmem:[#allocation5 + $0x360] sm:$0xf]  ;;  %v8895_v17 = vld [vmem:[#allocation5 + $0x36c] sm:$0xf0]  ;;  %5959 = vmatmul.msk.bf16.vlgmr.msrb.gmra.mxu3 %vm176_vm0, %v9726_v11  ;;  %1849 = vmatpush.bf16.msra.mxu0 %v6027_v5  ;;  %v6267_v23 = vor.u32 %v8863_v15, %v6266_v14 }
  0x2e   :  { %1862 = vmatpush.bf16.msra.mxu1 %v6155_v6  ;;  %1875 = vmatpush.bf16.msra.mxu2 %v6283_v10  ;;  %v5994_v20 = vld [vmem:[#allocation5 + $0x40] sm:$0xf]  ;;  %v8795_v21 = vld [vmem:[#allocation5 + $0x4c] sm:$0xf0]  ;;  %v6395_v25 = vor.u32 %v8895_v17, %v6394_v16 }
  0x2f   :  { %v6122_v22 = vld [vmem:[#allocation5 + $0x140] sm:$0xf]  ;;  %1888 = vmatpush.bf16.msra.mxu3 %v6411_v13  ;;  %v8827_v24 = vld [vmem:[#allocation5 + $0x14c] sm:$0xf0]  ;;  %v5995_v30 = vor.u32 %v8795_v21, %v5994_v20 }
  0x30   :  { %v6250_v26 = vld [vmem:[#allocation5 + $0x240] sm:$0xf]  ;;  %v8859_v27 = vld [vmem:[#allocation5 + $0x24c] sm:$0xf0]  ;;  %v6123_v11 = vor.u32 %v8827_v24, %v6122_v22 }
  0x31   :  { %v6378_v28 = vld [vmem:[#allocation5 + $0x340] sm:$0xf]  ;;  %v8891_v29 = vld [vmem:[#allocation5 + $0x34c] sm:$0xf0]  ;;  %1850 = vmatpush.bf16.msra.mxu0 %v6011_v18  ;;  %v6251_v34 = vor.u32 %v8859_v27, %v6250_v26 }
  0x32   :  { %1863 = vmatpush.bf16.msra.mxu1 %v6139_v19  ;;  %1876 = vmatpush.bf16.msra.mxu2 %v6267_v23  ;;  %v5978_v31 = vld [vmem:[#allocation5 + $0x20] sm:$0xf]  ;;  %v8791_v32 = vld [vmem:[#allocation5 + $0x2c] sm:$0xf0]  ;;  %v6379_v36 = vor.u32 %v8891_v29, %v6378_v28 }
  0x33   :  { %v6106_v33 = vld [vmem:[#allocation5 + $0x120] sm:$0xf]  ;;  %1889 = vmatpush.bf16.msra.mxu3 %v6395_v25  ;;  %v8823_v35 = vld [vmem:[#allocation5 + $0x12c] sm:$0xf0]  ;;  %v5979_v41 = vor.u32 %v8791_v32, %v5978_v31 }
  0x34   :  { %v6234_v37 = vld [vmem:[#allocation5 + $0x220] sm:$0xf]  ;;  %v8855_v38 = vld [vmem:[#allocation5 + $0x22c] sm:$0xf0]  ;;  %v6107_v44 = vor.u32 %v8823_v35, %v6106_v33 }
  0x35   :  { %v6362_v39 = vld [vmem:[#allocation5 + $0x320] sm:$0xf]  ;;  %v8887_v40 = vld [vmem:[#allocation5 + $0x32c] sm:$0xf0]  ;;  %1851 = vmatpush.bf16.msra.mxu0 %v5995_v30  ;;  %v6235_v48 = vor.u32 %v8855_v38, %v6234_v37 }
  0x36   :  { %v5962_v42 = vld [vmem:[#allocation5] sm:$0xf]  ;;  %v8787_v43 = vld [vmem:[#allocation5 + $0xc] sm:$0xf0]  ;;  %1864 = vmatpush.bf16.msra.mxu1 %v6123_v11  ;;  %1877 = vmatpush.bf16.msra.mxu2 %v6251_v34  ;;  %v6363_v52 = vor.u32 %v8887_v40, %v6362_v39 }
  0x37   :  { %v6090_v45 = vld [vmem:[#allocation5 + $0x100] sm:$0xf]  ;;  %v8819_v46 = vld [vmem:[#allocation5 + $0x10c] sm:$0xf0]  ;;  %1890 = vmatpush.bf16.msra.mxu3 %v6379_v36  ;;  %v5963_v56 = vor.u32 %v8787_v43, %v5962_v42 }
  0x38   :  { %v6586_v47 = vld [vmem:[#allocation5 + $0x4e0] sm:$0xf]  ;;  %v8943_v49 = vld [vmem:[#allocation5 + $0x4ec] sm:$0xf0]  ;;  %v6091_v60 = vor.u32 %v8819_v46, %v6090_v45 }
  0x39   :  { %v6714_v50 = vld [vmem:[#allocation5 + $0x5e0] sm:$0xf]  ;;  %v8975_v51 = vld [vmem:[#allocation5 + $0x5ec] sm:$0xf0]  ;;  %1852 = vmatpush.bf16.msra.mxu0 %v5979_v41  ;;  %v6587_v61 = vor.u32 %v8943_v49, %v6586_v47 }
  0x3a   :  { %v6218_v53 = vld [vmem:[#allocation5 + $0x200] sm:$0xf]  ;;  %v8851_v54 = vld [vmem:[#allocation5 + $0x20c] sm:$0xf0]  ;;  %1865 = vmatpush.bf16.msra.mxu1 %v6107_v44  ;;  %1878 = vmatpush.bf16.msra.mxu2 %v6235_v48  ;;  %v6715_v0 = vor.u32 %v8975_v51, %v6714_v50 }
  0x3b   :  { %v6346_v55 = vld [vmem:[#allocation5 + $0x300] sm:$0xf]  ;;  %v8883_v57 = vld [vmem:[#allocation5 + $0x30c] sm:$0xf0]  ;;  %1891 = vmatpush.bf16.msra.mxu3 %v6363_v52  ;;  %v6219_v3 = vor.u32 %v8851_v54, %v6218_v53 }
  0x3c   :  { %v6842_v58 = vld [vmem:[#allocation5 + $0x6e0] sm:$0xf]  ;;  %v9007_v59 = vld [vmem:[#allocation5 + $0x6ec] sm:$0xf0]  ;;  %v6347_v6 = vor.u32 %v8883_v57, %v6346_v55 }
  0x3d   :  { %v6970_v62 = vld [vmem:[#allocation5 + $0x7e0] sm:$0xf]  ;;  %v9039_v63 = vld [vmem:[#allocation5 + $0x7ec] sm:$0xf0]  ;;  %v6843_v7 = vor.u32 %v9007_v59, %v6842_v58  ;;  %1853 = vmatpush.bf16.msra.mxu0 %v5963_v56 }
  0x3e   :  { %v6570_v1 = vld [vmem:[#allocation5 + $0x4c0] sm:$0xf]  ;;  %v8939_v2 = vld [vmem:[#allocation5 + $0x4cc] sm:$0xf0]  ;;  %v6971_v8 = vor.u32 %v9039_v63, %v6970_v62  ;;  %1866 = vmatpush.bf16.msra.mxu1 %v6091_v60  ;;  %1879 = vmatpush.bf16.msra.mxu2 %v6219_v3 }
  0x3f   :  { %v6698_v4 = vld [vmem:[#allocation5 + $0x5c0] sm:$0xf]  ;;  %v8971_v5 = vld [vmem:[#allocation5 + $0x5cc] sm:$0xf0]  ;;  %v6571_v12 = vor.u32 %v8939_v2, %v6570_v1  ;;  %1892 = vmatpush.bf16.msra.mxu3 %v6347_v6 }
  0x40   :  { %v6826_v9 = vld [vmem:[#allocation5 + $0x6c0] sm:$0xf]  ;;  %v9003_v10 = vld [vmem:[#allocation5 + $0x6cc] sm:$0xf0]  ;;  %v6699_v15 = vor.u32 %v8971_v5, %v6698_v4 }
  0x41   :  { %1898 = vmatpush.bf16.msrb.mxu0 %v6587_v61  ;;  %v6954_v13 = vld [vmem:[#allocation5 + $0x7c0] sm:$0xf]  ;;  %v9035_v14 = vld [vmem:[#allocation5 + $0x7cc] sm:$0xf0]  ;;  %v6827_v20 = vor.u32 %v9003_v10, %v6826_v9 }
  0x42   :  { %1911 = vmatpush.bf16.msrb.mxu1 %v6715_v0  ;;  %v6554_v16 = vld [vmem:[#allocation5 + $0x4a0] sm:$0xf]  ;;  %v8935_v17 = vld [vmem:[#allocation5 + $0x4ac] sm:$0xf0]  ;;  %1924 = vmatpush.bf16.msrb.mxu2 %v6843_v7  ;;  %v6955_v21 = vor.u32 %v9035_v14, %v6954_v13 }
  0x43   :  { %v6682_v18 = vld [vmem:[#allocation5 + $0x5a0] sm:$0xf]  ;;  %v8967_v19 = vld [vmem:[#allocation5 + $0x5ac] sm:$0xf0]  ;;  %1937 = vmatpush.bf16.msrb.mxu3 %v6971_v8  ;;  %v6555_v24 = vor.u32 %v8935_v17, %v6554_v16 }
  0x44   :  { %v6810_v22 = vld [vmem:[#allocation5 + $0x6a0] sm:$0xf]  ;;  %v8999_v23 = vld [vmem:[#allocation5 + $0x6ac] sm:$0xf0]  ;;  %v6683_v27 = vor.u32 %v8967_v19, %v6682_v18 }
  0x45   :  { %1899 = vmatpush.bf16.msrb.mxu0 %v6571_v12  ;;  %v6938_v25 = vld [vmem:[#allocation5 + $0x7a0] sm:$0xf]  ;;  %v9031_v26 = vld [vmem:[#allocation5 + $0x7ac] sm:$0xf0]  ;;  %v6811_v31 = vor.u32 %v8999_v23, %v6810_v22 }
  0x46   :  { %1912 = vmatpush.bf16.msrb.mxu1 %v6699_v15  ;;  %v6538_v28 = vld [vmem:[#allocation5 + $0x480] sm:$0xf]  ;;  %v8931_v29 = vld [vmem:[#allocation5 + $0x48c] sm:$0xf0]  ;;  %1925 = vmatpush.bf16.msrb.mxu2 %v6827_v20  ;;  %v6939_v32 = vor.u32 %v9031_v26, %v6938_v25 }
  0x47   :  { %v6666_v30 = vld [vmem:[#allocation5 + $0x580] sm:$0xf]  ;;  %v8963_v11 = vld [vmem:[#allocation5 + $0x58c] sm:$0xf0]  ;;  %1938 = vmatpush.bf16.msrb.mxu3 %v6955_v21  ;;  %v6539_v35 = vor.u32 %v8931_v29, %v6538_v28 }
  0x48   :  { %v6794_v33 = vld [vmem:[#allocation5 + $0x680] sm:$0xf]  ;;  %v8995_v34 = vld [vmem:[#allocation5 + $0x68c] sm:$0xf0]  ;;  %v6667_v38 = vor.u32 %v8963_v11, %v6666_v30 }
  0x49   :  { %1900 = vmatpush.bf16.msrb.mxu0 %v6555_v24  ;;  %v6922_v36 = vld [vmem:[#allocation5 + $0x780] sm:$0xf]  ;;  %v9027_v37 = vld [vmem:[#allocation5 + $0x78c] sm:$0xf0]  ;;  %v6795_v43 = vor.u32 %v8995_v34, %v6794_v33  ;;  %v8845_v34 = vld [vmem:[#allocation5 + $0x1e4] sm:$0xf] }
  0x4a   :  { %1913 = vmatpush.bf16.msrb.mxu1 %v6683_v27  ;;  %v6522_v39 = vld [vmem:[#allocation5 + $0x460] sm:$0xf]  ;;  %v8927_v40 = vld [vmem:[#allocation5 + $0x46c] sm:$0xf0]  ;;  %1926 = vmatpush.bf16.msrb.mxu2 %v6811_v31  ;;  %v6923_v44 = vor.u32 %v9027_v37, %v6922_v36  ;;  %v8813_v31 = vld [vmem:[#allocation5 + $0xe4] sm:$0xf] }
  0x4b   :  { %v6650_v41 = vld [vmem:[#allocation5 + $0x560] sm:$0xf]  ;;  %v8959_v42 = vld [vmem:[#allocation5 + $0x56c] sm:$0xf0]  ;;  %1939 = vmatpush.bf16.msrb.mxu3 %v6939_v32  ;;  %v6523_v45 = vor.u32 %v8927_v40, %v6522_v39  ;;  %v6076_v32 = vld [vmem:[#allocation5 + $0xf0] sm:$0xf0] }
  0x4c   :  { %v6651_v46 = vor.u32 %v8959_v42, %v6650_v41  ;;  %v6506_v47 = vld [vmem:[#allocation5 + $0x440] sm:$0xf]  ;;  %v8923_v48 = vld [vmem:[#allocation5 + $0x44c] sm:$0xf0]  ;;  %v6079_v39 = vor.u32 %v8813_v31, %v6076_v32  ;;  %v6428_v31 = vld [vmem:[#allocation5 + $0x3b0] sm:$0xf0] }
  0x4d   :  { %1901 = vmatpush.bf16.msrb.mxu0 %v6539_v35  ;;  %v6634_v49 = vld [vmem:[#allocation5 + $0x540] sm:$0xf]  ;;  %v8955_v50 = vld [vmem:[#allocation5 + $0x54c] sm:$0xf0]  ;;  %v6507_v51 = vor.u32 %v8923_v48, %v6506_v47  ;;  %v6204_v35 = vld [vmem:[#allocation5 + $0x1f0] sm:$0xf0] }
  0x4e   :  { %1914 = vmatpush.bf16.msrb.mxu1 %v6667_v38  ;;  %1927 = vmatpush.bf16.msrb.mxu2 %v6795_v43  ;;  %v6635_v52 = vor.u32 %v8955_v50, %v6634_v49  ;;  %v6778_v53 = vld [vmem:[#allocation5 + $0x660] sm:$0xf]  ;;  %v8991_v54 = vld [vmem:[#allocation5 + $0x66c] sm:$0xf0]  ;;  %v6207_v42 = vor.u32 %v8845_v34, %v6204_v35  ;;  %v8809_v43 = vld [vmem:[#allocation5 + $0xc4] sm:$0xf] }
  0x4f   :  { %1940 = vmatpush.bf16.msrb.mxu3 %v6923_v44  ;;  %v6906_v55 = vld [vmem:[#allocation5 + $0x760] sm:$0xf]  ;;  %v6779_v56 = vor.u32 %v8991_v54, %v6778_v53  ;;  %v9023_v57 = vld [vmem:[#allocation5 + $0x76c] sm:$0xf0]  ;;  %v6060_v44 = vld [vmem:[#allocation5 + $0xd0] sm:$0xf0] }
  0x50   :  { %v6907_v58 = vor.u32 %v9023_v57, %v6906_v55  ;;  %v6490_v59 = vld [vmem:[#allocation5 + $0x420] sm:$0xf]  ;;  %v8919_v60 = vld [vmem:[#allocation5 + $0x42c] sm:$0xf0]  ;;  %v6188_v47 = vld [vmem:[#allocation5 + $0x1d0] sm:$0xf0] }
  0x51   :  { %1902 = vmatpush.bf16.msrb.mxu0 %v6523_v45  ;;  %v6491_v61 = vor.u32 %v8919_v60, %v6490_v59  ;;  %v6618_v62 = vld [vmem:[#allocation5 + $0x520] sm:$0xf]  ;;  %v8951_v63 = vld [vmem:[#allocation5 + $0x52c] sm:$0xf0]  ;;  %v8877_v53 = vld [vmem:[#allocation5 + $0x2e4] sm:$0xf] }
  0x52   :  { %1915 = vmatpush.bf16.msrb.mxu1 %v6651_v46  ;;  %1928 = vmatpush.bf16.msrb.mxu2 %v6779_v56  ;;  %v6619_v0 = vor.u32 %v8951_v63, %v6618_v62  ;;  %v6762_v1 = vld [vmem:[#allocation5 + $0x640] sm:$0xf]  ;;  %v8987_v2 = vld [vmem:[#allocation5 + $0x64c] sm:$0xf0]  ;;  %v8841_v46 = vld [vmem:[#allocation5 + $0x1c4] sm:$0xf] }
  0x53   :  { %1941 = vmatpush.bf16.msrb.mxu3 %v6907_v58  ;;  %v6890_v3 = vld [vmem:[#allocation5 + $0x740] sm:$0xf]  ;;  %v6763_v4 = vor.u32 %v8987_v2, %v6762_v1  ;;  %v9019_v5 = vld [vmem:[#allocation5 + $0x74c] sm:$0xf0]  ;;  %v6332_v54 = vld [vmem:[#allocation5 + $0x2f0] sm:$0xf0]  ;;  %v6191_v58 = vor.u32 %v8841_v46, %v6188_v47 }
  0x54   :  { %v6891_v6 = vor.u32 %v9019_v5, %v6890_v3  ;;  %v6474_v7 = vld [vmem:[#allocation5 + $0x400] sm:$0xf]  ;;  %v8915_v8 = vld [vmem:[#allocation5 + $0x40c] sm:$0xf0]  ;;  %v8909_v55 = vld [vmem:[#allocation5 + $0x3e4] sm:$0xf]  ;;  %v6335_v2 = vor.u32 %v8877_v53, %v6332_v54 }
  0x55   :  { %1903 = vmatpush.bf16.msrb.mxu0 %v6507_v51  ;;  %v6602_v9 = vld [vmem:[#allocation5 + $0x500] sm:$0xf]  ;;  %v6475_v10 = vor.u32 %v8915_v8, %v6474_v7  ;;  %v8947_v12 = vld [vmem:[#allocation5 + $0x50c] sm:$0xf0]  ;;  %v6460_v59 = vld [vmem:[#allocation5 + $0x3f0] sm:$0xf0] }
  0x56   :  { %1916 = vmatpush.bf16.msrb.mxu1 %v6635_v52  ;;  %1929 = vmatpush.bf16.msrb.mxu2 %v6763_v4  ;;  %v6603_v13 = vor.u32 %v8947_v12, %v6602_v9  ;;  %v6746_v14 = vld [vmem:[#allocation5 + $0x620] sm:$0xf]  ;;  %v8983_v15 = vld [vmem:[#allocation5 + $0x62c] sm:$0xf0]  ;;  %v6063_v52 = vor.u32 %v8809_v43, %v6060_v44  ;;  %v8805_v60 = vld [vmem:[#allocation5 + $0xa4] sm:$0xf]  ;;  %v6463_v5 = vor.u32 %v8909_v55, %v6460_v59 }
  0x57   :  { %1942 = vmatpush.bf16.msrb.mxu3 %v6891_v6  ;;  %v6747_v16 = vor.u32 %v8983_v15, %v6746_v14  ;;  %v6874_v17 = vld [vmem:[#allocation5 + $0x720] sm:$0xf]  ;;  %v9015_v18 = vld [vmem:[#allocation5 + $0x72c] sm:$0xf0]  ;;  %v8837_v63 = vld [vmem:[#allocation5 + $0x1a4] sm:$0xf] }
  0x58   :  { %v6875_v19 = vor.u32 %v9015_v18, %v6874_v17  ;;  %v6730_v20 = vld [vmem:[#allocation5 + $0x600] sm:$0xf]  ;;  %v8979_v21 = vld [vmem:[#allocation5 + $0x60c] sm:$0xf0]  ;;  %v8873_v7 = vld [vmem:[#allocation5 + $0x2c4] sm:$0xf] }
  0x59   :  { %1904 = vmatpush.bf16.msrb.mxu0 %v6491_v61  ;;  %v6731_v22 = vor.u32 %v8979_v21, %v6730_v20  ;;  %v6858_v23 = vld [vmem:[#allocation5 + $0x700] sm:$0xf]  ;;  %v9011_v24 = vld [vmem:[#allocation5 + $0x70c] sm:$0xf0]  ;;  %v6044_v61 = vld [vmem:[#allocation5 + $0xb0] sm:$0xf0] }
  0x5a   :  { %1917 = vmatpush.bf16.msrb.mxu1 %v6619_v0  ;;  %1930 = vmatpush.bf16.msrb.mxu2 %v6747_v16  ;;  %v6859_v25 = vor.u32 %v9011_v24, %v6858_v23  ;;  %v9747_v26 = vld [vmem:[%s10572_s2] sm:$0xff]  ;;  %v6172_v0 = vld [vmem:[#allocation5 + $0x1b0] sm:$0xf0]  ;;  %v6047_v6 = vor.u32 %v8805_v60, %v6044_v61 }
  0x5b   :  { %1943 = vmatpush.bf16.msrb.mxu3 %v6875_v19  ;;  %v120_v27 = vperm.slane %v9747_v26, 0  ;;  %v121_v28 = vperm.slane %v9747_v26, 1  ;;  %v122_v38 = vperm.slane %v9747_v26, 2  ;;  %v123_v41 = vperm.slane %v9747_v26, 3  ;;  %v6316_v8 = vld [vmem:[#allocation5 + $0x2d0] sm:$0xf0] }
  0x5c   :  { %v124_v3 = vperm.slane %v9747_v26, 4  ;;  %v8905_v9 = vld [vmem:[#allocation5 + $0x3c4] sm:$0xf]  ;;  %v6175_v12 = vor.u32 %v8837_v63, %v6172_v0  ;;  %v6028_v15 = vld [vmem:[#allocation5 + $0x90] sm:$0xf0]  ;;  %v125_v16 = vperm.slane %v9747_v26, 5  ;;  %v6319_v20 = vor.u32 %v8873_v7, %v6316_v8 }
  0x5d   :  { %1905 = vmatpush.bf16.msrb.mxu0 %v6475_v10  ;;  %v8801_v14 = vld [vmem:[#allocation5 + $0x84] sm:$0xf]  ;;  %v6156_v18 = vld [vmem:[#allocation5 + $0x190] sm:$0xf0]  ;;  %v127_v43 = vperm.slane %v9747_v26, 7 }
  0x5e   :  { %1918 = vmatpush.bf16.msrb.mxu1 %v6603_v13  ;;  %1931 = vmatpush.bf16.msrb.mxu2 %v6731_v22  ;;  %v6444_v13 = vld [vmem:[#allocation5 + $0x3d0] sm:$0xf0]  ;;  %v8833_v17 = vld [vmem:[#allocation5 + $0x184] sm:$0xf]  ;;  %v6031_v24 = vor.u32 %v8801_v14, %v6028_v15 }
  0x5f   :  { %1944 = vmatpush.bf16.msrb.mxu3 %v6859_v25  ;;  %v6447_v23 = vor.u32 %v8905_v9, %v6444_v13  ;;  %v8869_v25 = vld [vmem:[#allocation5 + $0x2a4] sm:$0xf]  ;;  %v6012_v34 = vld [vmem:[#allocation5 + $0x70] sm:$0xf0] }
  0x60   :  { %v8797_v32 = vld [vmem:[#allocation5 + $0x64] sm:$0xf]  ;;  %v6284_v46 = vld [vmem:[#allocation5 + $0x290] sm:$0xf0] }
  0x61   :  { %v8829_v35 = vld [vmem:[#allocation5 + $0x164] sm:$0xf]  ;;  %v5996_v54 = vld [vmem:[#allocation5 + $0x50] sm:$0xf0] }
  0x62   :  { %v8865_v44 = vld [vmem:[#allocation5 + $0x284] sm:$0xf]  ;;  %v5980_v7 = vld [vmem:[#allocation5 + $0x30] sm:$0xf0] }
  0x63   :  { %v8825_v55 = vld [vmem:[#allocation5 + $0x144] sm:$0xf]  ;;  %v6108_v13 = vld [vmem:[#allocation5 + $0x130] sm:$0xf0] }
  0x64   :  { %v8861_v61 = vld [vmem:[#allocation5 + $0x264] sm:$0xf] }
  0x65   :  { %v8893_v63 = vld [vmem:[#allocation5 + $0x364] sm:$0xf] }
  0x98   :  { %v189_v29 = vpop.f32.mrf.mxu0 }
  0x99   :  { %v190_v30 = vadd.f32 %v189_v29, %v120_v27  ;;  %v202_v11 = vpop.f32.mrf.mxu1  ;;  %v6300_v27 = vld [vmem:[#allocation5 + $0x2b0] sm:$0xf0] }
  0x9a   :  { %v203_v33 = vadd.f32 %v202_v11, %v121_v28  ;;  %v8901_v11 = vld [vmem:[#allocation5 + $0x3a4] sm:$0xf] }
  0x9b   :  { %v284_v36 = vmax.f32 %v190_v30, 0.0  ;;  %v6159_v30 = vor.u32 %v8833_v17, %v6156_v18  ;;  %v8857_v18 = vld [vmem:[#allocation5 + $0x244] sm:$0xf] }
  0x9c   :  { %v285_v37 = vmax.f32 %v203_v33, 0.0 }
  0x9d   :  { %v9752_v40 = vpack.c.bf16 %v284_v36, %v284_v36  ;;  %v6140_v36 = vld [vmem:[#allocation5 + $0x170] sm:$0xf0] }
  0x9e   :  { %v9755_v45 = vpack.c.bf16 %v285_v37, %v285_v37 }
  0x9f   :  { %v215_v48 = vpop.f32.mrf.mxu2  ;;  %1854 = vmatmul.bf16.vlgmr.msra.gmra.mxu0 %v9752_v40 }
  0xa0   :  { %v216_v49 = vadd.f32 %v215_v48, %v122_v38  ;;  %v228_v50 = vpop.f32.mrf.mxu3  ;;  %1867 = vmatmul.bf16.vlgmr.msra.gmra.mxu1 %v9755_v45  ;;  %1950 = vmatpush.bf16.msra.mxu0 %v6079_v39  ;;  %v191_v51 = vpop.f32.mrf.mxu0  ;;  %v6303_v38 = vor.u32 %v8869_v25, %v6300_v27  ;;  %v126_v39 = vperm.slane %v9747_v26, 6  ;;  %v6015_v48 = vor.u32 %v8797_v32, %v6012_v34  ;;  %v8785_v25 = vld [vmem:[#allocation5 + $0x4] sm:$0xf]  ;;  %v5964_v27 = vld [vmem:[#allocation5 + $0x10] sm:$0xf0] }
  0xa1   :  { %v229_v56 = vadd.f32 %v228_v50, %v123_v41  ;;  %1963 = vmatpush.bf16.msra.mxu1 %v6207_v42  ;;  %v204_v57 = vpop.f32.mrf.mxu1  ;;  %v6431_v42 = vor.u32 %v8901_v11, %v6428_v31  ;;  %v8897_v50 = vld [vmem:[#allocation5 + $0x384] sm:$0xf]  ;;  %v6412_v51 = vld [vmem:[#allocation5 + $0x390] sm:$0xf0]  ;;  %v6287_v26 = vor.u32 %v8865_v44, %v6284_v46 }
  0xa2   :  { %v286_v62 = vmax.f32 %v216_v49, 0.0  ;;  %v6143_v49 = vor.u32 %v8829_v35, %v6140_v36  ;;  %v6415_v60 = vor.u32 %v8897_v50, %v6412_v51  ;;  %v6588_v32 = vld [vmem:[#allocation5 + $0x4f0] sm:$0xf0]  ;;  %v8969_v51 = vld [vmem:[#allocation5 + $0x5c4] sm:$0xf] }
  0xa3   :  { %v287_v1 = vmax.f32 %v229_v56, 0.0  ;;  %v6124_v56 = vld [vmem:[#allocation5 + $0x150] sm:$0xf0] }
  0xa4   :  { %v9760_v4 = vpack.c.bf16 %v286_v62, %v286_v62  ;;  %1951 = vmatpush.bf16.msra.mxu0 %v6063_v52  ;;  %v8793_v52 = vld [vmem:[#allocation5 + $0x44] sm:$0xf]  ;;  %v6268_v62 = vld [vmem:[#allocation5 + $0x270] sm:$0xf0] }
  0xa5   :  { %v9762_v10 = vpack.c.bf16 %v287_v1, %v287_v1  ;;  %1964 = vmatpush.bf16.msra.mxu1 %v6191_v58  ;;  %v6271_v15 = vor.u32 %v8861_v61, %v6268_v62  ;;  %v6716_v34 = vld [vmem:[#allocation5 + $0x5f0] sm:$0xf0]  ;;  %v9037_v62 = vld [vmem:[#allocation5 + $0x7e4] sm:$0xf] }
  0xa6   :  { %1880 = vmatmul.bf16.vlgmr.msra.gmra.mxu2 %v9760_v4  ;;  %v6572_v50 = vld [vmem:[#allocation5 + $0x4d0] sm:$0xf0] }
  0xa7   :  { %1893 = vmatmul.bf16.vlgmr.msra.gmra.mxu3 %v9762_v10  ;;  %1976 = vmatpush.bf16.msra.mxu2 %v6335_v2  ;;  %v217_v19 = vpop.f32.mrf.mxu2  ;;  %v5999_v2 = vor.u32 %v8793_v52, %v5996_v54  ;;  %v6700_v52 = vld [vmem:[#allocation5 + $0x5d0] sm:$0xf0] }
  0xa8   :  { %1989 = vmatpush.bf16.msra.mxu3 %v6463_v5  ;;  %v230_v21 = vpop.f32.mrf.mxu3  ;;  %1952 = vmatpush.bf16.msra.mxu0 %v6047_v6  ;;  %v241_v22 = vpop.f32.mrf.mxu0  ;;  %v6396_v5 = vld [vmem:[#allocation5 + $0x370] sm:$0xf0]  ;;  %v8789_v6 = vld [vmem:[#allocation5 + $0x24] sm:$0xf]  ;;  %v6703_v61 = vor.u32 %v8969_v51, %v6700_v52 }
  0xa9   :  { %1965 = vmatpush.bf16.msra.mxu1 %v6175_v12  ;;  %v242_v28 = vadd.f32 %v241_v22, %v124_v3  ;;  %v254_v29 = vpop.f32.mrf.mxu1  ;;  %v6127_v3 = vor.u32 %v8825_v55, %v6124_v56  ;;  %v8821_v12 = vld [vmem:[#allocation5 + $0x124] sm:$0xf]  ;;  %v6399_v17 = vor.u32 %v8893_v63, %v6396_v5  ;;  %v6252_v19 = vld [vmem:[#allocation5 + $0x250] sm:$0xf0]  ;;  %v5983_v22 = vor.u32 %v8789_v6, %v5980_v7 }
  0xaa   :  { %v255_v33 = vadd.f32 %v254_v29, %v125_v16  ;;  %v6092_v29 = vld [vmem:[#allocation5 + $0x110] sm:$0xf0]  ;;  %v6255_v11 = vor.u32 %v8857_v18, %v6252_v19  ;;  %v8849_v55 = vld [vmem:[#allocation5 + $0x204] sm:$0xf] }
  0xab   :  { %v288_v37 = vmax.f32 %v242_v28, 0.0  ;;  %1977 = vmatpush.bf16.msra.mxu2 %v6319_v20  ;;  %v8889_v20 = vld [vmem:[#allocation5 + $0x344] sm:$0xf]  ;;  %v6220_v56 = vld [vmem:[#allocation5 + $0x210] sm:$0xf0] }
  0xac   :  { %v289_v41 = vmax.f32 %v255_v33, 0.0  ;;  %1990 = vmatpush.bf16.msra.mxu3 %v6447_v23  ;;  %1953 = vmatpush.bf16.msra.mxu0 %v6031_v24  ;;  %v6111_v23 = vor.u32 %v8821_v12, %v6108_v13  ;;  %v6380_v24 = vld [vmem:[#allocation5 + $0x350] sm:$0xf0]  ;;  %v8817_v28 = vld [vmem:[#allocation5 + $0x104] sm:$0xf] }
  0xad   :  { %v9769_v47 = vpack.c.bf16 %v288_v37, %v288_v37  ;;  %1966 = vmatpush.bf16.msra.mxu1 %v6159_v30  ;;  %v8941_v30 = vld [vmem:[#allocation5 + $0x4e4] sm:$0xf]  ;;  %v6383_v35 = vor.u32 %v8889_v20, %v6380_v24  ;;  %v6972_v63 = vld [vmem:[#allocation5 + $0x7f0] sm:$0xf0] }
  0xae   :  { %v9771_v53 = vpack.c.bf16 %v289_v41, %v289_v41  ;;  %v8973_v33 = vld [vmem:[#allocation5 + $0x5e4] sm:$0xf]  ;;  %v6095_v41 = vor.u32 %v8817_v28, %v6092_v29  ;;  %v6591_v44 = vor.u32 %v8941_v30, %v6588_v32  ;;  %v6684_v5 = vld [vmem:[#allocation5 + $0x5b0] sm:$0xf0] }
  0xaf   :  { %1978 = vmatpush.bf16.msra.mxu2 %v6303_v38  ;;  %v267_v57 = vpop.f32.mrf.mxu2  ;;  %1906 = vmatmul.bf16.vlgmr.msrb.gmra.mxu0 %v9769_v47  ;;  %v8853_v37 = vld [vmem:[#allocation5 + $0x224] sm:$0xf]  ;;  %v6236_v38 = vld [vmem:[#allocation5 + $0x230] sm:$0xf0]  ;;  %v6719_v46 = vor.u32 %v8973_v33, %v6716_v34 }
  0xb0   :  { %1991 = vmatpush.bf16.msra.mxu3 %v6431_v42  ;;  %v268_v58 = vadd.f32 %v267_v57, %v126_v39  ;;  %v280_v59 = vpop.f32.mrf.mxu3  ;;  %1919 = vmatmul.bf16.vlgmr.msrb.gmra.mxu1 %v9771_v53  ;;  %v243_v0 = vpop.f32.mrf.mxu0  ;;  %v5967_v39 = vor.u32 %v8785_v25, %v5964_v27  ;;  %v8885_v42 = vld [vmem:[#allocation5 + $0x324] sm:$0xf]  ;;  %v6828_v12 = vld [vmem:[#allocation5 + $0x6d0] sm:$0xf0] }
  0xb1   :  { %v281_v1 = vadd.f32 %v280_v59, %v127_v43  ;;  %1954 = vmatpush.bf16.msra.mxu0 %v6015_v48  ;;  %1967 = vmatpush.bf16.msra.mxu1 %v6143_v49  ;;  %v256_v8 = vpop.f32.mrf.mxu1  ;;  %v6364_v43 = vld [vmem:[#allocation5 + $0x330] sm:$0xf0]  ;;  %v8937_v48 = vld [vmem:[#allocation5 + $0x4c4] sm:$0xf]  ;;  %v6239_v49 = vor.u32 %v8853_v37, %v6236_v38 }
  0xb2   :  { %v290_v9 = vmax.f32 %v268_v58, 0.0  ;;  %v6367_v54 = vor.u32 %v8885_v42, %v6364_v43  ;;  %v8881_v57 = vld [vmem:[#allocation5 + $0x304] sm:$0xf]  ;;  %v6844_v59 = vld [vmem:[#allocation5 + $0x6f0] sm:$0xf0]  ;;  %v6975_v8 = vor.u32 %v9037_v62, %v6972_v63 }
  0xb3   :  { %v291_v14 = vmax.f32 %v281_v1, 0.0  ;;  %1979 = vmatpush.bf16.msra.mxu2 %v6287_v26  ;;  %v6348_v26 = vld [vmem:[#allocation5 + $0x310] sm:$0xf0]  ;;  %v9005_v58 = vld [vmem:[#allocation5 + $0x6e4] sm:$0xf]  ;;  %v6223_v1 = vor.u32 %v8849_v55, %v6220_v56 }
  0xb4   :  { %v9775_v16 = vpack.c.bf16 %v290_v9, %v290_v9  ;;  %1992 = vmatpush.bf16.msra.mxu3 %v6415_v60  ;;  %v6575_v60 = vor.u32 %v8937_v48, %v6572_v50  ;;  %v8933_v0 = vld [vmem:[#allocation5 + $0x4a4] sm:$0xf]  ;;  %v6351_v6 = vor.u32 %v8881_v57, %v6348_v26  ;;  %v6847_v7 = vor.u32 %v9005_v58, %v6844_v59  ;;  %v6540_v19 = vld [vmem:[#allocation5 + $0x490] sm:$0xf0] }
  0xb5   :  { %v9777_v21 = vpack.c.bf16 %v291_v14, %v291_v14  ;;  %1955 = vmatpush.bf16.msra.mxu0 %v5999_v2  ;;  %1968 = vmatpush.bf16.msra.mxu1 %v6127_v3  ;;  %v6556_v2 = vld [vmem:[#allocation5 + $0x4b0] sm:$0xf0]  ;;  %v8965_v3 = vld [vmem:[#allocation5 + $0x5a4] sm:$0xf] }
  0xb6   :  { %1932 = vmatmul.bf16.vlgmr.msrb.gmra.mxu2 %v9775_v16  ;;  %v9001_v9 = vld [vmem:[#allocation5 + $0x6c4] sm:$0xf]  ;;  %v6559_v13 = vor.u32 %v8933_v0, %v6556_v2  ;;  %v6687_v14 = vor.u32 %v8965_v3, %v6684_v5  ;;  %v6812_v27 = vld [vmem:[#allocation5 + $0x6b0] sm:$0xf0] }
  0xb7   :  { %1945 = vmatmul.bf16.vlgmr.msrb.gmra.mxu3 %v9777_v21  ;;  %1980 = vmatpush.bf16.msra.mxu2 %v6271_v15  ;;  %v269_v31 = vpop.f32.mrf.mxu2  ;;  %v9033_v15 = vld [vmem:[#allocation5 + $0x7c4] sm:$0xf]  ;;  %v6524_v32 = vld [vmem:[#allocation5 + $0x470] sm:$0xf0] }
  0xb8   :  { %1993 = vmatpush.bf16.msra.mxu3 %v6399_v17  ;;  %v282_v36 = vpop.f32.mrf.mxu3  ;;  %v6956_v17 = vld [vmem:[#allocation5 + $0x7d0] sm:$0xf0]  ;;  %v8929_v18 = vld [vmem:[#allocation5 + $0x484] sm:$0xf] }
  0xb9   :  { %1956 = vmatpush.bf16.msra.mxu0 %v5983_v22  ;;  %1969 = vmatpush.bf16.msra.mxu1 %v6111_v23  ;;  %v8961_v20 = vld [vmem:[#allocation5 + $0x584] sm:$0xf]  ;;  %v6668_v22 = vld [vmem:[#allocation5 + $0x590] sm:$0xf0]  ;;  %v6831_v23 = vor.u32 %v9001_v9, %v6828_v12  ;;  %v6959_v24 = vor.u32 %v9033_v15, %v6956_v17  ;;  %v6543_v28 = vor.u32 %v8929_v18, %v6540_v19  ;;  %v8816_v15 = vld [vmem:[#allocation5 + $0xf4] sm:$0xf0] }
  0xba   :  { %v8997_v25 = vld [vmem:[#allocation5 + $0x6a4] sm:$0xf]  ;;  %v6671_v29 = vor.u32 %v8961_v20, %v6668_v22  ;;  %v6652_v34 = vld [vmem:[#allocation5 + $0x570] sm:$0xf0]  ;;  %v6210_v17 = vld [vmem:[#allocation5 + $0x1e8] sm:$0xf] }
  0xbb   :  { %1981 = vmatpush.bf16.msra.mxu2 %v6255_v11  ;;  %v9029_v30 = vld [vmem:[#allocation5 + $0x7a4] sm:$0xf]  ;;  %v6940_v11 = vld [vmem:[#allocation5 + $0x7b0] sm:$0xf0]  ;;  %v8848_v18 = vld [vmem:[#allocation5 + $0x1f4] sm:$0xf0] }
  0xbc   :  { %1994 = vmatpush.bf16.msra.mxu3 %v6383_v35  ;;  %v8925_v31 = vld [vmem:[#allocation5 + $0x464] sm:$0xf]  ;;  %v6815_v35 = vor.u32 %v8997_v25, %v6812_v27  ;;  %v6943_v36 = vor.u32 %v9029_v30, %v6940_v11  ;;  %v6796_v38 = vld [vmem:[#allocation5 + $0x690] sm:$0xf0]  ;;  %v6066_v30 = vld [vmem:[#allocation5 + $0xc8] sm:$0xf] }
  0xbd   :  { %1957 = vmatpush.bf16.msra.mxu0 %v5967_v39  ;;  %1970 = vmatpush.bf16.msra.mxu1 %v6095_v41  ;;  %v8957_v33 = vld [vmem:[#allocation5 + $0x564] sm:$0xf]  ;;  %v6527_v39 = vor.u32 %v8925_v31, %v6524_v32  ;;  %v6924_v43 = vld [vmem:[#allocation5 + $0x790] sm:$0xf0]  ;;  %v8812_v31 = vld [vmem:[#allocation5 + $0xd4] sm:$0xf0] }
  0xbe   :  { %v8993_v37 = vld [vmem:[#allocation5 + $0x684] sm:$0xf]  ;;  %v6655_v41 = vor.u32 %v8957_v33, %v6652_v34  ;;  %v6908_v26 = vld [vmem:[#allocation5 + $0x770] sm:$0xf0]  ;;  %v6194_v32 = vld [vmem:[#allocation5 + $0x1c8] sm:$0xf] }
  0xbf   :  { %1982 = vmatpush.bf16.msra.mxu2 %v6239_v49  ;;  %v9025_v42 = vld [vmem:[#allocation5 + $0x784] sm:$0xf]  ;;  %v6636_v49 = vld [vmem:[#allocation5 + $0x550] sm:$0xf0]  ;;  %v6799_v50 = vor.u32 %v8993_v37, %v6796_v38  ;;  %v8844_v33 = vld [vmem:[#allocation5 + $0x1d4] sm:$0xf0] }
  0xc0   :  { %1995 = vmatpush.bf16.msra.mxu3 %v6367_v54  ;;  %1958 = vmatmul.bf16.vlgmr.msra.gmra.mxu0 %v9752_v40  ;;  %v8953_v48 = vld [vmem:[#allocation5 + $0x544] sm:$0xf]  ;;  %v6927_v51 = vor.u32 %v9025_v42, %v6924_v43  ;;  %v6780_v54 = vld [vmem:[#allocation5 + $0x670] sm:$0xf0]  ;;  %v6067_v42 = vor.u32 %v8812_v31, %v6066_v30  ;;  %v6195_v43 = vor.u32 %v8844_v33, %v6194_v32  ;;  %v8828_v31 = vld [vmem:[#allocation5 + $0x154] sm:$0xf0] }
  0xc1   :  { %2002 = vmatpush.bf16.msrb.mxu0 %v6591_v44  ;;  %2015 = vmatpush.bf16.msrb.mxu1 %v6719_v46  ;;  %v8921_v44 = vld [vmem:[#allocation5 + $0x444] sm:$0xf]  ;;  %v6508_v46 = vld [vmem:[#allocation5 + $0x450] sm:$0xf0]  ;;  %v6639_v56 = vor.u32 %v8953_v48, %v6636_v49  ;;  %v6050_v49 = vld [vmem:[#allocation5 + $0xa8] sm:$0xf] }
  0xc2   :  { %1971 = vmatmul.bf16.vlgmr.msra.gmra.mxu1 %v9755_v45  ;;  %v8989_v52 = vld [vmem:[#allocation5 + $0x664] sm:$0xf]  ;;  %v6511_v55 = vor.u32 %v8921_v44, %v6508_v46  ;;  %v6492_v59 = vld [vmem:[#allocation5 + $0x430] sm:$0xf0]  ;;  %v6466_v44 = vld [vmem:[#allocation5 + $0x3e8] sm:$0xf] }
  0xc3   :  { %1983 = vmatpush.bf16.msra.mxu2 %v6223_v1  ;;  %v9021_v57 = vld [vmem:[#allocation5 + $0x764] sm:$0xf]  ;;  %v6783_v62 = vor.u32 %v8989_v52, %v6780_v54  ;;  %v6764_v1 = vld [vmem:[#allocation5 + $0x650] sm:$0xf0]  ;;  %v8912_v46 = vld [vmem:[#allocation5 + $0x3f4] sm:$0xf0] }
  0xc4   :  { %1996 = vmatpush.bf16.msra.mxu3 %v6351_v6  ;;  %v8917_v58 = vld [vmem:[#allocation5 + $0x424] sm:$0xf]  ;;  %v6911_v63 = vor.u32 %v9021_v57, %v6908_v26  ;;  %v6892_v6 = vld [vmem:[#allocation5 + $0x750] sm:$0xf0]  ;;  %v6178_v54 = vld [vmem:[#allocation5 + $0x1a8] sm:$0xf] }
  0xc5   :  { %2003 = vmatpush.bf16.msrb.mxu0 %v6575_v60  ;;  %2016 = vmatpush.bf16.msrb.mxu1 %v6703_v61  ;;  %v8949_v60 = vld [vmem:[#allocation5 + $0x524] sm:$0xf]  ;;  %v6620_v61 = vld [vmem:[#allocation5 + $0x530] sm:$0xf0]  ;;  %v6495_v3 = vor.u32 %v8917_v58, %v6492_v59  ;;  %v6322_v57 = vld [vmem:[#allocation5 + $0x2c8] sm:$0xf] }
  0xc6   :  { %1984 = vmatmul.bf16.vlgmr.msra.gmra.mxu2 %v9760_v4  ;;  %v8985_v0 = vld [vmem:[#allocation5 + $0x644] sm:$0xf]  ;;  %v6623_v5 = vor.u32 %v8949_v60, %v6620_v61  ;;  %v6604_v12 = vld [vmem:[#allocation5 + $0x510] sm:$0xf0]  ;;  %v8876_v26 = vld [vmem:[#allocation5 + $0x2d4] sm:$0xf0] }
  0xc7   :  { %2028 = vmatpush.bf16.msrb.mxu2 %v6847_v7  ;;  %1997 = vmatmul.bf16.vlgmr.msra.gmra.mxu3 %v9762_v10  ;;  %v9017_v2 = vld [vmem:[#allocation5 + $0x744] sm:$0xf]  ;;  %v6748_v22 = vld [vmem:[#allocation5 + $0x630] sm:$0xf0]  ;;  %v6450_v59 = vld [vmem:[#allocation5 + $0x3c8] sm:$0xf] }
  0xc8   :  { %2041 = vmatpush.bf16.msrb.mxu3 %v6975_v8  ;;  %v8913_v7 = vld [vmem:[#allocation5 + $0x404] sm:$0xf]  ;;  %v6476_v8 = vld [vmem:[#allocation5 + $0x410] sm:$0xf0]  ;;  %v6895_v19 = vor.u32 %v9017_v2, %v6892_v6  ;;  %v8908_v60 = vld [vmem:[#allocation5 + $0x3d4] sm:$0xf0] }
  0xc9   :  { %2004 = vmatpush.bf16.msrb.mxu0 %v6559_v13  ;;  %2017 = vmatpush.bf16.msrb.mxu1 %v6687_v14  ;;  %v8945_v9 = vld [vmem:[#allocation5 + $0x504] sm:$0xf]  ;;  %v6082_v13 = vld [vmem:[#allocation5 + $0xe8] sm:$0xf]  ;;  %v6767_v14 = vor.u32 %v8985_v0, %v6764_v1  ;;  %v6876_v27 = vld [vmem:[#allocation5 + $0x730] sm:$0xf0]  ;;  %v6323_v0 = vor.u32 %v8876_v26, %v6322_v57 }
  0xca   :  { %v8981_v20 = vld [vmem:[#allocation5 + $0x624] sm:$0xf]  ;;  %v6860_v38 = vld [vmem:[#allocation5 + $0x710] sm:$0xf0]  ;;  %v6162_v1 = vld [vmem:[#allocation5 + $0x188] sm:$0xf] }
  0xcb   :  { %2029 = vmatpush.bf16.msrb.mxu2 %v6831_v23  ;;  %v6479_v23 = vor.u32 %v8913_v7, %v6476_v8  ;;  %v9013_v25 = vld [vmem:[#allocation5 + $0x724] sm:$0xf]  ;;  %v6751_v11 = vor.u32 %v8981_v20, %v6748_v22  ;;  %v8836_v2 = vld [vmem:[#allocation5 + $0x194] sm:$0xf0]  ;;  %v6434_v8 = vld [vmem:[#allocation5 + $0x3a8] sm:$0xf] }
  0xcc   :  { %2042 = vmatpush.bf16.msrb.mxu3 %v6959_v24  ;;  %v6607_v24 = vor.u32 %v8945_v9, %v6604_v12  ;;  %v6879_v34 = vor.u32 %v9013_v25, %v6876_v27  ;;  %v9009_v37 = vld [vmem:[#allocation5 + $0x704] sm:$0xf]  ;;  %v8872_v6 = vld [vmem:[#allocation5 + $0x2b4] sm:$0xf0]  ;;  %v6163_v12 = vor.u32 %v8836_v2, %v6162_v1  ;;  %v6290_v20 = vld [vmem:[#allocation5 + $0x288] sm:$0xf] }
  0xcd   :  { %2005 = vmatpush.bf16.msrb.mxu0 %v6543_v28  ;;  %2018 = vmatpush.bf16.msrb.mxu1 %v6671_v29  ;;  %v6083_v28 = vor.u32 %v8816_v15, %v6082_v13  ;;  %v6211_v29 = vor.u32 %v8848_v18, %v6210_v17  ;;  %v8904_v9 = vld [vmem:[#allocation5 + $0x3b4] sm:$0xf0]  ;;  %v6018_v13 = vld [vmem:[#allocation5 + $0x68] sm:$0xf] }
  0xce   :  { %v6146_v17 = vld [vmem:[#allocation5 + $0x168] sm:$0xf]  ;;  %v8832_v18 = vld [vmem:[#allocation5 + $0x174] sm:$0xf0] }
  0xcf   :  { %2030 = vmatpush.bf16.msrb.mxu2 %v6815_v35  ;;  %v8977_v35 = vld [vmem:[#allocation5 + $0x604] sm:$0xf]  ;;  %v8868_v22 = vld [vmem:[#allocation5 + $0x294] sm:$0xf0]  ;;  %v6147_v27 = vor.u32 %v8832_v18, %v6146_v17  ;;  %v6274_v33 = vld [vmem:[#allocation5 + $0x268] sm:$0xf] }
  0xd0   :  { %2043 = vmatpush.bf16.msrb.mxu3 %v6943_v36  ;;  %v6732_v36 = vld [vmem:[#allocation5 + $0x610] sm:$0xf0]  ;;  %v8900_v25 = vld [vmem:[#allocation5 + $0x394] sm:$0xf0]  ;;  %v6291_v30 = vor.u32 %v8868_v22, %v6290_v20  ;;  %v6098_v57 = vld [vmem:[#allocation5 + $0x108] sm:$0xf] }
  0xd1   :  { %2006 = vmatpush.bf16.msrb.mxu0 %v6527_v39  ;;  %2019 = vmatpush.bf16.msrb.mxu1 %v6655_v41  ;;  %v6338_v39 = vld [vmem:[#allocation5 + $0x2e8] sm:$0xf]  ;;  %v8880_v41 = vld [vmem:[#allocation5 + $0x2f4] sm:$0xf0]  ;;  %v6735_v48 = vor.u32 %v8977_v35, %v6732_v36 }
  0xd2   :  { %v6339_v52 = vor.u32 %v8880_v41, %v6338_v39  ;;  %v6402_v36 = vld [vmem:[#allocation5 + $0x368] sm:$0xf]  ;;  %v8792_v41 = vld [vmem:[#allocation5 + $0x34] sm:$0xf0] }
  0xd3   :  { %2031 = vmatpush.bf16.msrb.mxu2 %v6799_v50  ;;  %v8808_v50 = vld [vmem:[#allocation5 + $0xb4] sm:$0xf0]  ;;  %v5986_v39 = vld [vmem:[#allocation5 + $0x28] sm:$0xf] }
  0xd4   :  { %2044 = vmatpush.bf16.msrb.mxu3 %v6927_v51  ;;  %v6863_v51 = vor.u32 %v9009_v37, %v6860_v38  ;;  %v6051_v58 = vor.u32 %v8808_v50, %v6050_v49  ;;  %v8896_v37 = vld [vmem:[#allocation5 + $0x374] sm:$0xf0]  ;;  %v5987_v50 = vor.u32 %v8792_v41, %v5986_v39  ;;  %v6226_v18 = vld [vmem:[#allocation5 + $0x208] sm:$0xf] }
  0xd5   :  { %2007 = vmatpush.bf16.msrb.mxu0 %v6511_v55  ;;  %2020 = vmatpush.bf16.msrb.mxu1 %v6639_v56  ;;  %v8840_v55 = vld [vmem:[#allocation5 + $0x1b4] sm:$0xf0]  ;;  %v6467_v56 = vor.u32 %v8912_v46, %v6466_v44  ;;  %v6403_v46 = vor.u32 %v8896_v37, %v6402_v36  ;;  %v6354_v20 = vld [vmem:[#allocation5 + $0x308] sm:$0xf] }
  0xd6   :  { %v6179_v61 = vor.u32 %v8840_v55, %v6178_v54  ;;  %v8824_v44 = vld [vmem:[#allocation5 + $0x134] sm:$0xf0]  ;;  %v5970_v54 = vld [vmem:[#allocation5 + $0x8] sm:$0xf] }
  0xd7   :  { %2032 = vmatpush.bf16.msrb.mxu2 %v6783_v62  ;;  %v6034_v62 = vld [vmem:[#allocation5 + $0x88] sm:$0xf]  ;;  %v8860_v49 = vld [vmem:[#allocation5 + $0x254] sm:$0xf0] }
  0xd8   :  { %2045 = vmatpush.bf16.msrb.mxu3 %v6911_v63  ;;  %v8804_v63 = vld [vmem:[#allocation5 + $0x94] sm:$0xf0]  ;;  %v6834_v37 = vld [vmem:[#allocation5 + $0x6c8] sm:$0xf] }
  0xd9   :  { %2008 = vmatpush.bf16.msrb.mxu0 %v6495_v3  ;;  %2021 = vmatpush.bf16.msrb.mxu1 %v6623_v5  ;;  %v6451_v3 = vor.u32 %v8908_v60, %v6450_v59  ;;  %v6306_v5 = vld [vmem:[#allocation5 + $0x2a8] sm:$0xf]  ;;  %v6035_v7 = vor.u32 %v8804_v63, %v6034_v62  ;;  %v8820_v26 = vld [vmem:[#allocation5 + $0x114] sm:$0xf0] }
  0xda   :  { %v6307_v15 = vor.u32 %v8872_v6, %v6306_v5  ;;  %v6594_v59 = vld [vmem:[#allocation5 + $0x4e8] sm:$0xf]  ;;  %v8944_v60 = vld [vmem:[#allocation5 + $0x4f4] sm:$0xf0]  ;;  %v6099_v6 = vor.u32 %v8820_v26, %v6098_v57 }
  0xdb   :  { %2033 = vmatpush.bf16.msrb.mxu2 %v6767_v14  ;;  %v8800_v14 = vld [vmem:[#allocation5 + $0x74] sm:$0xf0]  ;;  %v6962_v41 = vld [vmem:[#allocation5 + $0x7c8] sm:$0xf] }
  0xdc   :  { %2046 = vmatpush.bf16.msrb.mxu3 %v6895_v19  ;;  %v6435_v19 = vor.u32 %v8904_v9, %v6434_v8  ;;  %v8976_v63 = vld [vmem:[#allocation5 + $0x5f4] sm:$0xf0]  ;;  %v6578_v8 = vld [vmem:[#allocation5 + $0x4c8] sm:$0xf] }
  0xdd   :  { %2009 = vmatpush.bf16.msrb.mxu0 %v6479_v23  ;;  %2022 = vmatpush.bf16.msrb.mxu1 %v6607_v24  ;;  %v6019_v23 = vor.u32 %v8800_v14, %v6018_v13  ;;  %v6418_v24 = vld [vmem:[#allocation5 + $0x388] sm:$0xf]  ;;  %v8856_v1 = vld [vmem:[#allocation5 + $0x234] sm:$0xf0] }
  0xde   :  { %v6419_v32 = vor.u32 %v8900_v25, %v6418_v24  ;;  %v8888_v5 = vld [vmem:[#allocation5 + $0x334] sm:$0xf0]  ;;  %v6706_v14 = vld [vmem:[#allocation5 + $0x5c8] sm:$0xf] }
  0xdf   :  { %2034 = vmatpush.bf16.msrb.mxu2 %v6751_v11  ;;  %v6130_v11 = vld [vmem:[#allocation5 + $0x148] sm:$0xf]  ;;  %v8940_v13 = vld [vmem:[#allocation5 + $0x4d4] sm:$0xf0] }
  0xe0   :  { %2047 = vmatpush.bf16.msrb.mxu3 %v6879_v34  ;;  %2010 = vmatmul.bf16.vlgmr.msrb.gmra.mxu0 %v9769_v47  ;;  %v8864_v34 = vld [vmem:[#allocation5 + $0x274] sm:$0xf0]  ;;  %v6131_v38 = vor.u32 %v8828_v31, %v6130_v11  ;;  %v6579_v25 = vor.u32 %v8940_v13, %v6578_v8  ;;  %v6562_v11 = vld [vmem:[#allocation5 + $0x4a8] sm:$0xf] }
  0xe1   :  { %2054 = vmatpush.bf16.msra.mxu0 %v6083_v28  ;;  %2067 = vmatpush.bf16.msra.mxu1 %v6211_v29  ;;  %v6002_v28 = vld [vmem:[#allocation5 + $0x48] sm:$0xf]  ;;  %v8796_v29 = vld [vmem:[#allocation5 + $0x54] sm:$0xf0] }
  0xe2   :  { %2023 = vmatmul.bf16.vlgmr.msrb.gmra.mxu1 %v9771_v53  ;;  %v6003_v35 = vor.u32 %v8796_v29, %v6002_v28  ;;  %v8884_v22 = vld [vmem:[#allocation5 + $0x314] sm:$0xf0] }
  0xe3   :  { %2035 = vmatpush.bf16.msrb.mxu2 %v6735_v48  ;;  %v6258_v48 = vld [vmem:[#allocation5 + $0x248] sm:$0xf]  ;;  %v9008_v24 = vld [vmem:[#allocation5 + $0x6f4] sm:$0xf0] }
  0xe4   :  { %2048 = vmatpush.bf16.msrb.mxu3 %v6863_v51  ;;  %v6386_v51 = vld [vmem:[#allocation5 + $0x348] sm:$0xf]  ;;  %v9040_v28 = vld [vmem:[#allocation5 + $0x7f4] sm:$0xf0] }
  0xe5   :  { %2055 = vmatpush.bf16.msra.mxu0 %v6067_v42  ;;  %2068 = vmatpush.bf16.msra.mxu1 %v6195_v43  ;;  %v6275_v42 = vor.u32 %v8864_v34, %v6274_v33  ;;  %v6114_v43 = vld [vmem:[#allocation5 + $0x128] sm:$0xf]  ;;  %v8936_v31 = vld [vmem:[#allocation5 + $0x4b4] sm:$0xf0] }
  0xe6   :  { %2036 = vmatmul.bf16.vlgmr.msrb.gmra.mxu2 %v9775_v16  ;;  %v6115_v55 = vor.u32 %v8824_v44, %v6114_v43  ;;  %v6690_v34 = vld [vmem:[#allocation5 + $0x5a8] sm:$0xf]  ;;  %v6563_v39 = vor.u32 %v8936_v31, %v6562_v11  ;;  %v9032_v57 = vld [vmem:[#allocation5 + $0x7b4] sm:$0xf0] }
  0xe7   :  { %2080 = vmatpush.bf16.msra.mxu2 %v6339_v52  ;;  %2049 = vmatmul.bf16.vlgmr.msrb.gmra.mxu3 %v9777_v21  ;;  %v8892_v52 = vld [vmem:[#allocation5 + $0x354] sm:$0xf0]  ;;  %v6546_v44 = vld [vmem:[#allocation5 + $0x488] sm:$0xf] }
  0xe8   :  { %2093 = vmatpush.bf16.msra.mxu3 %v6467_v56  ;;  %v8788_v56 = vld [vmem:[#allocation5 + $0x14] sm:$0xf0]  ;;  %v6387_v62 = vor.u32 %v8892_v52, %v6386_v51  ;;  %v6818_v52 = vld [vmem:[#allocation5 + $0x6a8] sm:$0xf] }
  0xe9   :  { %2056 = vmatpush.bf16.msra.mxu0 %v6051_v58  ;;  %2069 = vmatpush.bf16.msra.mxu1 %v6179_v61  ;;  %v6259_v58 = vor.u32 %v8860_v49, %v6258_v48  ;;  %v6722_v61 = vld [vmem:[#allocation5 + $0x5e8] sm:$0xf]  ;;  %v5971_v2 = vor.u32 %v8788_v56, %v5970_v54  ;;  %v9000_v54 = vld [vmem:[#allocation5 + $0x6b4] sm:$0xf0] }
  0xea   :  { %v6723_v9 = vor.u32 %v8976_v63, %v6722_v61  ;;  %v6674_v49 = vld [vmem:[#allocation5 + $0x588] sm:$0xf]  ;;  %v8924_v8 = vld [vmem:[#allocation5 + $0x454] sm:$0xf0] }
  0xeb   :  { %2081 = vmatpush.bf16.msra.mxu2 %v6323_v0  ;;  %v6242_v0 = vld [vmem:[#allocation5 + $0x228] sm:$0xf]  ;;  %v8956_v13 = vld [vmem:[#allocation5 + $0x554] sm:$0xf0] }
  0xec   :  { %2094 = vmatpush.bf16.msra.mxu3 %v6451_v3  ;;  %v6370_v3 = vld [vmem:[#allocation5 + $0x328] sm:$0xf]  ;;  %v8988_v11 = vld [vmem:[#allocation5 + $0x654] sm:$0xf0] }
  0xed   :  { %2057 = vmatpush.bf16.msra.mxu0 %v6035_v7  ;;  %2070 = vmatpush.bf16.msra.mxu1 %v6163_v12  ;;  %v6595_v7 = vor.u32 %v8944_v60, %v6594_v59  ;;  %v6243_v12 = vor.u32 %v8856_v1, %v6242_v0  ;;  %v6371_v17 = vor.u32 %v8888_v5, %v6370_v3  ;;  %v6946_v56 = vld [vmem:[#allocation5 + $0x7a8] sm:$0xf]  ;;  %v8928_v59 = vld [vmem:[#allocation5 + $0x474] sm:$0xf0] }
  0xee   :  { %v6819_v60 = vor.u32 %v9000_v54, %v6818_v52  ;;  %v6658_v61 = vld [vmem:[#allocation5 + $0x568] sm:$0xf]  ;;  %v6947_v63 = vor.u32 %v9032_v57, %v6946_v56  ;;  %v8996_v1 = vld [vmem:[#allocation5 + $0x694] sm:$0xf0]  ;;  %v8810_v56 = vld [vmem:[#allocation5 + $0xcc] sm:$0xf] }
  0xef   :  { %2082 = vmatpush.bf16.msra.mxu2 %v6307_v15  ;;  %v8972_v15 = vld [vmem:[#allocation5 + $0x5d4] sm:$0xf0]  ;;  %v6802_v0 = vld [vmem:[#allocation5 + $0x688] sm:$0xf] }
  0xf0   :  { %2095 = vmatpush.bf16.msra.mxu3 %v6435_v19  ;;  %v8852_v19 = vld [vmem:[#allocation5 + $0x214] sm:$0xf0]  ;;  %v6707_v29 = vor.u32 %v8972_v15, %v6706_v14  ;;  %v6930_v3 = vld [vmem:[#allocation5 + $0x788] sm:$0xf] }
  0xf1   :  { %2058 = vmatpush.bf16.msra.mxu0 %v6019_v23  ;;  %2071 = vmatpush.bf16.msra.mxu1 %v6147_v27  ;;  %v6850_v23 = vld [vmem:[#allocation5 + $0x6e8] sm:$0xf]  ;;  %v9028_v5 = vld [vmem:[#allocation5 + $0x794] sm:$0xf0] }
  0xf2   :  { %v6978_v27 = vld [vmem:[#allocation5 + $0x7e8] sm:$0xf]  ;;  %v6851_v33 = vor.u32 %v9008_v24, %v6850_v23  ;;  %v6931_v14 = vor.u32 %v9028_v5, %v6930_v3  ;;  %v8920_v24 = vld [vmem:[#allocation5 + $0x434] sm:$0xf0]  ;;  %v6340_v3 = vld [vmem:[#allocation5 + $0x2f8] sm:$0xf0] }
  0xf3   :  { %2083 = vmatpush.bf16.msra.mxu2 %v6291_v30  ;;  %v6227_v30 = vor.u32 %v8852_v19, %v6226_v18  ;;  %v6979_v36 = vor.u32 %v9040_v28, %v6978_v27  ;;  %v6786_v15 = vld [vmem:[#allocation5 + $0x668] sm:$0xf]  ;;  %v8952_v28 = vld [vmem:[#allocation5 + $0x534] sm:$0xf0] }
  0xf4   :  { %2096 = vmatpush.bf16.msra.mxu3 %v6419_v32  ;;  %v6355_v32 = vor.u32 %v8884_v22, %v6354_v20  ;;  %v6914_v19 = vld [vmem:[#allocation5 + $0x768] sm:$0xf]  ;;  %v9024_v20 = vld [vmem:[#allocation5 + $0x774] sm:$0xf0] }
  0xf5   :  { %2059 = vmatpush.bf16.msra.mxu0 %v6003_v35  ;;  %2072 = vmatpush.bf16.msra.mxu1 %v6131_v38  ;;  %v8968_v35 = vld [vmem:[#allocation5 + $0x5b4] sm:$0xf0]  ;;  %v6498_v23 = vld [vmem:[#allocation5 + $0x428] sm:$0xf] }
  0xf6   :  { %v9004_v38 = vld [vmem:[#allocation5 + $0x6d4] sm:$0xf0]  ;;  %v6691_v43 = vor.u32 %v8968_v35, %v6690_v34  ;;  %v6626_v27 = vld [vmem:[#allocation5 + $0x528] sm:$0xf]  ;;  %v6499_v31 = vor.u32 %v8920_v24, %v6498_v23  ;;  %v8906_v24 = vld [vmem:[#allocation5 + $0x3cc] sm:$0xf] }
  0xf7   :  { %2084 = vmatpush.bf16.msra.mxu2 %v6275_v42  ;;  %v9036_v42 = vld [vmem:[#allocation5 + $0x7d4] sm:$0xf0]  ;;  %v6835_v48 = vor.u32 %v9004_v38, %v6834_v37  ;;  %v6482_v34 = vld [vmem:[#allocation5 + $0x408] sm:$0xf]  ;;  %v6627_v35 = vor.u32 %v8952_v28, %v6626_v27  ;;  %v8802_v28 = vld [vmem:[#allocation5 + $0x8c] sm:$0xf] }
  0xf8   :  { %2097 = vmatpush.bf16.msra.mxu3 %v6403_v46  ;;  %v8932_v46 = vld [vmem:[#allocation5 + $0x494] sm:$0xf0]  ;;  %v6963_v51 = vor.u32 %v9036_v42, %v6962_v41  ;;  %v6610_v37 = vld [vmem:[#allocation5 + $0x508] sm:$0xf]  ;;  %v8814_v41 = vld [vmem:[#allocation5 + $0xec] sm:$0xf] }
  0xf9   :  { %2060 = vmatpush.bf16.msra.mxu0 %v5987_v50  ;;  %2073 = vmatpush.bf16.msra.mxu1 %v6115_v55  ;;  %v8964_v50 = vld [vmem:[#allocation5 + $0x594] sm:$0xf0]  ;;  %v6547_v55 = vor.u32 %v8932_v46, %v6546_v44  ;;  %v6084_v42 = vld [vmem:[#allocation5 + $0xf8] sm:$0xf0] }
  0xfa   :  { %v6675_v26 = vor.u32 %v8964_v50, %v6674_v49  ;;  %v8948_v38 = vld [vmem:[#allocation5 + $0x514] sm:$0xf0]  ;;  %v6212_v46 = vld [vmem:[#allocation5 + $0x1f8] sm:$0xf0] }
  0xfb   :  { %2085 = vmatpush.bf16.msra.mxu2 %v6259_v58  ;;  %v6530_v58 = vld [vmem:[#allocation5 + $0x468] sm:$0xf]  ;;  %v8984_v49 = vld [vmem:[#allocation5 + $0x634] sm:$0xf0]  ;;  %v6611_v54 = vor.u32 %v8948_v38, %v6610_v37  ;;  %v8902_v38 = vld [vmem:[#allocation5 + $0x3ac] sm:$0xf] }
  0xfc   :  { %2098 = vmatpush.bf16.msra.mxu3 %v6387_v62  ;;  %v8960_v62 = vld [vmem:[#allocation5 + $0x574] sm:$0xf0] }
  0xfd   :  { %2061 = vmatpush.bf16.msra.mxu0 %v5971_v2  ;;  %2074 = vmatpush.bf16.msra.mxu1 %v6099_v6  ;;  %v6531_v2 = vor.u32 %v8928_v59, %v6530_v58  ;;  %v6659_v6 = vor.u32 %v8960_v62, %v6658_v61  ;;  %v9016_v52 = vld [vmem:[#allocation5 + $0x734] sm:$0xf0]  ;;  %v6068_v58 = vld [vmem:[#allocation5 + $0xd8] sm:$0xf0]  ;;  %v8842_v59 = vld [vmem:[#allocation5 + $0x1cc] sm:$0xf] }
  0xfe   :  { %v6738_v62 = vld [vmem:[#allocation5 + $0x608] sm:$0xf]  ;;  %v6071_v5 = vor.u32 %v8810_v56, %v6068_v58 }
  0xff   :  { %2086 = vmatpush.bf16.msra.mxu2 %v6243_v12  ;;  %v6642_v12 = vld [vmem:[#allocation5 + $0x548] sm:$0xf] }
 0x100   :  { %2099 = vmatpush.bf16.msra.mxu3 %v6371_v17  ;;  %2062 = vmatmul.bf16.vlgmr.msra.gmra.mxu0 %v9752_v40  ;;  %v8992_v17 = vld [vmem:[#allocation5 + $0x674] sm:$0xf0]  ;;  %v6643_v22 = vor.u32 %v8956_v13, %v6642_v12  ;;  %v8806_v12 = vld [vmem:[#allocation5 + $0xac] sm:$0xf]  ;;  %v6052_v13 = vld [vmem:[#allocation5 + $0xb8] sm:$0xf0] }
 0x101   :  { %2106 = vmatpush.bf16.msrb.mxu0 %v6595_v7  ;;  %2119 = vmatpush.bf16.msrb.mxu1 %v6723_v9  ;;  %v6514_v7 = vld [vmem:[#allocation5 + $0x448] sm:$0xf]  ;;  %v6803_v9 = vor.u32 %v8996_v1, %v6802_v0  ;;  %v9012_v1 = vld [vmem:[#allocation5 + $0x714] sm:$0xf0]  ;;  %v6055_v23 = vor.u32 %v8806_v12, %v6052_v13  ;;  %v8822_v12 = vld [vmem:[#allocation5 + $0x12c] sm:$0xf] }
 0x102   :  { %2075 = vmatmul.bf16.vlgmr.msra.gmra.mxu1 %v9755_v45  ;;  %v6515_v18 = vor.u32 %v8924_v8, %v6514_v7  ;;  %v6866_v0 = vld [vmem:[#allocation5 + $0x708] sm:$0xf]  ;;  %v6468_v7 = vld [vmem:[#allocation5 + $0x3f8] sm:$0xf0] }
 0x103   :  { %2087 = vmatpush.bf16.msra.mxu2 %v6227_v30  ;;  %v6770_v30 = vld [vmem:[#allocation5 + $0x648] sm:$0xf]  ;;  %v6116_v13 = vld [vmem:[#allocation5 + $0x138] sm:$0xf0] }
 0x104   :  { %2100 = vmatpush.bf16.msra.mxu3 %v6355_v32  ;;  %v6898_v32 = vld [vmem:[#allocation5 + $0x748] sm:$0xf] }
 0x105   :  { %2107 = vmatpush.bf16.msrb.mxu0 %v6579_v25  ;;  %2120 = vmatpush.bf16.msrb.mxu1 %v6707_v29  ;;  %v6787_v25 = vor.u32 %v8992_v17, %v6786_v15  ;;  %v6915_v29 = vor.u32 %v9024_v20, %v6914_v19  ;;  %v8838_v17 = vld [vmem:[#allocation5 + $0x1ac] sm:$0xf] }
 0x106   :  { %2088 = vmatmul.bf16.vlgmr.msra.gmra.mxu2 %v9760_v4  ;;  %v8874_v20 = vld [vmem:[#allocation5 + $0x2cc] sm:$0xf] }
 0x107   :  { %2132 = vmatpush.bf16.msrb.mxu2 %v6851_v33  ;;  %2101 = vmatmul.bf16.vlgmr.msra.gmra.mxu3 %v9762_v10  ;;  %v9020_v33 = vld [vmem:[#allocation5 + $0x754] sm:$0xf0] }
 0x108   :  { %2145 = vmatpush.bf16.msrb.mxu3 %v6979_v36  ;;  %v8916_v36 = vld [vmem:[#allocation5 + $0x414] sm:$0xf0]  ;;  %v6899_v44 = vor.u32 %v9020_v33, %v6898_v32 }
 0x109   :  { %2108 = vmatpush.bf16.msrb.mxu0 %v6563_v39  ;;  %2121 = vmatpush.bf16.msrb.mxu1 %v6691_v43  ;;  %v6771_v39 = vor.u32 %v8988_v11, %v6770_v30  ;;  %v8846_v43 = vld [vmem:[#allocation5 + $0x1ec] sm:$0xf]  ;;  %v6483_v50 = vor.u32 %v8916_v36, %v6482_v34 }
 0x10a   :  { %v6215_v57 = vor.u32 %v8846_v43, %v6212_v46  ;;  %v8834_v11 = vld [vmem:[#allocation5 + $0x18c] sm:$0xf]  ;;  %v6020_v43 = vld [vmem:[#allocation5 + $0x78] sm:$0xf0] }
 0x10b   :  { %2133 = vmatpush.bf16.msrb.mxu2 %v6835_v48  ;;  %v6754_v48 = vld [vmem:[#allocation5 + $0x628] sm:$0xf]  ;;  %v8870_v34 = vld [vmem:[#allocation5 + $0x2ac] sm:$0xf] }
 0x10c   :  { %2146 = vmatpush.bf16.msrb.mxu3 %v6963_v51  ;;  %v6882_v51 = vld [vmem:[#allocation5 + $0x728] sm:$0xf]  ;;  %v8830_v46 = vld [vmem:[#allocation5 + $0x16c] sm:$0xf] }
 0x10d   :  { %2109 = vmatpush.bf16.msrb.mxu0 %v6547_v55  ;;  %2122 = vmatpush.bf16.msrb.mxu1 %v6675_v26  ;;  %v6087_v55 = vor.u32 %v8814_v41, %v6084_v42  ;;  %v6755_v26 = vor.u32 %v8984_v49, %v6754_v48  ;;  %v6883_v61 = vor.u32 %v9016_v52, %v6882_v51  ;;  %v8798_v42 = vld [vmem:[#allocation5 + $0x6c] sm:$0xf]  ;;  %v6148_v48 = vld [vmem:[#allocation5 + $0x178] sm:$0xf0] }
 0x10e   :  { %v6292_v51 = vld [vmem:[#allocation5 + $0x298] sm:$0xf0]  ;;  %v6023_v52 = vor.u32 %v8798_v42, %v6020_v43  ;;  %v6151_v56 = vor.u32 %v8830_v46, %v6148_v48  ;;  %v8886_v43 = vld [vmem:[#allocation5 + $0x32c] sm:$0xf] }
 0x10f   :  { %2134 = vmatpush.bf16.msrb.mxu2 %v6819_v60  ;;  %v6196_v60 = vld [vmem:[#allocation5 + $0x1d8] sm:$0xf0] }
 0x110   :  { %2147 = vmatpush.bf16.msrb.mxu3 %v6947_v63  ;;  %v8980_v63 = vld [vmem:[#allocation5 + $0x614] sm:$0xf0]  ;;  %v6199_v8 = vor.u32 %v8842_v59, %v6196_v60  ;;  %v8826_v59 = vld [vmem:[#allocation5 + $0x14c] sm:$0xf]  ;;  %v6132_v60 = vld [vmem:[#allocation5 + $0x158] sm:$0xf0] }
 0x111   :  { %2110 = vmatpush.bf16.msrb.mxu0 %v6531_v2  ;;  %2123 = vmatpush.bf16.msrb.mxu1 %v6659_v6  ;;  %v8878_v2 = vld [vmem:[#allocation5 + $0x2ec] sm:$0xf] }
 0x112   :  { %v8910_v6 = vld [vmem:[#allocation5 + $0x3ec] sm:$0xf]  ;;  %v6343_v15 = vor.u32 %v8878_v2, %v6340_v3 }
 0x113   :  { %2135 = vmatpush.bf16.msrb.mxu2 %v6803_v9  ;;  %v6739_v9 = vor.u32 %v8980_v63, %v6738_v62  ;;  %v6471_v19 = vor.u32 %v8910_v6, %v6468_v7  ;;  %v8862_v63 = vld [vmem:[#allocation5 + $0x26c] sm:$0xf]  ;;  %v6135_v6 = vor.u32 %v8826_v59, %v6132_v60  ;;  %v6356_v60 = vld [vmem:[#allocation5 + $0x318] sm:$0xf0] }
 0x114   :  { %2148 = vmatpush.bf16.msrb.mxu3 %v6931_v14  ;;  %v6867_v14 = vor.u32 %v9012_v1, %v6866_v0  ;;  %v6276_v0 = vld [vmem:[#allocation5 + $0x278] sm:$0xf0]  ;;  %v8894_v3 = vld [vmem:[#allocation5 + $0x36c] sm:$0xf] }
 0x115   :  { %2111 = vmatpush.bf16.msrb.mxu0 %v6515_v18  ;;  %2124 = vmatpush.bf16.msrb.mxu1 %v6643_v22  ;;  %v6180_v18 = vld [vmem:[#allocation5 + $0x1b8] sm:$0xf0]  ;;  %v8790_v7 = vld [vmem:[#allocation5 + $0x2c] sm:$0xf] }
 0x116   :  { %v6324_v22 = vld [vmem:[#allocation5 + $0x2d8] sm:$0xf0]  ;;  %v6183_v27 = vor.u32 %v8838_v17, %v6180_v18 }
 0x117   :  { %2136 = vmatpush.bf16.msrb.mxu2 %v6787_v25  ;;  %v6452_v25 = vld [vmem:[#allocation5 + $0x3d8] sm:$0xf0]  ;;  %v6327_v30 = vor.u32 %v8874_v20, %v6324_v22  ;;  %v8890_v20 = vld [vmem:[#allocation5 + $0x34c] sm:$0xf] }
 0x118   :  { %2149 = vmatpush.bf16.msrb.mxu3 %v6915_v29  ;;  %v6036_v29 = vld [vmem:[#allocation5 + $0x98] sm:$0xf0]  ;;  %v6455_v33 = vor.u32 %v8906_v24, %v6452_v25  ;;  %v6119_v25 = vor.u32 %v8822_v12, %v6116_v13  ;;  %v8966_v13 = vld [vmem:[#allocation5 + $0x5ac] sm:$0xf] }
 0x119   :  { %2112 = vmatpush.bf16.msrb.mxu0 %v6499_v31  ;;  %2125 = vmatpush.bf16.msrb.mxu1 %v6627_v35  ;;  %v6164_v31 = vld [vmem:[#allocation5 + $0x198] sm:$0xf0]  ;;  %v6039_v37 = vor.u32 %v8802_v28, %v6036_v29  ;;  %v8818_v28 = vld [vmem:[#allocation5 + $0x10c] sm:$0xf] }
 0x11a   :  { %v6308_v35 = vld [vmem:[#allocation5 + $0x2b8] sm:$0xf0]  ;;  %v6167_v41 = vor.u32 %v8834_v11, %v6164_v31  ;;  %v8942_v11 = vld [vmem:[#allocation5 + $0x4ec] sm:$0xf] }
 0x11b   :  { %2137 = vmatpush.bf16.msrb.mxu2 %v6771_v39  ;;  %v6436_v39 = vld [vmem:[#allocation5 + $0x3b8] sm:$0xf0] }
 0x11c   :  { %2150 = vmatpush.bf16.msrb.mxu3 %v6899_v44  ;;  %v9795_v32 = vpop.f32.mrf.mxu0  ;;  %v6311_v44 = vor.u32 %v8870_v34, %v6308_v35  ;;  %v6439_v49 = vor.u32 %v8902_v38, %v6436_v39  ;;  %v6260_v17 = vld [vmem:[#allocation5 + $0x258] sm:$0xf0]  ;;  %v8854_v38 = vld [vmem:[#allocation5 + $0x22c] sm:$0xf] }
 0x11d   :  { %2113 = vmatpush.bf16.msrb.mxu0 %v6483_v50  ;;  %2126 = vmatpush.bf16.msrb.mxu1 %v6611_v54  ;;  %v9798_v36 = vpop.f32.mrf.mxu1  ;;  %v8866_v50 = vld [vmem:[#allocation5 + $0x28c] sm:$0xf]  ;;  %v6388_v22 = vld [vmem:[#allocation5 + $0x358] sm:$0xf0] }
 0x11e   :  { %v8898_v54 = vld [vmem:[#allocation5 + $0x38c] sm:$0xf]  ;;  %v6295_v58 = vor.u32 %v8866_v50, %v6292_v51  ;;  %v6100_v29 = vld [vmem:[#allocation5 + $0x118] sm:$0xf0]  ;;  %v6391_v35 = vor.u32 %v8890_v20, %v6388_v22 }
 0x11f   :  { %2138 = vmatpush.bf16.msrb.mxu2 %v6755_v26  ;;  %v6004_v26 = vld [vmem:[#allocation5 + $0x58] sm:$0xf0]  ;;  %v6103_v46 = vor.u32 %v8818_v28, %v6100_v29  ;;  %v8930_v28 = vld [vmem:[#allocation5 + $0x48c] sm:$0xf] }
 0x120   :  { %2151 = vmatpush.bf16.msrb.mxu3 %v6883_v61  ;;  %2114 = vmatmul.bf16.vlgmr.msrb.gmra.mxu0 %v9769_v47  ;;  %v6596_v31 = vld [vmem:[#allocation5 + $0x4f8] sm:$0xf0] }
 0x121   :  { %2158 = vmatpush.bf16.msra.mxu0 %v6087_v55  ;;  %2171 = vmatpush.bf16.msra.mxu1 %v6215_v57  ;;  %v6420_v55 = vld [vmem:[#allocation5 + $0x398] sm:$0xf0]  ;;  %v8794_v57 = vld [vmem:[#allocation5 + $0x4c] sm:$0xf]  ;;  %v6599_v48 = vor.u32 %v8942_v11, %v6596_v31 }
 0x122   :  { %2127 = vmatmul.bf16.vlgmr.msrb.gmra.mxu1 %v9771_v53  ;;  %v6423_v62 = vor.u32 %v8898_v54, %v6420_v55  ;;  %v6007_v2 = vor.u32 %v8794_v57, %v6004_v26  ;;  %v6244_v39 = vld [vmem:[#allocation5 + $0x238] sm:$0xf0]  ;;  %v8970_v54 = vld [vmem:[#allocation5 + $0x5cc] sm:$0xf] }
 0x123   :  { %2139 = vmatpush.bf16.msrb.mxu2 %v6739_v9  ;;  %v6279_v9 = vor.u32 %v8862_v63, %v6276_v0  ;;  %v6247_v51 = vor.u32 %v8854_v38, %v6244_v39  ;;  %v6708_v55 = vld [vmem:[#allocation5 + $0x5d8] sm:$0xf0]  ;;  %v8850_v57 = vld [vmem:[#allocation5 + $0x20c] sm:$0xf] }
 0x124   :  { %2152 = vmatpush.bf16.msrb.mxu3 %v6867_v14  ;;  %v1857_v61 = vpop.f32.mrf.mxu0  ;;  %v6228_v26 = vld [vmem:[#allocation5 + $0x218] sm:$0xf0]  ;;  %v9030_v39 = vld [vmem:[#allocation5 + $0x7ac] sm:$0xf] }
 0x125   :  { %2159 = vmatpush.bf16.msra.mxu0 %v6071_v5  ;;  %2172 = vmatpush.bf16.msra.mxu1 %v6199_v8  ;;  %v1870_v1 = vpop.f32.mrf.mxu1  ;;  %v6404_v5 = vld [vmem:[#allocation5 + $0x378] sm:$0xf0]  ;;  %v9006_v61 = vld [vmem:[#allocation5 + $0x6ec] sm:$0xf] }
 0x126   :  { %2140 = vmatmul.bf16.vlgmr.msrb.gmra.mxu2 %v9775_v16  ;;  %v5988_v8 = vld [vmem:[#allocation5 + $0x38] sm:$0xf0]  ;;  %v6407_v14 = vor.u32 %v8894_v3, %v6404_v5  ;;  %v9038_v1 = vld [vmem:[#allocation5 + $0x7ec] sm:$0xf]  ;;  %v6711_v3 = vor.u32 %v8970_v54, %v6708_v55  ;;  %v6231_v5 = vor.u32 %v8850_v57, %v6228_v26 }
 0x127   :  { %2184 = vmatpush.bf16.msra.mxu2 %v6343_v15  ;;  %2153 = vmatmul.bf16.vlgmr.msrb.gmra.mxu3 %v9777_v21  ;;  %v8858_v15 = vld [vmem:[#allocation5 + $0x24c] sm:$0xf]  ;;  %v6836_v20 = vld [vmem:[#allocation5 + $0x6d8] sm:$0xf0] }
 0x128   :  { %2197 = vmatpush.bf16.msra.mxu3 %v6471_v19  ;;  %v5991_v19 = vor.u32 %v8790_v7, %v5988_v8  ;;  %v6564_v7 = vld [vmem:[#allocation5 + $0x4b8] sm:$0xf0]  ;;  %v8994_v54 = vld [vmem:[#allocation5 + $0x68c] sm:$0xf] }
 0x129   :  { %2160 = vmatpush.bf16.msra.mxu0 %v6055_v23  ;;  %2173 = vmatpush.bf16.msra.mxu1 %v6183_v27  ;;  %v9801_v18 = vpop.f32.mrf.mxu2  ;;  %v8786_v23 = vld [vmem:[#allocation5 + $0xc] sm:$0xf]  ;;  %v5972_v27 = vld [vmem:[#allocation5 + $0x18] sm:$0xf0] }
 0x12a   :  { %v9803_v24 = vpop.f32.mrf.mxu3  ;;  %v5975_v42 = vor.u32 %v8786_v23, %v5972_v27  ;;  %v9034_v23 = vld [vmem:[#allocation5 + $0x7cc] sm:$0xf]  ;;  %v6676_v11 = vld [vmem:[#allocation5 + $0x598] sm:$0xf0] }
 0x12b   :  { %2185 = vmatpush.bf16.msra.mxu2 %v6327_v30  ;;  %v6263_v30 = vor.u32 %v8858_v15, %v6260_v17  ;;  %v9026_v57 = vld [vmem:[#allocation5 + $0x78c] sm:$0xf] }
 0x12c   :  { %2198 = vmatpush.bf16.msra.mxu3 %v6455_v33  ;;  %v8974_v33 = vld [vmem:[#allocation5 + $0x5ec] sm:$0xf]  ;;  %v9805_v34 = vpop.f32.mrf.mxu0 }
 0x12d   :  { %2161 = vmatpush.bf16.msra.mxu0 %v6039_v37  ;;  %2174 = vmatpush.bf16.msra.mxu1 %v6167_v41  ;;  %v6724_v37 = vld [vmem:[#allocation5 + $0x5f8] sm:$0xf0]  ;;  %v9807_v41 = vpop.f32.mrf.mxu1 }
 0x12e   :  { %v6727_v50 = vor.u32 %v8974_v33, %v6724_v37  ;;  %v8998_v33 = vld [vmem:[#allocation5 + $0x6ac] sm:$0xf] }
 0x12f   :  { %2186 = vmatpush.bf16.msra.mxu2 %v6311_v44  ;;  %v6372_v44 = vld [vmem:[#allocation5 + $0x338] sm:$0xf0] }
 0x130   :  { %2199 = vmatpush.bf16.msra.mxu3 %v6439_v49  ;;  %v8938_v49 = vld [vmem:[#allocation5 + $0x4cc] sm:$0xf] }
 0x131   :  { %2162 = vmatpush.bf16.msra.mxu0 %v6023_v52  ;;  %2175 = vmatpush.bf16.msra.mxu1 %v6151_v56  ;;  %v6580_v52 = vld [vmem:[#allocation5 + $0x4d8] sm:$0xf0]  ;;  %v6375_v56 = vor.u32 %v8886_v43, %v6372_v44  ;;  %v1883_v59 = vpop.f32.mrf.mxu2  ;;  %v8926_v44 = vld [vmem:[#allocation5 + $0x46c] sm:$0xf] }
 0x132   :  { %v1896_v63 = vpop.f32.mrf.mxu3  ;;  %v6583_v0 = vor.u32 %v8938_v49, %v6580_v52  ;;  %v8958_v49 = vld [vmem:[#allocation5 + $0x56c] sm:$0xf]  ;;  %v6516_v59 = vld [vmem:[#allocation5 + $0x458] sm:$0xf0] }
 0x133   :  { %2187 = vmatpush.bf16.msra.mxu2 %v6295_v58  ;;  %v8882_v58 = vld [vmem:[#allocation5 + $0x30c] sm:$0xf] }
 0x134   :  { %2200 = vmatpush.bf16.msra.mxu3 %v6423_v62  ;;  %v6852_v62 = vld [vmem:[#allocation5 + $0x6f8] sm:$0xf0]  ;;  %v1909_v8 = vpop.f32.mrf.mxu0 }
 0x135   :  { %2163 = vmatpush.bf16.msra.mxu0 %v6007_v2  ;;  %2176 = vmatpush.bf16.msra.mxu1 %v6135_v6  ;;  %v6980_v2 = vld [vmem:[#allocation5 + $0x7f8] sm:$0xf0]  ;;  %v8934_v6 = vld [vmem:[#allocation5 + $0x4ac] sm:$0xf]  ;;  %v6855_v12 = vor.u32 %v9006_v61, %v6852_v62  ;;  %v1922_v15 = vpop.f32.mrf.mxu1 }
 0x136   :  { %v6983_v17 = vor.u32 %v9038_v1, %v6980_v2  ;;  %v6567_v22 = vor.u32 %v8934_v6, %v6564_v7  ;;  %v8954_v61 = vld [vmem:[#allocation5 + $0x54c] sm:$0xf]  ;;  %v6644_v62 = vld [vmem:[#allocation5 + $0x558] sm:$0xf0] }
 0x137   :  { %2188 = vmatpush.bf16.msra.mxu2 %v6279_v9  ;;  %v6359_v9 = vor.u32 %v8882_v58, %v6356_v60  ;;  %v8922_v58 = vld [vmem:[#allocation5 + $0x44c] sm:$0xf]  ;;  %v6788_v2 = vld [vmem:[#allocation5 + $0x678] sm:$0xf0] }
 0x138   :  { %2201 = vmatpush.bf16.msra.mxu3 %v6407_v14  ;;  %v6692_v14 = vld [vmem:[#allocation5 + $0x5b8] sm:$0xf0]  ;;  %v8990_v1 = vld [vmem:[#allocation5 + $0x66c] sm:$0xf]  ;;  %v6519_v6 = vor.u32 %v8922_v58, %v6516_v59 }
 0x139   :  { %2164 = vmatpush.bf16.msra.mxu0 %v5991_v19  ;;  %2177 = vmatpush.bf16.msra.mxu1 %v6119_v25  ;;  %v9002_v19 = vld [vmem:[#allocation5 + $0x6cc] sm:$0xf]  ;;  %v6964_v25 = vld [vmem:[#allocation5 + $0x7d8] sm:$0xf0]  ;;  %v6695_v27 = vor.u32 %v8966_v13, %v6692_v14  ;;  %v6791_v14 = vor.u32 %v8990_v1, %v6788_v2 }
 0x13a   :  { %v6839_v29 = vor.u32 %v9002_v19, %v6836_v20  ;;  %v6967_v31 = vor.u32 %v9034_v23, %v6964_v25  ;;  %v9813_v37 = vpop.f32.mrf.mxu3  ;;  %v9022_v7 = vld [vmem:[#allocation5 + $0x76c] sm:$0xf]  ;;  %v6916_v8 = vld [vmem:[#allocation5 + $0x778] sm:$0xf0] }
 0x13b   :  { %2189 = vmatpush.bf16.msra.mxu2 %v6263_v30  ;;  %v8962_v30 = vld [vmem:[#allocation5 + $0x58c] sm:$0xf]  ;;  %v6500_v13 = vld [vmem:[#allocation5 + $0x438] sm:$0xf0] }
 0x13c   :  { %2202 = vmatpush.bf16.msra.mxu3 %v6391_v35  ;;  %v6820_v35 = vld [vmem:[#allocation5 + $0x6b8] sm:$0xf0]  ;;  %v6679_v43 = vor.u32 %v8962_v30, %v6676_v11  ;;  %v8950_v15 = vld [vmem:[#allocation5 + $0x52c] sm:$0xf] }
 0x13d   :  { %2165 = vmatpush.bf16.msra.mxu0 %v5975_v42  ;;  %2178 = vmatpush.bf16.msra.mxu1 %v6103_v46  ;;  %v6948_v42 = vld [vmem:[#allocation5 + $0x7b8] sm:$0xf0]  ;;  %v8986_v23 = vld [vmem:[#allocation5 + $0x64c] sm:$0xf] }
 0x13e   :  { %v6532_v46 = vld [vmem:[#allocation5 + $0x478] sm:$0xf0]  ;;  %v6951_v52 = vor.u32 %v9030_v39, %v6948_v42  ;;  %v8914_v30 = vld [vmem:[#allocation5 + $0x40c] sm:$0xf]  ;;  %v7042_v39 = vld [vmem:[%s10575_s5 + $0x70] sm:$0xf] }
 0x13f   :  { %2190 = vmatpush.bf16.msra.mxu2 %v6247_v51  ;;  %v9817_v51 = vpop.f32.mrf.mxu0  ;;  %v9819_v55 = vpop.f32.mrf.mxu1  ;;  %v6772_v25 = vld [vmem:[#allocation5 + $0x658] sm:$0xf0]  ;;  %v9056_v42 = vld [vmem:[%s10575_s5 + $0x74] sm:$0xf0] }
 0x140   :  { %2203 = vmatpush.bf16.msra.mxu3 %v6375_v56  ;;  %2166 = vmatmul.bf16.vlgmr.msra.gmra.mxu0 %v9752_v40  ;;  %v6548_v40 = vld [vmem:[#allocation5 + $0x498] sm:$0xf0]  ;;  %v6535_v56 = vor.u32 %v8926_v44, %v6532_v46  ;;  %v9072_v46 = vld [vmem:[%s10575_s5 + $0xf4] sm:$0xf0] }
 0x141   :  { %2210 = vmatpush.bf16.msrb.mxu0 %v6599_v48  ;;  %2223 = vmatpush.bf16.msrb.mxu1 %v6727_v50  ;;  %v6551_v38 = vor.u32 %v8930_v28, %v6548_v40  ;;  %v6823_v48 = vor.u32 %v8998_v33, %v6820_v35  ;;  %v6660_v50 = vld [vmem:[#allocation5 + $0x578] sm:$0xf0]  ;;  %v9018_v40 = vld [vmem:[#allocation5 + $0x74c] sm:$0xf] }
 0x142   :  { %2179 = vmatmul.bf16.vlgmr.msra.gmra.mxu1 %v9755_v45  ;;  %v9811_v45 = vpop.f32.mrf.mxu2  ;;  %v6663_v26 = vor.u32 %v8958_v49, %v6660_v50  ;;  %v8946_v33 = vld [vmem:[#allocation5 + $0x50c] sm:$0xf]  ;;  %v6612_v35 = vld [vmem:[#allocation5 + $0x518] sm:$0xf0] }
 0x143   :  { %2191 = vmatpush.bf16.msra.mxu2 %v6231_v5  ;;  %v1948_v5 = vpop.f32.mrf.mxu3  ;;  %v6756_v49 = vld [vmem:[#allocation5 + $0x638] sm:$0xf0] }
 0x144   :  { %2204 = vmatpush.bf16.msra.mxu3 %v6359_v9  ;;  %v6647_v9 = vor.u32 %v8954_v61, %v6644_v62  ;;  %v7098_v61 = vld [vmem:[%s10575_s5 + $0xe0] sm:$0xf]  ;;  %v6740_v1 = vld [vmem:[#allocation5 + $0x618] sm:$0xf0]  ;;  %v9010_v5 = vld [vmem:[#allocation5 + $0x70c] sm:$0xf] }
 0x145   :  { %2211 = vmatpush.bf16.msrb.mxu0 %v6583_v0  ;;  %2224 = vmatpush.bf16.msrb.mxu1 %v6711_v3  ;;  %v9824_v3 = vld [vmem:[%s10574_s4] sm:$0xf] }
 0x146   :  { %2192 = vmatmul.bf16.vlgmr.msra.gmra.mxu2 %v9760_v4  ;;  %v6804_v4 = vld [vmem:[#allocation5 + $0x698] sm:$0xf0]  ;;  %v558_v19 = vperm.slane %v9824_v3, 0 }
 0x147   :  { %2236 = vmatpush.bf16.msrb.mxu2 %v6855_v12  ;;  %2205 = vmatmul.bf16.vlgmr.msra.gmra.mxu3 %v9762_v10  ;;  %v6932_v10 = vld [vmem:[#allocation5 + $0x798] sm:$0xf0]  ;;  %v6807_v60 = vor.u32 %v8994_v54, %v6804_v4  ;;  %v8918_v12 = vld [vmem:[#allocation5 + $0x42c] sm:$0xf]  ;;  %v1961_v20 = vpop.f32.mrf.mxu0 }
 0x148   :  { %2249 = vmatpush.bf16.msrb.mxu3 %v6983_v17  ;;  %v6935_v0 = vor.u32 %v9026_v57, %v6932_v10  ;;  %v6628_v17 = vld [vmem:[#allocation5 + $0x538] sm:$0xf0]  ;;  %v6503_v28 = vor.u32 %v8918_v12, %v6500_v13  ;;  %v1856_v50 = vadd.f32 %v9795_v32, %v558_v19  ;;  %v6615_v10 = vor.u32 %v8946_v33, %v6612_v35  ;;  %v9054_v32 = vld [vmem:[%s10575_s5 + $0x64] sm:$0xf0]  ;;  %v7026_v12 = vld [vmem:[%s10575_s5 + $0x50] sm:$0xf] }
 0x149   :  { %2212 = vmatpush.bf16.msrb.mxu0 %v6567_v22  ;;  %2225 = vmatpush.bf16.msrb.mxu1 %v6695_v27  ;;  %v6919_v22 = vor.u32 %v9022_v7, %v6916_v8  ;;  %v1974_v27 = vpop.f32.mrf.mxu1  ;;  %v6631_v11 = vor.u32 %v8950_v15, %v6628_v17  ;;  %v6884_v57 = vld [vmem:[#allocation5 + $0x738] sm:$0xf0]  ;;  %v9052_v13 = vld [vmem:[%s10575_s5 + $0x54] sm:$0xf0]  ;;  %v7090_v15 = vld [vmem:[%s10575_s5 + $0xd0] sm:$0xf] }
 0x14a   :  { %v1935_v63 = vpop.f32.mrf.mxu2  ;;  %v1869_v2 = vadd.f32 %v9798_v36, %v1856_v50  ;;  %v559_v36 = vperm.slane %v9824_v3, 1  ;;  %v9068_v17 = vld [vmem:[%s10575_s5 + $0xd4] sm:$0xf0]  ;;  %v9050_v27 = vld [vmem:[%s10575_s5 + $0x44] sm:$0xf0] }
 0x14b   :  { %2237 = vmatpush.bf16.msrb.mxu2 %v6839_v29  ;;  %v6900_v29 = vld [vmem:[#allocation5 + $0x758] sm:$0xf0]  ;;  %v9842_v54 = vpop.f32.mrf.mxu3  ;;  %v9070_v63 = vld [vmem:[%s10575_s5 + $0xe4] sm:$0xf0] }
 0x14c   :  { %2250 = vmatpush.bf16.msrb.mxu3 %v6967_v31  ;;  %v6484_v31 = vld [vmem:[#allocation5 + $0x418] sm:$0xf0]  ;;  %v6903_v44 = vor.u32 %v9018_v40, %v6900_v29  ;;  %v7099_v8 = vor.u32 %v9070_v63, %v7098_v61  ;;  %v1882_v19 = vadd.f32 %v9801_v18, %v1869_v2  ;;  %v9066_v18 = vld [vmem:[%s10575_s5 + $0xc4] sm:$0xf0]  ;;  %v7154_v63 = vld [vmem:[%s10575_s5 + $0x150] sm:$0xf] }
 0x14d   :  { %2213 = vmatpush.bf16.msrb.mxu0 %v6551_v38  ;;  %2226 = vmatpush.bf16.msrb.mxu1 %v6679_v43  ;;  %v6775_v38 = vor.u32 %v8986_v23, %v6772_v25  ;;  %v7106_v43 = vld [vmem:[%s10575_s5 + $0xf0] sm:$0xf]  ;;  %v6487_v4 = vor.u32 %v8914_v30, %v6484_v31  ;;  %v7027_v23 = vor.u32 %v9052_v13, %v7026_v12  ;;  %v7018_v25 = vld [vmem:[%s10575_s5 + $0x40] sm:$0xf]  ;;  %v9055_v12 = vld [vmem:[%s10575_s5 + $0x74] sm:$0xf] }
 0x14e   :  { %v7107_v58 = vor.u32 %v9072_v46, %v7106_v43  ;;  %v1895_v40 = vadd.f32 %v9803_v24, %v1882_v19  ;;  %v7019_v29 = vor.u32 %v9050_v27, %v7018_v25  ;;  %v7044_v13 = vld [vmem:[%s10575_s5 + $0x78] sm:$0xf0] }
 0x14f   :  { %2238 = vmatpush.bf16.msrb.mxu2 %v6823_v48  ;;  %v8982_v48 = vld [vmem:[#allocation5 + $0x62c] sm:$0xf]  ;;  %v7047_v27 = vor.u32 %v9055_v12, %v7044_v13  ;;  %v9061_v13 = vld [vmem:[%s10575_s5 + $0xa4] sm:$0xf] }
 0x150   :  { %2251 = vmatpush.bf16.msrb.mxu3 %v6951_v52  ;;  %v6759_v59 = vor.u32 %v8982_v48, %v6756_v49  ;;  %v1908_v24 = vadd.f32 %v9805_v34, %v1895_v40  ;;  %v7002_v34 = vld [vmem:[%s10575_s5 + $0x20] sm:$0xf]  ;;  %v9062_v49 = vld [vmem:[%s10575_s5 + $0xa4] sm:$0xf0]  ;;  %v9053_v40 = vld [vmem:[%s10575_s5 + $0x64] sm:$0xf] }
 0x151   :  { %2214 = vmatpush.bf16.msrb.mxu0 %v6535_v56  ;;  %2227 = vmatpush.bf16.msrb.mxu1 %v6663_v26  ;;  %v9014_v56 = vld [vmem:[#allocation5 + $0x72c] sm:$0xf]  ;;  %v7043_v26 = vor.u32 %v9056_v42, %v7042_v39  ;;  %v9088_v42 = vld [vmem:[%s10575_s5 + $0x174] sm:$0xf0]  ;;  %v7066_v48 = vld [vmem:[%s10575_s5 + $0xa0] sm:$0xf] }
 0x152   :  { %v9840_v52 = vpop.f32.mrf.mxu2  ;;  %v6887_v62 = vor.u32 %v9014_v56, %v6884_v57  ;;  %v1921_v50 = vadd.f32 %v9807_v41, %v1908_v24  ;;  %v7162_v56 = vld [vmem:[%s10575_s5 + $0x160] sm:$0xf]  ;;  %v9086_v57 = vld [vmem:[%s10575_s5 + $0x164] sm:$0xf0]  ;;  %v6994_v41 = vld [vmem:[%s10575_s5 + $0x10] sm:$0xf] }
 0x153   :  { %2239 = vmatpush.bf16.msrb.mxu2 %v6807_v60  ;;  %v7034_v60 = vld [vmem:[%s10575_s5 + $0x60] sm:$0xf] }
 0x154   :  { %2252 = vmatpush.bf16.msrb.mxu3 %v6935_v0  ;;  %v8978_v0 = vld [vmem:[#allocation5 + $0x60c] sm:$0xf]  ;;  %v7035_v7 = vor.u32 %v9054_v32, %v7034_v60  ;;  %v7058_v60 = vld [vmem:[%s10575_s5 + $0x90] sm:$0xf] }
 0x155   :  { %2215 = vmatpush.bf16.msrb.mxu0 %v6519_v6  ;;  %2228 = vmatpush.bf16.msrb.mxu1 %v6647_v9  ;;  %v6868_v6 = vld [vmem:[#allocation5 + $0x718] sm:$0xf0]  ;;  %v6743_v9 = vor.u32 %v8978_v0, %v6740_v1  ;;  %v9084_v0 = vld [vmem:[%s10575_s5 + $0x154] sm:$0xf0] }
 0x157   :  { %2240 = vmatpush.bf16.msrb.mxu2 %v6791_v14  ;;  %v6871_v14 = vor.u32 %v9010_v5, %v6868_v6  ;;  %v6986_v5 = vld [vmem:[%s10575_s5] sm:$0xf]  ;;  %v9042_v6 = vld [vmem:[%s10575_s5 + $0x4] sm:$0xf0] }
 0x158   :  { %2253 = vmatpush.bf16.msrb.mxu3 %v6919_v22  ;;  %v2000_v22 = vpop.f32.mrf.mxu3 }
 0x159   :  { %2216 = vmatpush.bf16.msrb.mxu0 %v6503_v28  ;;  %2229 = vmatpush.bf16.msrb.mxu1 %v6631_v11  ;;  %v1960_v28 = vadd.f32 %v9817_v51, %v559_v36  ;;  %v7010_v51 = vld [vmem:[%s10575_s5 + $0x30] sm:$0xf]  ;;  %v9048_v11 = vld [vmem:[%s10575_s5 + $0x34] sm:$0xf0]  ;;  %v7146_v22 = vld [vmem:[%s10575_s5 + $0x140] sm:$0xf] }
 0x15a   :  { %v1987_v20 = vpop.f32.mrf.mxu2  ;;  %v7011_v39 = vor.u32 %v9048_v11, %v7010_v51  ;;  %v7100_v51 = vld [vmem:[%s10575_s5 + $0xe8] sm:$0xf0] }
 0x15b   :  { %2241 = vmatpush.bf16.msrb.mxu2 %v6775_v38  ;;  %v1973_v31 = vadd.f32 %v9819_v55, %v1960_v28  ;;  %v7170_v55 = vld [vmem:[%s10575_s5 + $0x170] sm:$0xf]  ;;  %v6987_v20 = vor.u32 %v9042_v6, %v6986_v5 }
 0x15c   :  { %2254 = vmatpush.bf16.msrb.mxu3 %v6903_v44  ;;  %v9046_v44 = vld [vmem:[%s10575_s5 + $0x24] sm:$0xf0]  ;;  %v7171_v46 = vor.u32 %v9088_v42, %v7170_v55  ;;  %v9051_v42 = vld [vmem:[%s10575_s5 + $0x54] sm:$0xf] }
 0x15d   :  { %2217 = vmatpush.bf16.msrb.mxu0 %v6487_v4  ;;  %2230 = vmatpush.bf16.msrb.mxu1 %v6615_v10  ;;  %v2011_v33 = vpop.f32.mrf.mxu0  ;;  %v1986_v35 = vadd.f32 %v9840_v52, %v1973_v31  ;;  %v7003_v4 = vor.u32 %v9046_v44, %v7002_v34  ;;  %v1934_v10 = vadd.f32 %v9811_v45, %v1921_v50  ;;  %v9060_v45 = vld [vmem:[%s10575_s5 + $0x94] sm:$0xf0]  ;;  %v7138_v31 = vld [vmem:[%s10575_s5 + $0x130] sm:$0xf]  ;;  %v9067_v44 = vld [vmem:[%s10575_s5 + $0xd4] sm:$0xf] }
 0x15e   :  { %v7059_v2 = vor.u32 %v9060_v45, %v7058_v60  ;;  %v9047_v60 = vld [vmem:[%s10575_s5 + $0x34] sm:$0xf]  ;;  %v7012_v45 = vld [vmem:[%s10575_s5 + $0x38] sm:$0xf0] }
 0x15f   :  { %2242 = vmatpush.bf16.msrb.mxu2 %v6759_v59  ;;  %v2024_v38 = vpop.f32.mrf.mxu1  ;;  %v1999_v52 = vadd.f32 %v9842_v54, %v1986_v35  ;;  %v9044_v54 = vld [vmem:[%s10575_s5 + $0x14] sm:$0xf0]  ;;  %v1947_v1 = vadd.f32 %v9813_v37, %v1934_v10  ;;  %v9058_v37 = vld [vmem:[%s10575_s5 + $0x84] sm:$0xf0]  ;;  %v7130_v35 = vld [vmem:[%s10575_s5 + $0x120] sm:$0xf]  ;;  %v7015_v5 = vor.u32 %v9047_v60, %v7012_v45 }
 0x160   :  { %2255 = vmatpush.bf16.msrb.mxu3 %v6887_v62  ;;  %2218 = vmatmul.bf16.vlgmr.msrb.gmra.mxu0 %v9769_v47  ;;  %v7091_v47 = vor.u32 %v9068_v17, %v7090_v15  ;;  %v6995_v62 = vor.u32 %v9044_v54, %v6994_v41  ;;  %v7108_v15 = vld [vmem:[%s10575_s5 + $0xf8] sm:$0xf0]  ;;  %v7084_v10 = vld [vmem:[%s10575_s5 + $0xc8] sm:$0xf0]  ;;  %v9076_v41 = vld [vmem:[%s10575_s5 + $0x114] sm:$0xf0] }
 0x161   :  { %2660 = vmatpush.bf16.msra.mxu0 %v7043_v26  ;;  %2673 = vmatpush.bf16.msra.mxu1 %v7107_v58  ;;  %v7067_v26 = vor.u32 %v9062_v49, %v7066_v48  ;;  %v7163_v58 = vor.u32 %v9086_v57, %v7162_v56  ;;  %v2012_v59 = vadd.f32 %v2011_v33, %v1999_v52  ;;  %v7020_v56 = vld [vmem:[%s10575_s5 + $0x48] sm:$0xf0]  ;;  %v9065_v57 = vld [vmem:[%s10575_s5 + $0xc4] sm:$0xf] }
 0x162   :  { %2231 = vmatmul.bf16.vlgmr.msrb.gmra.mxu1 %v9771_v53  ;;  %v7082_v53 = vld [vmem:[%s10575_s5 + $0xc0] sm:$0xf] }
 0x163   :  { %2243 = vmatpush.bf16.msrb.mxu2 %v6743_v9  ;;  %v7083_v30 = vor.u32 %v9066_v18, %v7082_v53  ;;  %v2025_v9 = vadd.f32 %v2024_v38, %v2012_v59  ;;  %v9078_v38 = vld [vmem:[%s10575_s5 + $0x124] sm:$0xf0]  ;;  %v7087_v59 = vor.u32 %v9065_v57, %v7084_v10  ;;  %v9075_v10 = vld [vmem:[%s10575_s5 + $0x114] sm:$0xf] }
 0x164   :  { %2256 = vmatpush.bf16.msrb.mxu3 %v6871_v14  ;;  %v9071_v14 = vld [vmem:[%s10575_s5 + $0xf4] sm:$0xf]  ;;  %v7131_v48 = vor.u32 %v9078_v38, %v7130_v35  ;;  %v9081_v38 = vld [vmem:[%s10575_s5 + $0x144] sm:$0xf] }
 0x165   :  { %2661 = vmatpush.bf16.msra.mxu0 %v7035_v7  ;;  %2674 = vmatpush.bf16.msra.mxu1 %v7099_v8  ;;  %v2013_v32 = vpop.f32.mrf.mxu0  ;;  %v7050_v7 = vld [vmem:[%s10575_s5 + $0x80] sm:$0xf]  ;;  %v7155_v8 = vor.u32 %v9084_v0, %v7154_v63  ;;  %v7111_v18 = vor.u32 %v9071_v14, %v7108_v15  ;;  %v9074_v0 = vld [vmem:[%s10575_s5 + $0x104] sm:$0xf0]  ;;  %v9085_v15 = vld [vmem:[%s10575_s5 + $0x164] sm:$0xf] }
 0x166   :  { %2244 = vmatmul.bf16.vlgmr.msrb.gmra.mxu2 %v9775_v16  ;;  %v7074_v16 = vld [vmem:[%s10575_s5 + $0xb0] sm:$0xf]  ;;  %v7051_v25 = vor.u32 %v9058_v37, %v7050_v7  ;;  %v9063_v32 = vld [vmem:[%s10575_s5 + $0xb4] sm:$0xf]  ;;  %v7114_v63 = vld [vmem:[%s10575_s5 + $0x100] sm:$0xf] }
 0x167   :  { %2257 = vmatmul.bf16.vlgmr.msrb.gmra.mxu3 %v9777_v21  ;;  %v9064_v21 = vld [vmem:[%s10575_s5 + $0xb4] sm:$0xf0]  ;;  %2686 = vmatpush.bf16.msra.mxu2 %v7171_v46  ;;  %v2026_v61 = vpop.f32.mrf.mxu1  ;;  %v7092_v46 = vld [vmem:[%s10575_s5 + $0xd8] sm:$0xf0]  ;;  %v7115_v6 = vor.u32 %v9074_v0, %v7114_v63  ;;  %v7004_v37 = vld [vmem:[%s10575_s5 + $0x28] sm:$0xf0] }
 0x168   :  { %v7075_v43 = vor.u32 %v9064_v21, %v7074_v16  ;;  %v9080_v16 = vld [vmem:[%s10575_s5 + $0x134] sm:$0xf0]  ;;  %v7095_v52 = vor.u32 %v9067_v44, %v7092_v46  ;;  %v7076_v61 = vld [vmem:[%s10575_s5 + $0xb8] sm:$0xf0]  ;;  %v7226_v0 = vld [vmem:[%s10575_s5 + $0x1e0] sm:$0xf] }
 0x169   :  { %2662 = vmatpush.bf16.msra.mxu0 %v7027_v23  ;;  %2675 = vmatpush.bf16.msra.mxu1 %v7091_v47  ;;  %v2037_v36 = vpop.f32.mrf.mxu2  ;;  %v9082_v23 = vld [vmem:[%s10575_s5 + $0x144] sm:$0xf0]  ;;  %v2262_v47 = vmax.f32 %v1947_v1, 0.0  ;;  %v7139_v33 = vor.u32 %v9080_v16, %v7138_v31  ;;  %v9087_v1 = vld [vmem:[%s10575_s5 + $0x174] sm:$0xf] }
 0x16a   :  { %v2038_v17 = vadd.f32 %v2037_v36, %v2025_v9  ;;  %v2050_v19 = vpop.f32.mrf.mxu3  ;;  %v7147_v28 = vor.u32 %v9082_v23, %v7146_v22  ;;  %v7172_v7 = vld [vmem:[%s10575_s5 + $0x178] sm:$0xf0]  ;;  %v9045_v9 = vld [vmem:[%s10575_s5 + $0x24] sm:$0xf]  ;;  %v7068_v36 = vld [vmem:[%s10575_s5 + $0xa8] sm:$0xf0] }
 0x16b   :  { %2687 = vmatpush.bf16.msra.mxu2 %v7163_v58  ;;  %v9998_v21 = vpack.c.bf16 %v2262_v47, %v2262_v47  ;;  %v7175_v12 = vor.u32 %v9087_v1, %v7172_v7  ;;  %v7007_v14 = vor.u32 %v9045_v9, %v7004_v37  ;;  %v6996_v22 = vld [vmem:[%s10575_s5 + $0x18] sm:$0xf0]  ;;  %v9059_v47 = vld [vmem:[%s10575_s5 + $0x94] sm:$0xf]  ;;  %v9057_v31 = vld [vmem:[%s10575_s5 + $0x84] sm:$0xf] }
 0x16c   :  { %v2051_v53 = vadd.f32 %v2050_v19, %v2038_v17  ;;  %v7164_v17 = vld [vmem:[%s10575_s5 + $0x168] sm:$0xf0]  ;;  %v7071_v19 = vor.u32 %v9061_v13, %v7068_v36  ;;  %v7140_v44 = vld [vmem:[%s10575_s5 + $0x138] sm:$0xf0]  ;;  %v9102_v1 = vld [vmem:[%s10575_s5 + $0x1e4] sm:$0xf0] }
 0x16d   :  { %2663 = vmatpush.bf16.msra.mxu0 %v7019_v29  ;;  %2676 = vmatpush.bf16.msra.mxu1 %v7083_v30  ;;  %v7036_v29 = vld [vmem:[%s10575_s5 + $0x68] sm:$0xf0]  ;;  %v9069_v30 = vld [vmem:[%s10575_s5 + $0xe4] sm:$0xf]  ;;  %v7167_v23 = vor.u32 %v9085_v15, %v7164_v17  ;;  %v9100_v9 = vld [vmem:[%s10575_s5 + $0x1d4] sm:$0xf0] }
 0x16e   :  { %v2263_v11 = vmax.f32 %v2051_v53, 0.0  ;;  %v7039_v24 = vor.u32 %v9053_v40, %v7036_v29  ;;  %v7103_v55 = vor.u32 %v9069_v30, %v7100_v51  ;;  %v7156_v40 = vld [vmem:[%s10575_s5 + $0x158] sm:$0xf0]  ;;  %v9041_v30 = vld [vmem:[%s10575_s5 + $0x4] sm:$0xf] }
 0x16f   :  { %2688 = vmatpush.bf16.msra.mxu2 %v7155_v8  ;;  %v7079_v8 = vor.u32 %v9063_v32, %v7076_v61  ;;  %v6988_v51 = vld [vmem:[%s10575_s5 + $0x8] sm:$0xf0]  ;;  %v9104_v61 = vld [vmem:[%s10575_s5 + $0x1f4] sm:$0xf0]  ;;  %v7210_v36 = vld [vmem:[%s10575_s5 + $0x1c0] sm:$0xf] }
 0x170   :  { %v7052_v16 = vld [vmem:[%s10575_s5 + $0x88] sm:$0xf0]  ;;  %v6991_v35 = vor.u32 %v9041_v30, %v6988_v51  ;;  %v7186_v30 = vld [vmem:[%s10575_s5 + $0x190] sm:$0xf]  ;;  %v9092_v51 = vld [vmem:[%s10575_s5 + $0x194] sm:$0xf0] }
 0x171   :  { %2664 = vmatpush.bf16.msra.mxu0 %v7011_v39  ;;  %2677 = vmatpush.bf16.msra.mxu1 %v7075_v43  ;;  %v10006_v39 = vpack.c.bf16 %v2263_v11, %v2263_v11  ;;  %v7028_v43 = vld [vmem:[%s10575_s5 + $0x58] sm:$0xf0]  ;;  %v2039_v34 = vpop.f32.mrf.mxu2 }
 0x172   :  { %v2052_v49 = vpop.f32.mrf.mxu3  ;;  %v7031_v50 = vor.u32 %v9051_v42, %v7028_v43  ;;  %v7055_v42 = vor.u32 %v9057_v31, %v7052_v16  ;;  %v9079_v34 = vld [vmem:[%s10575_s5 + $0x134] sm:$0xf]  ;;  %v7178_v16 = vld [vmem:[%s10575_s5 + $0x180] sm:$0xf] }
 0x173   :  { %2689 = vmatpush.bf16.msra.mxu2 %v7147_v28  ;;  %v7143_v46 = vor.u32 %v9079_v34, %v7140_v44  ;;  %v7132_v49 = vld [vmem:[%s10575_s5 + $0x128] sm:$0xf0] }
 0x174   :  { %v7228_v34 = vld [vmem:[%s10575_s5 + $0x1e8] sm:$0xf0] }
 0x175   :  { %2665 = vmatpush.bf16.msra.mxu0 %v7003_v4  ;;  %2678 = vmatpush.bf16.msra.mxu1 %v7067_v26  ;;  %v9049_v4 = vld [vmem:[%s10575_s5 + $0x44] sm:$0xf]  ;;  %v7122_v26 = vld [vmem:[%s10575_s5 + $0x110] sm:$0xf] }
 0x176   :  { %v7023_v54 = vor.u32 %v9049_v4, %v7020_v56  ;;  %v7123_v58 = vor.u32 %v9076_v41, %v7122_v26  ;;  %v7124_v26 = vld [vmem:[%s10575_s5 + $0x118] sm:$0xf0] }
 0x177   :  { %2690 = vmatpush.bf16.msra.mxu2 %v7139_v33  ;;  %v7127_v41 = vor.u32 %v9075_v10, %v7124_v26  ;;  %v7212_v10 = vld [vmem:[%s10575_s5 + $0x1c8] sm:$0xf0] }
 0x179   :  { %2666 = vmatpush.bf16.msra.mxu0 %v6995_v62  ;;  %2679 = vmatpush.bf16.msra.mxu1 %v7059_v2 }
 0x17b   :  { %2691 = vmatpush.bf16.msra.mxu2 %v7131_v48  ;;  %v9077_v48 = vld [vmem:[%s10575_s5 + $0x124] sm:$0xf] }
 0x17c   :  { %v7135_v4 = vor.u32 %v9077_v48, %v7132_v49  ;;  %v9099_v49 = vld [vmem:[%s10575_s5 + $0x1d4] sm:$0xf] }
 0x17d   :  { %2667 = vmatpush.bf16.msra.mxu0 %v6987_v20  ;;  %2680 = vmatpush.bf16.msra.mxu1 %v7051_v25  ;;  %v10052_v62 = vpop.f32.mrf.mxu0  ;;  %v9043_v20 = vld [vmem:[%s10575_s5 + $0x14] sm:$0xf]  ;;  %v7060_v25 = vld [vmem:[%s10575_s5 + $0x98] sm:$0xf0] }
 0x17e   :  { %v6999_v53 = vor.u32 %v9043_v20, %v6996_v22  ;;  %v7063_v29 = vor.u32 %v9059_v47, %v7060_v25  ;;  %v9096_v47 = vld [vmem:[%s10575_s5 + $0x1b4] sm:$0xf0] }
 0x17f   :  { %2692 = vmatpush.bf16.msra.mxu2 %v7123_v58  ;;  %v10063_v2 = vpop.f32.mrf.mxu1  ;;  %v7116_v58 = vld [vmem:[%s10575_s5 + $0x108] sm:$0xf0] }
 0x180   :  { %2668 = vmatmul.bf16.vlgmr.msra.gmra.mxu0 %v9998_v21  ;;  %2681 = vmatmul.bf16.vlgmr.msra.gmra.mxu1 %v10006_v39 }
 0x181   :  { %2712 = vmatpush.bf16.msrb.mxu0 %v7047_v27  ;;  %2725 = vmatpush.bf16.msrb.mxu1 %v7111_v18  ;;  %v9083_v18 = vld [vmem:[%s10575_s5 + $0x154] sm:$0xf] }
 0x182   :  { %v7159_v11 = vor.u32 %v9083_v18, %v7156_v40 }
 0x183   :  { %2693 = vmatpush.bf16.msra.mxu2 %v7115_v6 }
 0x185   :  { %2713 = vmatpush.bf16.msrb.mxu0 %v7039_v24  ;;  %2726 = vmatpush.bf16.msrb.mxu1 %v7103_v55  ;;  %v2065_v27 = vpop.f32.mrf.mxu0  ;;  %v7148_v55 = vld [vmem:[%s10575_s5 + $0x148] sm:$0xf0] }
 0x186   :  { %v7151_v43 = vor.u32 %v9081_v38, %v7148_v55  ;;  %v7194_v27 = vld [vmem:[%s10575_s5 + $0x1a0] sm:$0xf]  ;;  %v7236_v55 = vld [vmem:[%s10575_s5 + $0x1f8] sm:$0xf0] }
 0x187   :  { %2738 = vmatpush.bf16.msrb.mxu2 %v7175_v12  ;;  %v2078_v28 = vpop.f32.mrf.mxu1 }
 0x188   :  { %v9094_v28 = vld [vmem:[%s10575_s5 + $0x1a4] sm:$0xf0] }
 0x189   :  { %2714 = vmatpush.bf16.msrb.mxu0 %v7031_v50  ;;  %2727 = vmatpush.bf16.msrb.mxu1 %v7095_v52  ;;  %v2089_v24 = vpop.f32.mrf.mxu2  ;;  %v560_v50 = vperm.slane %v9824_v3, 2  ;;  %v7195_v40 = vor.u32 %v9094_v28, %v7194_v27 }
 0x18a   :  { %v2102_v33 = vpop.f32.mrf.mxu3 }
 0x18b   :  { %2739 = vmatpush.bf16.msrb.mxu2 %v7167_v23  ;;  %v2064_v57 = vadd.f32 %v10052_v62, %v560_v50  ;;  %v7202_v23 = vld [vmem:[%s10575_s5 + $0x1b0] sm:$0xf]  ;;  %v7220_v50 = vld [vmem:[%s10575_s5 + $0x1d8] sm:$0xf0] }
 0x18c   :  { %v7203_v25 = vor.u32 %v9096_v47, %v7202_v23 }
 0x18d   :  { %2715 = vmatpush.bf16.msrb.mxu0 %v7023_v54  ;;  %2728 = vmatpush.bf16.msrb.mxu1 %v7087_v59  ;;  %v2077_v54 = vadd.f32 %v10063_v2, %v2064_v57  ;;  %v7234_v59 = vld [vmem:[%s10575_s5 + $0x1f0] sm:$0xf]  ;;  %v7227_v2 = vor.u32 %v9102_v1, %v7226_v0  ;;  %v9097_v57 = vld [vmem:[%s10575_s5 + $0x1c4] sm:$0xf] }
 0x18e   :  { %v7235_v62 = vor.u32 %v9104_v61, %v7234_v59  ;;  %v7215_v26 = vor.u32 %v9097_v57, %v7212_v10  ;;  %v561_v59 = vperm.slane %v9824_v3, 3  ;;  %v9089_v3 = vld [vmem:[%s10575_s5 + $0x184] sm:$0xf] }
 0x18f   :  { %2740 = vmatpush.bf16.msrb.mxu2 %v7159_v11  ;;  %v2090_v60 = vadd.f32 %v2089_v24, %v2077_v54  ;;  %v7187_v11 = vor.u32 %v9092_v51, %v7186_v30  ;;  %v9090_v24 = vld [vmem:[%s10575_s5 + $0x184] sm:$0xf0]  ;;  %v7204_v54 = vld [vmem:[%s10575_s5 + $0x1b8] sm:$0xf0]  ;;  %v9125_v10 = vld [vmem:[#allocation7 + $0xa4] sm:$0xf] }
 0x190   :  { %2699 = vmatpush.bf16.msra.mxu3 %v7235_v62  ;;  %v7179_v38 = vor.u32 %v9090_v24, %v7178_v16  ;;  %v9091_v62 = vld [vmem:[%s10575_s5 + $0x194] sm:$0xf] }
 0x191   :  { %2716 = vmatpush.bf16.msrb.mxu0 %v7015_v5  ;;  %2729 = vmatpush.bf16.msrb.mxu1 %v7079_v8  ;;  %v2091_v52 = vpop.f32.mrf.mxu2  ;;  %v2103_v63 = vadd.f32 %v2102_v33, %v2090_v60  ;;  %v7218_v8 = vld [vmem:[%s10575_s5 + $0x1d0] sm:$0xf]  ;;  %v9103_v33 = vld [vmem:[%s10575_s5 + $0x1f4] sm:$0xf] }
 0x192   :  { %v2104_v56 = vpop.f32.mrf.mxu3  ;;  %v7219_v37 = vor.u32 %v9100_v9, %v7218_v8  ;;  %v7223_v52 = vor.u32 %v9099_v49, %v7220_v50  ;;  %v9129_v49 = vld [vmem:[#allocation7 + $0xc4] sm:$0xf] }
 0x193   :  { %2741 = vmatpush.bf16.msrb.mxu2 %v7151_v43  ;;  %v9101_v43 = vld [vmem:[%s10575_s5 + $0x1e4] sm:$0xf] }
 0x194   :  { %2700 = vmatpush.bf16.msra.mxu3 %v7227_v2  ;;  %v7231_v44 = vor.u32 %v9101_v43, %v7228_v34  ;;  %v7356_v34 = vld [vmem:[#allocation7 + $0xf0] sm:$0xf0] }
 0x195   :  { %2717 = vmatpush.bf16.msrb.mxu0 %v7007_v14  ;;  %2730 = vmatpush.bf16.msrb.mxu1 %v7071_v19  ;;  %v9098_v14 = vld [vmem:[%s10575_s5 + $0x1c4] sm:$0xf0] }
 0x196   :  { %v7211_v19 = vor.u32 %v9098_v14, %v7210_v36 }
 0x197   :  { %2742 = vmatpush.bf16.msrb.mxu2 %v7143_v46 }
 0x198   :  { %2701 = vmatpush.bf16.msra.mxu3 %v7219_v37 }
 0x199   :  { %2718 = vmatpush.bf16.msrb.mxu0 %v6999_v53  ;;  %2731 = vmatpush.bf16.msrb.mxu1 %v7063_v29 }
 0x19b   :  { %2743 = vmatpush.bf16.msrb.mxu2 %v7135_v4 }
 0x19c   :  { %2702 = vmatpush.bf16.msra.mxu3 %v7211_v19 }
 0x19d   :  { %2719 = vmatpush.bf16.msrb.mxu0 %v6991_v35  ;;  %2732 = vmatpush.bf16.msrb.mxu1 %v7055_v42  ;;  %v7239_v42 = vor.u32 %v9103_v33, %v7236_v55  ;;  %v9135_v55 = vld [vmem:[#allocation7 + $0xec] sm:$0xf0] }
 0x19f   :  { %2744 = vmatpush.bf16.msrb.mxu2 %v7127_v41  ;;  %v2128_v45 = vpop.f32.mrf.mxu1  ;;  %v9095_v41 = vld [vmem:[%s10575_s5 + $0x1b4] sm:$0xf] }
 0x1a0   :  { %2720 = vmatmul.bf16.vlgmr.msrb.gmra.mxu0 %v9998_v21  ;;  %2733 = vmatmul.bf16.vlgmr.msrb.gmra.mxu1 %v10006_v39  ;;  %v2115_v21 = vpop.f32.mrf.mxu0  ;;  %v9073_v39 = vld [vmem:[%s10575_s5 + $0x104] sm:$0xf] }
 0x1a1   :  { %v7119_v32 = vor.u32 %v9073_v39, %v7116_v58  ;;  %v2116_v5 = vadd.f32 %v2115_v21, %v2103_v63  ;;  %2703 = vmatpush.bf16.msra.mxu3 %v7203_v25  ;;  %v7207_v21 = vor.u32 %v9095_v41, %v7204_v54  ;;  %v9093_v39 = vld [vmem:[%s10575_s5 + $0x1a4] sm:$0xf]  ;;  %v7196_v58 = vld [vmem:[%s10575_s5 + $0x1a8] sm:$0xf0]  ;;  %v7188_v63 = vld [vmem:[%s10575_s5 + $0x198] sm:$0xf0] }
 0x1a2   :  { %v7191_v0 = vor.u32 %v9091_v62, %v7188_v63  ;;  %v2334_v25 = vld [vmem:[%s10576_s6] sm:$0x3]  ;;  %v7484_v62 = vld [vmem:[#allocation7 + $0x1f0] sm:$0xf0] }
 0x1a3   :  { %2745 = vmatpush.bf16.msrb.mxu2 %v7119_v32  ;;  %v2129_v12 = vadd.f32 %v2128_v45, %v2116_v5  ;;  %v7199_v45 = vor.u32 %v9093_v39, %v7196_v58  ;;  %v7180_v5 = vld [vmem:[%s10575_s5 + $0x188] sm:$0xf0]  ;;  %v2336_v27 = vperm.slane %v2334_v25, 0  ;;  %v2337_v51 = vperm.slane %v2334_v25, 1  ;;  %v9123_v39 = vld [vmem:[#allocation7 + $0x8c] sm:$0xf0] }
 0x1a4   :  { %v7183_v8 = vor.u32 %v9089_v3, %v7180_v5  ;;  %v7482_v58 = vld [vmem:[#allocation7 + $0x1e0] sm:$0xf]  ;;  %v9113_v25 = vld [vmem:[#allocation7 + $0x44] sm:$0xf] }
 0x1a5   :  { %2704 = vmatpush.bf16.msra.mxu3 %v7195_v40  ;;  %v7290_v5 = vld [vmem:[#allocation7 + $0x60] sm:$0xf] }
 0x1a7   :  { %v2130_v7 = vpop.f32.mrf.mxu1 }
 0x1a8   :  { %v2117_v6 = vpop.f32.mrf.mxu0 }
 0x1a9   :  { %v2141_v13 = vpop.f32.mrf.mxu2  ;;  %2705 = vmatpush.bf16.msra.mxu3 %v7187_v11 }
 0x1aa   :  { %v2142_v15 = vadd.f32 %v2141_v13, %v2129_v12  ;;  %v2154_v17 = vpop.f32.mrf.mxu3 }
 0x1ac   :  { %v2155_v20 = vadd.f32 %v2154_v17, %v2142_v15 }
 0x1ad   :  { %2706 = vmatpush.bf16.msra.mxu3 %v7179_v38  ;;  %v7354_v38 = vld [vmem:[#allocation7 + $0xe0] sm:$0xf] }
 0x1ae   :  { %v2264_v22 = vmax.f32 %v2155_v20, 0.0  ;;  %v7355_v43 = vor.u32 %v9135_v55, %v7354_v38 }
 0x1b0   :  { %v2268_v53 = vpack.c.bf16 %v2264_v22, %v2264_v22  ;;  %3162 = vmatpush.bf16.msra.mxu0 %v7355_v43 }
 0x1b1   :  { %v2143_v18 = vpop.f32.mrf.mxu2  ;;  %2751 = vmatpush.bf16.msrb.mxu3 %v7239_v42  ;;  %v9133_v42 = vld [vmem:[#allocation7 + $0xe4] sm:$0xf] }
 0x1b2   :  { %v2156_v29 = vpop.f32.mrf.mxu3  ;;  %2694 = vmatmul.bf16.vlgmr.msra.gmra.mxu2 %v2268_v53 }
 0x1b5   :  { %2752 = vmatpush.bf16.msrb.mxu3 %v7231_v44  ;;  %v7359_v44 = vor.u32 %v9133_v42, %v7356_v34  ;;  %v7260_v42 = vld [vmem:[#allocation7 + $0x30] sm:$0xf0]  ;;  %v7418_v34 = vld [vmem:[#allocation7 + $0x160] sm:$0xf] }
 0x1b7   :  { %3188 = vmatpush.bf16.msra.mxu2 %v7359_v44  ;;  %v9151_v44 = vld [vmem:[#allocation7 + $0x16c] sm:$0xf0] }
 0x1b9   :  { %2753 = vmatpush.bf16.msrb.mxu3 %v7223_v52  ;;  %v7340_v52 = vld [vmem:[#allocation7 + $0xd0] sm:$0xf0] }
 0x1ba   :  { %v7343_v57 = vor.u32 %v9129_v49, %v7340_v52 }
 0x1bc   :  { %3189 = vmatpush.bf16.msra.mxu2 %v7343_v57  ;;  %v7244_v57 = vld [vmem:[#allocation7 + $0x10] sm:$0xf0] }
 0x1bd   :  { %v2167_v31 = vpop.f32.mrf.mxu0  ;;  %2754 = vmatpush.bf16.msrb.mxu3 %v7215_v26  ;;  %v7324_v26 = vld [vmem:[#allocation7 + $0xb0] sm:$0xf0] }
 0x1be   :  { %v2168_v61 = vadd.f32 %v2167_v31, %v561_v59  ;;  %v7327_v54 = vor.u32 %v9125_v10, %v7324_v26  ;;  %v9121_v59 = vld [vmem:[#allocation7 + $0x84] sm:$0xf]  ;;  %v7419_v10 = vor.u32 %v9151_v44, %v7418_v34  ;;  %v7362_v26 = vld [vmem:[#allocation7 + $0xe8] sm:$0xf]  ;;  %v9168_v44 = vld [vmem:[#allocation7 + $0x1f4] sm:$0xf0] }
 0x1bf   :  { %v2180_v35 = vpop.f32.mrf.mxu1  ;;  %v7490_v34 = vld [vmem:[#allocation7 + $0x1e8] sm:$0xf] }
 0x1c0   :  { %v2181_v1 = vadd.f32 %v2180_v35, %v2168_v61  ;;  %v9165_v61 = vld [vmem:[#allocation7 + $0x1e4] sm:$0xf]  ;;  %3190 = vmatpush.bf16.msra.mxu2 %v7327_v54  ;;  %v9134_v54 = vld [vmem:[#allocation7 + $0xec] sm:$0xf] }
 0x1c1   :  { %2755 = vmatpush.bf16.msrb.mxu3 %v7207_v21  ;;  %v7306_v21 = vld [vmem:[#allocation7 + $0x80] sm:$0xf] }
 0x1c2   :  { %2746 = vmatmul.bf16.vlgmr.msrb.gmra.mxu2 %v2268_v53  ;;  %v7307_v63 = vor.u32 %v9123_v39, %v7306_v21  ;;  %v7364_v39 = vld [vmem:[#allocation7 + $0xf8] sm:$0xf0] }
 0x1c5   :  { %v2169_v46 = vpop.f32.mrf.mxu0  ;;  %2756 = vmatpush.bf16.msrb.mxu3 %v7199_v45  ;;  %v9167_v45 = vld [vmem:[#allocation7 + $0x1ec] sm:$0xf0] }
 0x1c6   :  { %v7338_v46 = vld [vmem:[#allocation7 + $0xc0] sm:$0xf] }
 0x1c7   :  { %v2182_v48 = vpop.f32.mrf.mxu1 }
 0x1c8   :  { %v9131_v48 = vld [vmem:[#allocation7 + $0xcc] sm:$0xf0] }
 0x1c9   :  { %v2193_v4 = vpop.f32.mrf.mxu2  ;;  %2757 = vmatpush.bf16.msrb.mxu3 %v7191_v0  ;;  %v7339_v50 = vor.u32 %v9131_v48, %v7338_v46  ;;  %v7487_v0 = vor.u32 %v9165_v61, %v7484_v62  ;;  %v9149_v46 = vld [vmem:[#allocation7 + $0x164] sm:$0xf]  ;;  %v7420_v48 = vld [vmem:[#allocation7 + $0x170] sm:$0xf0] }
 0x1ca   :  { %v2206_v56 = vpop.f32.mrf.mxu3  ;;  %v2194_v6 = vadd.f32 %v2193_v4, %v2181_v1  ;;  %v7322_v4 = vld [vmem:[#allocation7 + $0xa0] sm:$0xf]  ;;  %v7423_v21 = vor.u32 %v9149_v46, %v7420_v48  ;;  %v9118_v46 = vld [vmem:[#allocation7 + $0x6c] sm:$0xf]  ;;  %v7491_v48 = vor.u32 %v9168_v44, %v7490_v34  ;;  %v7396_v34 = vld [vmem:[#allocation7 + $0x138] sm:$0xf0] }
 0x1cb   :  { %3163 = vmatpush.bf16.msra.mxu0 %v7339_v50  ;;  %v7466_v1 = vld [vmem:[#allocation7 + $0x1c0] sm:$0xf] }
 0x1cc   :  { %v2207_v9 = vadd.f32 %v2206_v56, %v2194_v6  ;;  %v9127_v56 = vld [vmem:[#allocation7 + $0xac] sm:$0xf0]  ;;  %v7242_v50 = vld [vmem:[#allocation7] sm:$0xf] }
 0x1cd   :  { %2758 = vmatpush.bf16.msrb.mxu3 %v7183_v8  ;;  %v7323_v41 = vor.u32 %v9127_v56, %v7322_v4  ;;  %v9119_v6 = vld [vmem:[#allocation7 + $0x6c] sm:$0xf0]  ;;  %v9161_v8 = vld [vmem:[#allocation7 + $0x1c4] sm:$0xf] }
 0x1ce   :  { %v9107_v4 = vld [vmem:[#allocation7 + $0xc] sm:$0xf0]  ;;  %v9105_v56 = vld [vmem:[#allocation7 + $0x4] sm:$0xf] }
 0x1cf   :  { %3164 = vmatpush.bf16.msra.mxu0 %v7323_v41  ;;  %v9136_v41 = vld [vmem:[#allocation7 + $0xf4] sm:$0xf0]  ;;  %v7247_v61 = vor.u32 %v9105_v56, %v7244_v57  ;;  %v7282_v57 = vld [vmem:[#allocation7 + $0x48] sm:$0xf] }
 0x1d0   :  { %v7363_v62 = vor.u32 %v9136_v41, %v7362_v26  ;;  %v7474_v26 = vld [vmem:[#allocation7 + $0x1c8] sm:$0xf] }
 0x1d1   :  { %v2195_v60 = vpop.f32.mrf.mxu2 }
 0x1d2   :  { %v2208_v32 = vpop.f32.mrf.mxu3  ;;  %v7308_v60 = vld [vmem:[#allocation7 + $0x90] sm:$0xf0] }
 0x1d3   :  { %v7483_v32 = vor.u32 %v9167_v45, %v7482_v58  ;;  %v7311_v3 = vor.u32 %v9121_v59, %v7308_v60  ;;  %3165 = vmatpush.bf16.msra.mxu0 %v7307_v63  ;;  %v7402_v58 = vld [vmem:[#allocation7 + $0x140] sm:$0xf]  ;;  %v9147_v59 = vld [vmem:[#allocation7 + $0x14c] sm:$0xf0]  ;;  %v7243_v60 = vor.u32 %v9107_v4, %v7242_v50  ;;  %v9145_v45 = vld [vmem:[#allocation7 + $0x144] sm:$0xf] }
 0x1d4   :  { %v9166_v50 = vld [vmem:[#allocation7 + $0x1ec] sm:$0xf] }
 0x1d5   :  { %3175 = vmatpush.bf16.msra.mxu1 %v7483_v32  ;;  %3191 = vmatpush.bf16.msra.mxu2 %v7311_v3  ;;  %v7404_v32 = vld [vmem:[#allocation7 + $0x150] sm:$0xf0]  ;;  %v7403_v3 = vor.u32 %v9147_v59, %v7402_v58 }
 0x1dd   :  { %v2219_v2 = vpop.f32.mrf.mxu0 }
 0x1de   :  { %v2220_v37 = vadd.f32 %v2219_v2, %v2207_v9  ;;  %v9163_v2 = vld [vmem:[#allocation7 + $0x1cc] sm:$0xf0] }
 0x1df   :  { %v2232_v7 = vpop.f32.mrf.mxu1 }
 0x1e0   :  { %v2233_v36 = vadd.f32 %v2232_v7, %v2220_v37  ;;  %v7467_v7 = vor.u32 %v9163_v2, %v7466_v1  ;;  %v9117_v37 = vld [vmem:[#allocation7 + $0x64] sm:$0xf]  ;;  %v7346_v1 = vld [vmem:[#allocation7 + $0xc8] sm:$0xf]  ;;  %v9132_v2 = vld [vmem:[#allocation7 + $0xd4] sm:$0xf0] }
 0x1e2   :  { %3176 = vmatpush.bf16.msra.mxu1 %v7467_v7  ;;  %v7407_v7 = vor.u32 %v9145_v45, %v7404_v32  ;;  %v7476_v45 = vld [vmem:[#allocation7 + $0x1d8] sm:$0xf0] }
 0x1e5   :  { %v2221_v12 = vpop.f32.mrf.mxu0 }
 0x1e6   :  { %v7292_v12 = vld [vmem:[#allocation7 + $0x70] sm:$0xf0] }
 0x1e7   :  { %v2234_v13 = vpop.f32.mrf.mxu1 }
 0x1e8   :  { %v7468_v13 = vld [vmem:[#allocation7 + $0x1d0] sm:$0xf0] }
 0x1e9   :  { %v2245_v14 = vpop.f32.mrf.mxu2 }
 0x1ea   :  { %v2246_v15 = vadd.f32 %v2245_v14, %v2233_v36  ;;  %v2258_v17 = vpop.f32.mrf.mxu3  ;;  %v7471_v36 = vor.u32 %v9161_v8, %v7468_v13  ;;  %v7450_v14 = vld [vmem:[#allocation7 + $0x1a0] sm:$0xf]  ;;  %v7347_v8 = vor.u32 %v9132_v2, %v7346_v1  ;;  %v7330_v13 = vld [vmem:[#allocation7 + $0xa8] sm:$0xf]  ;;  %v9160_v2 = vld [vmem:[#allocation7 + $0x1b4] sm:$0xf0] }
 0x1ec   :  { %v2259_v19 = vadd.f32 %v2258_v17, %v2246_v15  ;;  %v9159_v15 = vld [vmem:[#allocation7 + $0x1ac] sm:$0xf0]  ;;  %v7291_v17 = vor.u32 %v9119_v6, %v7290_v5  ;;  %v9130_v5 = vld [vmem:[#allocation7 + $0xcc] sm:$0xf]  ;;  %v7348_v6 = vld [vmem:[#allocation7 + $0xd8] sm:$0xf0] }
 0x1ee   :  { %v2265_v20 = vmax.f32 %v2259_v19, 0.0  ;;  %v9157_v19 = vld [vmem:[#allocation7 + $0x1a4] sm:$0xf]  ;;  %3166 = vmatpush.bf16.msra.mxu0 %v7291_v17  ;;  %v7332_v17 = vld [vmem:[#allocation7 + $0xb8] sm:$0xf0] }
 0x1f0   :  { %v2269_v22 = vpack.c.bf16 %v2265_v20, %v2265_v20  ;;  %v7452_v20 = vld [vmem:[#allocation7 + $0x1b0] sm:$0xf0] }
 0x1f1   :  { %v2247_v23 = vpop.f32.mrf.mxu2 }
 0x1f2   :  { %v2260_v47 = vpop.f32.mrf.mxu3  ;;  %2707 = vmatmul.bf16.vlgmr.msra.gmra.mxu3 %v2269_v22  ;;  %v7274_v23 = vld [vmem:[#allocation7 + $0x40] sm:$0xf] }
 0x1f3   :  { %3201 = vmatpush.bf16.msra.mxu3 %v7487_v0  ;;  %v9115_v47 = vld [vmem:[#allocation7 + $0x4c] sm:$0xf0]  ;;  %v7367_v0 = vor.u32 %v9134_v54, %v7364_v39  ;;  %v9164_v54 = vld [vmem:[#allocation7 + $0x1d4] sm:$0xf0]  ;;  %v7284_v39 = vld [vmem:[#allocation7 + $0x58] sm:$0xf0] }
 0x1f4   :  { %v7475_v58 = vor.u32 %v9164_v54, %v7474_v26 }
 0x1f7   :  { %3202 = vmatpush.bf16.msra.mxu3 %v7471_v36  ;;  %v9128_v36 = vld [vmem:[#allocation7 + $0xb4] sm:$0xf0] }
 0x1fd   :  { %v2669_v28 = vpop.f32.mrf.mxu0  ;;  %v2682_v18 = vpop.f32.mrf.mxu1 }
 0x1fe   :  { %v2670_v53 = vadd.f32 %v2669_v28, %v2336_v27  ;;  %v7451_v27 = vor.u32 %v9159_v15, %v7450_v14  ;;  %v7276_v28 = vld [vmem:[#allocation7 + $0x50] sm:$0xf0]  ;;  %v9126_v14 = vld [vmem:[#allocation7 + $0xac] sm:$0xf]  ;;  %v7331_v15 = vor.u32 %v9128_v36, %v7330_v13  ;;  %v7250_v13 = vld [vmem:[#allocation7 + $0x8] sm:$0xf] }
 0x1ff   :  { %v9108_v36 = vld [vmem:[#allocation7 + $0x14] sm:$0xf0] }
 0x200   :  { %v10251_v40 = vadd.f32 %v2682_v18, %v2670_v53  ;;  %v7455_v53 = vor.u32 %v9157_v19, %v7452_v20  ;;  %v7434_v18 = vld [vmem:[#allocation7 + $0x180] sm:$0xf]  ;;  %3177 = vmatpush.bf16.msra.mxu1 %v7451_v27  ;;  %v7335_v19 = vor.u32 %v9126_v14, %v7332_v17  ;;  %v7314_v27 = vld [vmem:[#allocation7 + $0x88] sm:$0xf]  ;;  %v9156_v17 = vld [vmem:[#allocation7 + $0x194] sm:$0xf0] }
 0x201   :  { %v7386_v20 = vld [vmem:[#allocation7 + $0x120] sm:$0xf]  ;;  %v7442_v14 = vld [vmem:[#allocation7 + $0x188] sm:$0xf] }
 0x202   :  { %2759 = vmatmul.bf16.vlgmr.msrb.gmra.mxu3 %v2269_v22  ;;  %v7295_v22 = vor.u32 %v9117_v37, %v7292_v12  ;;  %v7351_v37 = vor.u32 %v9130_v5, %v7348_v6  ;;  %v7268_v5 = vld [vmem:[#allocation7 + $0x38] sm:$0xf0] }
 0x203   :  { %3203 = vmatpush.bf16.msra.mxu3 %v7455_v53 }
 0x204   :  { %3192 = vmatpush.bf16.msra.mxu2 %v7295_v22  ;;  %v9143_v22 = vld [vmem:[#allocation7 + $0x12c] sm:$0xf0] }
 0x205   :  { %v2671_v29 = vpop.f32.mrf.mxu0  ;;  %v2684_v30 = vpop.f32.mrf.mxu1 }
 0x206   :  { %v9155_v29 = vld [vmem:[#allocation7 + $0x18c] sm:$0xf0]  ;;  %v9153_v30 = vld [vmem:[#allocation7 + $0x184] sm:$0xf] }
 0x207   :  { %v7435_v38 = vor.u32 %v9155_v29, %v7434_v18  ;;  %v9122_v29 = vld [vmem:[#allocation7 + $0x8c] sm:$0xf] }
 0x209   :  { %3178 = vmatpush.bf16.msra.mxu1 %v7435_v38  ;;  %v7298_v38 = vld [vmem:[#allocation7 + $0x68] sm:$0xf] }
 0x20d   :  { %3179 = vmatpush.bf16.msra.mxu1 %v7419_v10  ;;  %v9116_v10 = vld [vmem:[#allocation7 + $0x54] sm:$0xf0] }
 0x20e   :  { %v7283_v41 = vor.u32 %v9116_v10, %v7282_v57  ;;  %v7380_v57 = vld [vmem:[#allocation7 + $0x118] sm:$0xf0] }
 0x211   :  { %3180 = vmatpush.bf16.msra.mxu1 %v7403_v3  ;;  %v9110_v3 = vld [vmem:[#allocation7 + $0x2c] sm:$0xf] }
 0x21d   :  { %v2721_v11 = vpop.f32.mrf.mxu0  ;;  %v2734_v16 = vpop.f32.mrf.mxu1 }
 0x21e   :  { %v2722_v31 = vadd.f32 %v2721_v11, %v2337_v51  ;;  %v7436_v51 = vld [vmem:[#allocation7 + $0x190] sm:$0xf0]  ;;  %v7275_v11 = vor.u32 %v9115_v47, %v7274_v23  ;;  %v9141_v23 = vld [vmem:[#allocation7 + $0x124] sm:$0xf]  ;;  %v7387_v47 = vor.u32 %v9143_v22, %v7386_v20  ;;  %v7252_v20 = vld [vmem:[#allocation7 + $0x18] sm:$0xf0]  ;;  %v7443_v22 = vor.u32 %v9156_v17, %v7442_v14 }
 0x21f   :  { %v7439_v43 = vor.u32 %v9153_v30, %v7436_v51  ;;  %v7316_v30 = vld [vmem:[#allocation7 + $0x98] sm:$0xf0]  ;;  %v7594_v14 = vld [vmem:[#allocation8 + $0xc0] sm:$0xf] }
 0x220   :  { %v10253_v24 = vadd.f32 %v2734_v16, %v2722_v31  ;;  %v7279_v31 = vor.u32 %v9113_v25, %v7276_v28  ;;  %v7258_v16 = vld [vmem:[#allocation7 + $0x20] sm:$0xf]  ;;  %3167 = vmatpush.bf16.msra.mxu0 %v7275_v11  ;;  %v7388_v25 = vld [vmem:[#allocation7 + $0x130] sm:$0xf0]  ;;  %v9124_v28 = vld [vmem:[#allocation7 + $0x94] sm:$0xf0]  ;;  %3181 = vmatpush.bf16.msra.mxu1 %v7387_v47  ;;  %v7319_v51 = vor.u32 %v9122_v29, %v7316_v30 }
 0x221   :  { %3204 = vmatpush.bf16.msra.mxu3 %v7439_v43  ;;  %v7391_v53 = vor.u32 %v9141_v23, %v7388_v25  ;;  %v7315_v18 = vor.u32 %v9124_v28, %v7314_v27  ;;  %v7370_v11 = vld [vmem:[#allocation7 + $0x100] sm:$0xf]  ;;  %v9154_v47 = vld [vmem:[#allocation7 + $0x18c] sm:$0xf]  ;;  %v7444_v25 = vld [vmem:[#allocation7 + $0x198] sm:$0xf0] }
 0x222   :  { %3193 = vmatpush.bf16.msra.mxu2 %v7279_v31  ;;  %v9139_v31 = vld [vmem:[#allocation7 + $0x10c] sm:$0xf0]  ;;  %v7447_v27 = vor.u32 %v9154_v47, %v7444_v25  ;;  %v7426_v28 = vld [vmem:[#allocation7 + $0x168] sm:$0xf]  ;;  %v7428_v30 = vld [vmem:[#allocation7 + $0x178] sm:$0xf0] }
 0x223   :  { %v9197_v17 = vld [vmem:[#allocation8 + $0xdc] sm:$0xf0] }
 0x224   :  { %v9341_v47 = vld [vmem:[#allocation8 + $0x55c] sm:$0xf0] }
 0x225   :  { %v2723_v33 = vpop.f32.mrf.mxu0  ;;  %v2736_v35 = vpop.f32.mrf.mxu1  ;;  %3205 = vmatpush.bf16.msra.mxu3 %v7423_v21  ;;  %v9114_v21 = vld [vmem:[#allocation7 + $0x4c] sm:$0xf] }
 0x226   :  { %v9111_v33 = vld [vmem:[#allocation7 + $0x2c] sm:$0xf0]  ;;  %v9109_v35 = vld [vmem:[#allocation7 + $0x24] sm:$0xf]  ;;  %v7287_v59 = vor.u32 %v9114_v21, %v7284_v39  ;;  %v7722_v21 = vld [vmem:[#allocation8 + $0x1c0] sm:$0xf] }
 0x227   :  { %v7259_v49 = vor.u32 %v9111_v33, %v7258_v16  ;;  %v7263_v52 = vor.u32 %v9109_v35, %v7260_v42  ;;  %v9137_v16 = vld [vmem:[#allocation7 + $0x104] sm:$0xf]  ;;  %v7371_v33 = vor.u32 %v9139_v31, %v7370_v11  ;;  %v7372_v35 = vld [vmem:[#allocation7 + $0x110] sm:$0xf0]  ;;  %v7410_v11 = vld [vmem:[#allocation7 + $0x148] sm:$0xf] }
 0x228   :  { %v7375_v42 = vor.u32 %v9137_v16, %v7372_v35  ;;  %v9148_v31 = vld [vmem:[#allocation7 + $0x154] sm:$0xf0]  ;;  %v9146_v16 = vld [vmem:[#allocation7 + $0x14c] sm:$0xf]  ;;  %v9229_v39 = vld [vmem:[#allocation8 + $0x1dc] sm:$0xf0] }
 0x229   :  { %3168 = vmatpush.bf16.msra.mxu0 %v7259_v49  ;;  %3194 = vmatpush.bf16.msra.mxu2 %v7263_v52  ;;  %v7300_v49 = vld [vmem:[#allocation7 + $0x78] sm:$0xf0]  ;;  %v7411_v35 = vor.u32 %v9148_v31, %v7410_v11  ;;  %v9189_v11 = vld [vmem:[#allocation8 + $0x9c] sm:$0xf0] }
 0x22a   :  { %3206 = vmatpush.bf16.msra.mxu3 %v7407_v7  ;;  %3182 = vmatpush.bf16.msra.mxu1 %v7371_v33  ;;  %v7492_v52 = vld [vmem:[#allocation7 + $0x1f8] sm:$0xf0]  ;;  %v7303_v4 = vor.u32 %v9118_v46, %v7300_v49  ;;  %v7271_v7 = vor.u32 %v9110_v3, %v7268_v5  ;;  %v7378_v49 = vld [vmem:[#allocation7 + $0x108] sm:$0xf]  ;;  %v9349_v3 = vld [vmem:[#allocation8 + $0x59c] sm:$0xf0] }
 0x22b   :  { %v7495_v56 = vor.u32 %v9166_v50, %v7492_v52  ;;  %v7412_v33 = vld [vmem:[#allocation7 + $0x158] sm:$0xf0]  ;;  %v9140_v50 = vld [vmem:[#allocation7 + $0x114] sm:$0xf0]  ;;  %v8138_v31 = vld [vmem:[#allocation8 + $0x500] sm:$0xf] }
 0x22c   :  { %v7379_v10 = vor.u32 %v9140_v50, %v7378_v49  ;;  %v9181_v49 = vld [vmem:[#allocation8 + $0x5c] sm:$0xf0] }
 0x22d   :  { %3169 = vmatpush.bf16.msra.mxu0 %v7243_v60  ;;  %3195 = vmatpush.bf16.msra.mxu2 %v7247_v61  ;;  %v9162_v60 = vld [vmem:[#allocation7 + $0x1cc] sm:$0xf]  ;;  %v7266_v61 = vld [vmem:[#allocation7 + $0x28] sm:$0xf]  ;;  %v8106_v50 = vld [vmem:[#allocation8 + $0x4c0] sm:$0xf] }
 0x22e   :  { %3207 = vmatpush.bf16.msra.mxu3 %v7391_v53  ;;  %3227 = vmatpush.bf16.msrb.mxu1 %v7491_v48  ;;  %v7479_v32 = vor.u32 %v9162_v60, %v7476_v45  ;;  %v9152_v53 = vld [vmem:[#allocation7 + $0x174] sm:$0xf0]  ;;  %v7658_v45 = vld [vmem:[#allocation8 + $0x140] sm:$0xf] }
 0x22f   :  { %v7427_v29 = vor.u32 %v9152_v53, %v7426_v28  ;;  %v7595_v53 = vor.u32 %v9197_v17, %v7594_v14  ;;  %v7980_v17 = vld [vmem:[#allocation8 + $0x3e0] sm:$0xf0] }
 0x231   :  { %3214 = vmatpush.bf16.msrb.mxu0 %v7363_v62  ;;  %3240 = vmatpush.bf16.msrb.mxu2 %v7367_v0  ;;  %v9112_v62 = vld [vmem:[#allocation7 + $0x34] sm:$0xf0]  ;;  %v7458_v0 = vld [vmem:[#allocation7 + $0x1a8] sm:$0xf] }
 0x232   :  { %3208 = vmatpush.bf16.msra.mxu3 %v7375_v42  ;;  %3228 = vmatpush.bf16.msrb.mxu1 %v7475_v58  ;;  %v7267_v1 = vor.u32 %v9112_v62, %v7266_v61  ;;  %v7459_v6 = vor.u32 %v9160_v2, %v7458_v0  ;;  %v9144_v42 = vld [vmem:[#allocation7 + $0x134] sm:$0xf0]  ;;  %v7723_v58 = vor.u32 %v9229_v39, %v7722_v21  ;;  %v8234_v61 = vld [vmem:[#allocation8 + $0x5c0] sm:$0xf] }
 0x233   :  { %v9357_v62 = vld [vmem:[#allocation8 + $0x5dc] sm:$0xf0] }
 0x234   :  { %v8235_v0 = vor.u32 %v9357_v62, %v8234_v61  ;;  %v8202_v2 = vld [vmem:[#allocation8 + $0x580] sm:$0xf] }
 0x235   :  { %v10255_v9 = vpop.f32.mrf.mxu2  ;;  %3215 = vmatpush.bf16.msrb.mxu0 %v7347_v8  ;;  %3241 = vmatpush.bf16.msrb.mxu2 %v7351_v37  ;;  %v9158_v8 = vld [vmem:[#allocation7 + $0x1ac] sm:$0xf]  ;;  %v7460_v37 = vld [vmem:[#allocation7 + $0x1b8] sm:$0xf0]  ;;  %v9397_v21 = vld [vmem:[#allocation8 + $0x71c] sm:$0xf0] }
 0x236   :  { %3253 = vmatpush.bf16.msrb.mxu3 %v7495_v56  ;;  %3229 = vmatpush.bf16.msrb.mxu1 %v7459_v6  ;;  %v2696_v46 = vadd.f32 %v10255_v9, %v10251_v40  ;;  %v9138_v56 = vld [vmem:[#allocation7 + $0x10c] sm:$0xf]  ;;  %v7690_v40 = vld [vmem:[#allocation8 + $0x180] sm:$0xf] }
 0x237   :  { %v7626_v6 = vld [vmem:[#allocation8 + $0x100] sm:$0xf] }
 0x238   :  { %v7498_v39 = vld [vmem:[#allocation8] sm:$0xf] }
 0x239   :  { %3216 = vmatpush.bf16.msrb.mxu0 %v7331_v15  ;;  %3242 = vmatpush.bf16.msrb.mxu2 %v7335_v19  ;;  %v7251_v15 = vor.u32 %v9108_v36, %v7250_v13  ;;  %v9106_v19 = vld [vmem:[#allocation7 + $0xc] sm:$0xf]  ;;  %v7978_v13 = vld [vmem:[#allocation8 + $0x3c0] sm:$0xf] }
 0x23a   :  { %3254 = vmatpush.bf16.msrb.mxu3 %v7479_v32  ;;  %v7255_v23 = vor.u32 %v9106_v19, %v7252_v20  ;;  %3230 = vmatpush.bf16.msrb.mxu1 %v7443_v22  ;;  %v9213_v32 = vld [vmem:[#allocation8 + $0x15c] sm:$0xf0] }
 0x23b   :  { %v9293_v36 = vld [vmem:[#allocation8 + $0x3dc] sm:$0xf0] }
 0x23c   :  { %v8490_v19 = vld [vmem:[#allocation8 + $0x7c0] sm:$0xf] }
 0x23d   :  { %v2697_v55 = vpop.f32.mrf.mxu2  ;;  %3217 = vmatpush.bf16.msrb.mxu0 %v7315_v18  ;;  %3243 = vmatpush.bf16.msrb.mxu2 %v7319_v51  ;;  %v9150_v18 = vld [vmem:[#allocation7 + $0x16c] sm:$0xf]  ;;  %v9421_v20 = vld [vmem:[#allocation8 + $0x7dc] sm:$0xf0] }
 0x23e   :  { %v9120_v55 = vld [vmem:[#allocation7 + $0x74] sm:$0xf0]  ;;  %v7431_v51 = vor.u32 %v9150_v18, %v7428_v30  ;;  %3231 = vmatpush.bf16.msrb.mxu1 %v7427_v29  ;;  %v8491_v28 = vor.u32 %v9421_v20, %v8490_v19  ;;  %v7562_v18 = vld [vmem:[#allocation8 + $0x80] sm:$0xf] }
 0x23f   :  { %v7299_v43 = vor.u32 %v9120_v55, %v7298_v38  ;;  %v7415_v38 = vor.u32 %v9146_v16, %v7412_v33  ;;  %v7394_v55 = vld [vmem:[#allocation7 + $0x128] sm:$0xf]  ;;  %v8458_v30 = vld [vmem:[#allocation8 + $0x780] sm:$0xf] }
 0x240   :  { %v7395_v44 = vor.u32 %v9144_v42, %v7394_v55  ;;  %v9333_v16 = vld [vmem:[#allocation8 + $0x51c] sm:$0xf0] }
 0x241   :  { %3218 = vmatpush.bf16.msrb.mxu0 %v7299_v43  ;;  %3244 = vmatpush.bf16.msrb.mxu2 %v7303_v4  ;;  %v9142_v43 = vld [vmem:[#allocation7 + $0x12c] sm:$0xf]  ;;  %v9277_v55 = vld [vmem:[#allocation8 + $0x35c] sm:$0xf0] }
 0x242   :  { %3232 = vmatpush.bf16.msrb.mxu1 %v7411_v35  ;;  %v7399_v48 = vor.u32 %v9142_v43, %v7396_v34  ;;  %v7563_v43 = vor.u32 %v9189_v11, %v7562_v18  ;;  %v7530_v34 = vld [vmem:[#allocation8 + $0x40] sm:$0xf]  ;;  %v7948_v18 = vld [vmem:[#allocation8 + $0x3a0] sm:$0xf0] }
 0x243   :  { %v8074_v20 = vld [vmem:[#allocation8 + $0x480] sm:$0xf] }
 0x245   :  { %v10257_v63 = vpop.f32.mrf.mxu2  ;;  %3219 = vmatpush.bf16.msrb.mxu0 %v7283_v41  ;;  %3245 = vmatpush.bf16.msrb.mxu2 %v7287_v59  ;;  %v7383_v41 = vor.u32 %v9138_v56, %v7380_v57  ;;  %v9221_v59 = vld [vmem:[#allocation8 + $0x19c] sm:$0xf0] }
 0x246   :  { %3233 = vmatpush.bf16.msrb.mxu1 %v7395_v44  ;;  %v7691_v60 = vor.u32 %v9221_v59, %v7690_v40  ;;  %v2748_v5 = vadd.f32 %v10257_v63, %v10253_v24  ;;  %v7979_v24 = vor.u32 %v9293_v36, %v7978_v13  ;;  %v7946_v63 = vld [vmem:[#allocation8 + $0x380] sm:$0xf]  ;;  %v8139_v44 = vor.u32 %v9333_v16, %v8138_v31  ;;  %v7724_v59 = vld [vmem:[#allocation8 + $0x1e0] sm:$0xf0] }
 0x247   :  { %v7882_v56 = vld [vmem:[#allocation8 + $0x300] sm:$0xf]  ;;  %v9201_v31 = vld [vmem:[#allocation8 + $0x104] sm:$0xf] }
 0x248   :  { %v9173_v40 = vld [vmem:[#allocation8 + $0x1c] sm:$0xf0]  ;;  %v7628_v16 = vld [vmem:[#allocation8 + $0x120] sm:$0xf0] }
 0x249   :  { %3220 = vmatpush.bf16.msrb.mxu0 %v7267_v1  ;;  %3246 = vmatpush.bf16.msrb.mxu2 %v7271_v7  ;;  %v7659_v1 = vor.u32 %v9213_v32, %v7658_v45  ;;  %v9205_v7 = vld [vmem:[#allocation8 + $0x11c] sm:$0xf0]  ;;  %v7499_v61 = vor.u32 %v9173_v40, %v7498_v39  ;;  %v9185_v40 = vld [vmem:[#allocation8 + $0x84] sm:$0xf] }
 0x24a   :  { %3234 = vmatpush.bf16.msrb.mxu1 %v7379_v10  ;;  %v9269_v10 = vld [vmem:[#allocation8 + $0x31c] sm:$0xf0] }
 0x24b   :  { %v7850_v45 = vld [vmem:[#allocation8 + $0x2c0] sm:$0xf] }
 0x24c   :  { %v9261_v32 = vld [vmem:[#allocation8 + $0x2dc] sm:$0xf0] }
 0x24d   :  { %v2749_v12 = vpop.f32.mrf.mxu2  ;;  %3221 = vmatpush.bf16.msrb.mxu0 %v7251_v15  ;;  %3247 = vmatpush.bf16.msrb.mxu2 %v7255_v23  ;;  %v7627_v15 = vor.u32 %v9205_v7, %v7626_v6  ;;  %v8170_v23 = vld [vmem:[#allocation8 + $0x540] sm:$0xf] }
 0x24e   :  { %v7463_v12 = vor.u32 %v9158_v8, %v7460_v37  ;;  %v8203_v8 = vor.u32 %v9349_v3, %v8202_v2  ;;  %v8171_v29 = vor.u32 %v9341_v47, %v8170_v23  ;;  %v7692_v2 = vld [vmem:[#allocation8 + $0x1a0] sm:$0xf0]  ;;  %v7818_v3 = vld [vmem:[#allocation8 + $0x280] sm:$0xf] }
 0x24f   :  { %v7754_v13 = vld [vmem:[#allocation8 + $0x200] sm:$0xf]  ;;  %v9209_v47 = vld [vmem:[#allocation8 + $0x144] sm:$0xf] }
 0x250   :  { %3255 = vmatpush.bf16.msrb.mxu3 %v7463_v12  ;;  %v9237_v36 = vld [vmem:[#allocation8 + $0x21c] sm:$0xf0] }
 0x251   :  { %v7755_v14 = vor.u32 %v9237_v36, %v7754_v13  ;;  %v8172_v13 = vld [vmem:[#allocation8 + $0x560] sm:$0xf0] }
 0x254   :  { %3256 = vmatpush.bf16.msrb.mxu3 %v7447_v27  ;;  %v9285_v27 = vld [vmem:[#allocation8 + $0x39c] sm:$0xf0] }
 0x255   :  { %v7947_v35 = vor.u32 %v9285_v27, %v7946_v63  ;;  %v8362_v63 = vld [vmem:[#allocation8 + $0x6c0] sm:$0xf] }
 0x256   :  { %v9389_v27 = vld [vmem:[#allocation8 + $0x6dc] sm:$0xf0] }
 0x258   :  { %3257 = vmatpush.bf16.msrb.mxu3 %v7431_v51  ;;  %v9413_v51 = vld [vmem:[#allocation8 + $0x79c] sm:$0xf0] }
 0x259   :  { %v8459_v42 = vor.u32 %v9413_v51, %v8458_v30  ;;  %v9309_v30 = vld [vmem:[#allocation8 + $0x45c] sm:$0xf0] }
 0x25c   :  { %3258 = vmatpush.bf16.msrb.mxu3 %v7415_v38  ;;  %v7914_v38 = vld [vmem:[#allocation8 + $0x340] sm:$0xf] }
 0x260   :  { %3259 = vmatpush.bf16.msrb.mxu3 %v7399_v48  ;;  %v9405_v48 = vld [vmem:[#allocation8 + $0x75c] sm:$0xf0] }
 0x264   :  { %3260 = vmatpush.bf16.msrb.mxu3 %v7383_v41 }
 0x275   :  { %v2708_v52 = vpop.f32.mrf.mxu3 }
 0x276   :  { %v2709_v4 = vadd.f32 %v2708_v52, %v2696_v46  ;;  %v8426_v46 = vld [vmem:[#allocation8 + $0x740] sm:$0xf] }
 0x277   :  { %v9325_v52 = vld [vmem:[#allocation8 + $0x4dc] sm:$0xf0]  ;;  %v8427_v57 = vor.u32 %v9405_v48, %v8426_v46 }
 0x278   :  { %v2764_v26 = vmax.f32 %v2709_v4, 0.0  ;;  %v7915_v4 = vor.u32 %v9277_v55, %v7914_v38  ;;  %v8107_v41 = vor.u32 %v9325_v52, %v8106_v50  ;;  %v9381_v38 = vld [vmem:[#allocation8 + $0x69c] sm:$0xf0]  ;;  %v7596_v50 = vld [vmem:[#allocation8 + $0xe0] sm:$0xf0] }
 0x279   :  { %v9301_v46 = vld [vmem:[#allocation8 + $0x41c] sm:$0xf0]  ;;  %v9353_v52 = vld [vmem:[#allocation8 + $0x5c4] sm:$0xf] }
 0x27a   :  { %v2766_v54 = vpack.c.bf16 %v2764_v26, %v2764_v26  ;;  %v7531_v26 = vor.u32 %v9181_v49, %v7530_v34  ;;  %v9193_v49 = vld [vmem:[#allocation8 + $0xc4] sm:$0xf] }
 0x27c   :  { %3170 = vmatmul.bf16.vlgmr.msra.gmra.mxu0 %v2766_v54  ;;  %3196 = vmatmul.bf16.vlgmr.msra.gmra.mxu2 %v2766_v54 }
 0x27d   :  { %v2710_v9 = vpop.f32.mrf.mxu3  ;;  %4828 = vmatpush.bf16.msra.mxu0 %v7723_v58  ;;  %4854 = vmatpush.bf16.msra.mxu2 %v8235_v0  ;;  %v9225_v58 = vld [vmem:[#allocation8 + $0x1c4] sm:$0xf]  ;;  %v7851_v0 = vor.u32 %v9261_v32, %v7850_v45  ;;  %v8266_v45 = vld [vmem:[#allocation8 + $0x600] sm:$0xf] }
 0x27e   :  { %v7883_v9 = vor.u32 %v9269_v10, %v7882_v56  ;;  %v7727_v62 = vor.u32 %v9225_v58, %v7724_v59  ;;  %v8236_v56 = vld [vmem:[#allocation8 + $0x5e0] sm:$0xf0]  ;;  %v9373_v10 = vld [vmem:[#allocation8 + $0x65c] sm:$0xf0] }
 0x27f   :  { %v9345_v58 = vld [vmem:[#allocation8 + $0x584] sm:$0xf]  ;;  %v9365_v32 = vld [vmem:[#allocation8 + $0x61c] sm:$0xf0] }
 0x281   :  { %4829 = vmatpush.bf16.msra.mxu0 %v7691_v60  ;;  %4855 = vmatpush.bf16.msra.mxu2 %v8203_v8  ;;  %v7786_v8 = vld [vmem:[#allocation8 + $0x240] sm:$0xf] }
 0x285   :  { %v2760_v37 = vpop.f32.mrf.mxu3  ;;  %4830 = vmatpush.bf16.msra.mxu0 %v7659_v1  ;;  %4856 = vmatpush.bf16.msra.mxu2 %v8171_v29  ;;  %v9217_v1 = vld [vmem:[#allocation8 + $0x184] sm:$0xf]  ;;  %v8042_v29 = vld [vmem:[#allocation8 + $0x440] sm:$0xf] }
 0x286   :  { %v2761_v12 = vadd.f32 %v2760_v37, %v2748_v5  ;;  %v9253_v5 = vld [vmem:[#allocation8 + $0x29c] sm:$0xf0]  ;;  %v7695_v6 = vor.u32 %v9217_v1, %v7692_v2  ;;  %v8043_v11 = vor.u32 %v9309_v30, %v8042_v29  ;;  %v7852_v1 = vld [vmem:[#allocation8 + $0x2e0] sm:$0xf0] }
 0x287   :  { %v7819_v7 = vor.u32 %v9253_v5, %v7818_v3  ;;  %v9245_v37 = vld [vmem:[#allocation8 + $0x25c] sm:$0xf0]  ;;  %v9417_v2 = vld [vmem:[#allocation8 + $0x7c4] sm:$0xf] }
 0x288   :  { %v2765_v22 = vmax.f32 %v2761_v12, 0.0  ;;  %v7787_v12 = vor.u32 %v9245_v37, %v7786_v8  ;;  %v8492_v5 = vld [vmem:[#allocation8 + $0x7e0] sm:$0xf0] }
 0x289   :  { %4831 = vmatpush.bf16.msra.mxu0 %v7627_v15  ;;  %4857 = vmatpush.bf16.msra.mxu2 %v8139_v44  ;;  %v9289_v15 = vld [vmem:[#allocation8 + $0x3c4] sm:$0xf]  ;;  %v8010_v44 = vld [vmem:[#allocation8 + $0x400] sm:$0xf] }
 0x28a   :  { %v10263_v25 = vpack.c.bf16 %v2765_v22, %v2765_v22  ;;  %v7983_v19 = vor.u32 %v9289_v15, %v7980_v17  ;;  %v9317_v22 = vld [vmem:[#allocation8 + $0x49c] sm:$0xf0]  ;;  %v8011_v48 = vor.u32 %v9301_v46, %v8010_v44  ;;  %v7532_v8 = vld [vmem:[#allocation8 + $0x60] sm:$0xf0] }
 0x28b   :  { %v8075_v23 = vor.u32 %v9317_v22, %v8074_v20  ;;  %v7820_v15 = vld [vmem:[#allocation8 + $0x2a0] sm:$0xf0] }
 0x28c   :  { %3183 = vmatmul.bf16.vlgmr.msra.gmra.mxu1 %v10263_v25  ;;  %3209 = vmatmul.bf16.vlgmr.msra.gmra.mxu3 %v10263_v25  ;;  %v9409_v17 = vld [vmem:[#allocation8 + $0x784] sm:$0xf] }
 0x28d   :  { %3222 = vmatmul.bf16.vlgmr.msrb.gmra.mxu0 %v2766_v54  ;;  %3248 = vmatmul.bf16.vlgmr.msrb.gmra.mxu2 %v2766_v54  ;;  %v2762_v33 = vpop.f32.mrf.mxu3  ;;  %v8394_v54 = vld [vmem:[#allocation8 + $0x700] sm:$0xf]  ;;  %v8460_v20 = vld [vmem:[#allocation8 + $0x7a0] sm:$0xf0] }
 0x28e   :  { %4841 = vmatpush.bf16.msra.mxu1 %v7979_v24  ;;  %4867 = vmatpush.bf16.msra.mxu3 %v8491_v28  ;;  %v8395_v60 = vor.u32 %v9397_v21, %v8394_v54  ;;  %v9281_v28 = vld [vmem:[#allocation8 + $0x384] sm:$0xf]  ;;  %v7631_v33 = vor.u32 %v9201_v31, %v7628_v16  ;;  %v8463_v22 = vor.u32 %v9409_v17, %v8460_v20  ;;  %v9222_v17 = vld [vmem:[#allocation8 + $0x1a4] sm:$0xf0] }
 0x28f   :  { %4832 = vmatpush.bf16.msra.mxu0 %v7595_v53  ;;  %4858 = vmatpush.bf16.msra.mxu2 %v8107_v41  ;;  %v8363_v53 = vor.u32 %v9389_v27, %v8362_v63  ;;  %v7951_v51 = vor.u32 %v9281_v28, %v7948_v18  ;;  %v9265_v54 = vld [vmem:[#allocation8 + $0x304] sm:$0xf] }
 0x290   :  { %v7884_v21 = vld [vmem:[#allocation8 + $0x320] sm:$0xf0] }
 0x291   :  { %v7887_v39 = vor.u32 %v9265_v54, %v7884_v21  ;;  %v8140_v63 = vld [vmem:[#allocation8 + $0x520] sm:$0xf0] }
 0x292   :  { %4842 = vmatpush.bf16.msra.mxu1 %v7947_v35  ;;  %4868 = vmatpush.bf16.msra.mxu3 %v8459_v42  ;;  %v8330_v35 = vld [vmem:[#allocation8 + $0x680] sm:$0xf]  ;;  %v9273_v42 = vld [vmem:[#allocation8 + $0x344] sm:$0xf] }
 0x293   :  { %4833 = vmatpush.bf16.msra.mxu0 %v7563_v43  ;;  %4859 = vmatpush.bf16.msra.mxu2 %v8075_v23  ;;  %v8331_v55 = vor.u32 %v9381_v38, %v8330_v35  ;;  %v7916_v43 = vld [vmem:[#allocation8 + $0x360] sm:$0xf0] }
 0x294   :  { %v7919_v34 = vor.u32 %v9273_v42, %v7916_v43  ;;  %v9169_v23 = vld [vmem:[#allocation8 + $0x4] sm:$0xf] }
 0x295   :  { %v9241_v28 = vld [vmem:[#allocation8 + $0x244] sm:$0xf] }
 0x296   :  { %4843 = vmatpush.bf16.msra.mxu1 %v7915_v4  ;;  %4869 = vmatpush.bf16.msra.mxu3 %v8427_v57  ;;  %v7599_v4 = vor.u32 %v9193_v49, %v7596_v50  ;;  %v8298_v57 = vld [vmem:[#allocation8 + $0x640] sm:$0xf]  ;;  %v9401_v29 = vld [vmem:[#allocation8 + $0x744] sm:$0xf] }
 0x297   :  { %4834 = vmatpush.bf16.msra.mxu0 %v7531_v26  ;;  %4860 = vmatpush.bf16.msra.mxu2 %v8043_v11  ;;  %v8239_v26 = vor.u32 %v9353_v52, %v8236_v56  ;;  %v8299_v41 = vor.u32 %v9373_v10, %v8298_v57  ;;  %v8428_v30 = vld [vmem:[#allocation8 + $0x760] sm:$0xf0] }
 0x298   :  { %v9321_v11 = vld [vmem:[#allocation8 + $0x4c4] sm:$0xf] }
 0x299   :  { %v8108_v31 = vld [vmem:[#allocation8 + $0x4e0] sm:$0xf0] }
 0x29a   :  { %4844 = vmatpush.bf16.msra.mxu1 %v7883_v9  ;;  %4870 = vmatpush.bf16.msra.mxu3 %v8395_v60  ;;  %v7564_v9 = vld [vmem:[#allocation8 + $0xa0] sm:$0xf0]  ;;  %v8111_v16 = vor.u32 %v9321_v11, %v8108_v31  ;;  %v9286_v11 = vld [vmem:[#allocation8 + $0x3a4] sm:$0xf0] }
 0x29b   :  { %4835 = vmatpush.bf16.msra.mxu0 %v7499_v61  ;;  %4861 = vmatpush.bf16.msra.mxu2 %v8011_v48  ;;  %v7567_v59 = vor.u32 %v9185_v40, %v7564_v9  ;;  %v8204_v60 = vld [vmem:[#allocation8 + $0x5a0] sm:$0xf0] }
 0x29c   :  { %3235 = vmatmul.bf16.vlgmr.msrb.gmra.mxu1 %v10263_v25  ;;  %3261 = vmatmul.bf16.vlgmr.msrb.gmra.mxu3 %v10263_v25  ;;  %v7660_v25 = vld [vmem:[#allocation8 + $0x160] sm:$0xf0]  ;;  %v8207_v61 = vor.u32 %v9345_v58, %v8204_v60  ;;  %v10272_v60 = vld [vmem:[%s10578_s8] sm:$0xf]  ;;  %s5908_s8 = sshll.u32 %s10583_s13, 4  ;;  %s5909_s8 = int_to_ptr.hbm [resolvable:$true] %s5908_s8 }
 0x29d   :  { %v7663_v24 = vor.u32 %v9209_v47, %v7660_v25  ;;  %v7500_v47 = vld [vmem:[#allocation8 + $0x20] sm:$0xf0] }
 0x29e   :  { %4845 = vmatpush.bf16.msra.mxu1 %v7851_v0  ;;  %4871 = vmatpush.bf16.msra.mxu3 %v8363_v53  ;;  %v9257_v0 = vld [vmem:[#allocation8 + $0x2c4] sm:$0xf] }
 0x29f   :  { %4880 = vmatpush.bf16.msrb.mxu0 %v7727_v62  ;;  %4906 = vmatpush.bf16.msrb.mxu2 %v8239_v26  ;;  %v8267_v62 = vor.u32 %v9365_v32, %v8266_v45  ;;  %v7855_v3 = vor.u32 %v9257_v0, %v7852_v1  ;;  %v9329_v25 = vld [vmem:[#allocation8 + $0x504] sm:$0xf] }
 0x2a0   :  { %v8143_v27 = vor.u32 %v9329_v25, %v8140_v63  ;;  %v7788_v53 = vld [vmem:[#allocation8 + $0x260] sm:$0xf0] }
 0x2a1   :  { %v7791_v18 = vor.u32 %v9241_v28, %v7788_v53  ;;  %v7756_v35 = vld [vmem:[#allocation8 + $0x220] sm:$0xf0]  ;;  %v7666_v28 = vld [vmem:[#allocation8 + $0x148] sm:$0xf] }
 0x2a2   :  { %4846 = vmatpush.bf16.msra.mxu1 %v7819_v7  ;;  %4872 = vmatpush.bf16.msra.mxu3 %v8331_v55  ;;  %v9177_v7 = vld [vmem:[#allocation8 + $0x44] sm:$0xf]  ;;  %v9214_v53 = vld [vmem:[#allocation8 + $0x164] sm:$0xf0] }
 0x2a3   :  { %4881 = vmatpush.bf16.msrb.mxu0 %v7695_v6  ;;  %4907 = vmatpush.bf16.msrb.mxu2 %v8207_v61  ;;  %v8495_v6 = vor.u32 %v9417_v2, %v8492_v5  ;;  %v7535_v37 = vor.u32 %v9177_v7, %v7532_v8  ;;  %v9393_v38 = vld [vmem:[#allocation8 + $0x704] sm:$0xf]  ;;  %v2835_v5 = vperm.slane %v10272_v60, 1  ;;  %v7730_v8 = vld [vmem:[#allocation8 + $0x1c8] sm:$0xf]  ;;  %v7667_v31 = vor.u32 %v9214_v53, %v7666_v28 }
 0x2a4   :  { %v8396_v42 = vld [vmem:[#allocation8 + $0x720] sm:$0xf0]  ;;  %v9334_v28 = vld [vmem:[#allocation8 + $0x524] sm:$0xf0] }
 0x2a5   :  { %v8399_v43 = vor.u32 %v9393_v38, %v8396_v42  ;;  %v8076_v44 = vld [vmem:[#allocation8 + $0x4a0] sm:$0xf0] }
 0x2a6   :  { %4847 = vmatpush.bf16.msra.mxu1 %v7787_v12  ;;  %4873 = vmatpush.bf16.msra.mxu3 %v8299_v41  ;;  %v9337_v12 = vld [vmem:[#allocation8 + $0x544] sm:$0xf] }
 0x2a7   :  { %4882 = vmatpush.bf16.msrb.mxu0 %v7663_v24  ;;  %v8175_v36 = vor.u32 %v9337_v12, %v8172_v13  ;;  %v7503_v24 = vor.u32 %v9169_v23, %v7500_v47  ;;  %v9385_v48 = vld [vmem:[#allocation8 + $0x6c4] sm:$0xf]  ;;  %v7986_v23 = vld [vmem:[#allocation8 + $0x3c8] sm:$0xf] }
 0x2a8   :  { %v8364_v49 = vld [vmem:[#allocation8 + $0x6e0] sm:$0xf0]  ;;  %v9294_v47 = vld [vmem:[#allocation8 + $0x3e4] sm:$0xf0] }
 0x2a9   :  { %4908 = vmatpush.bf16.msrb.mxu2 %v8175_v36  ;;  %v8367_v50 = vor.u32 %v9385_v48, %v8364_v49  ;;  %v8044_v56 = vld [vmem:[#allocation8 + $0x460] sm:$0xf0]  ;;  %v7602_v49 = vld [vmem:[#allocation8 + $0xc8] sm:$0xf] }
 0x2aa   :  { %4848 = vmatpush.bf16.msra.mxu1 %v7755_v14  ;;  %4874 = vmatpush.bf16.msra.mxu3 %v8267_v62  ;;  %v9249_v14 = vld [vmem:[#allocation8 + $0x284] sm:$0xf]  ;;  %v2834_v62 = vperm.slane %v10272_v60, 0 }
 0x2ab   :  { %4883 = vmatpush.bf16.msrb.mxu0 %v7631_v33  ;;  %v9233_v33 = vld [vmem:[#allocation8 + $0x204] sm:$0xf] }
 0x2ac   :  { %v7759_v55 = vor.u32 %v9233_v33, %v7756_v35  ;;  %v9377_v10 = vld [vmem:[#allocation8 + $0x684] sm:$0xf]  ;;  %v9206_v33 = vld [vmem:[#allocation8 + $0x124] sm:$0xf0] }
 0x2ad   :  { %4909 = vmatpush.bf16.msrb.mxu2 %v8143_v27  ;;  %v8332_v26 = vld [vmem:[#allocation8 + $0x6a0] sm:$0xf0] }
 0x2ae   :  { %4893 = vmatpush.bf16.msrb.mxu1 %v7983_v19  ;;  %4919 = vmatpush.bf16.msrb.mxu3 %v8495_v6  ;;  %v7823_v19 = vor.u32 %v9249_v14, %v7820_v15  ;;  %v8335_v41 = vor.u32 %v9377_v10, %v8332_v26  ;;  %v9297_v54 = vld [vmem:[#allocation8 + $0x404] sm:$0xf]  ;;  %v7698_v15 = vld [vmem:[#allocation8 + $0x188] sm:$0xf] }
 0x2af   :  { %4884 = vmatpush.bf16.msrb.mxu0 %v7599_v4  ;;  %v9305_v4 = vld [vmem:[#allocation8 + $0x444] sm:$0xf]  ;;  %v7890_v26 = vld [vmem:[#allocation8 + $0x308] sm:$0xf] }
 0x2b0   :  { %v8047_v57 = vor.u32 %v9305_v4, %v8044_v56  ;;  %v8012_v21 = vld [vmem:[#allocation8 + $0x420] sm:$0xf0]  ;;  %v8242_v4 = vld [vmem:[#allocation8 + $0x5c8] sm:$0xf] }
 0x2b1   :  { %4910 = vmatpush.bf16.msrb.mxu2 %v8111_v16  ;;  %v9369_v9 = vld [vmem:[#allocation8 + $0x644] sm:$0xf]  ;;  %v7634_v16 = vld [vmem:[#allocation8 + $0x108] sm:$0xf] }
 0x2b2   :  { %4894 = vmatpush.bf16.msrb.mxu1 %v7951_v51  ;;  %4920 = vmatpush.bf16.msrb.mxu3 %v8463_v22  ;;  %v8431_v51 = vor.u32 %v9401_v29, %v8428_v30  ;;  %v8300_v58 = vld [vmem:[#allocation8 + $0x660] sm:$0xf0]  ;;  %v2836_v29 = vperm.slane %v10272_v60, 2  ;;  %v7635_v48 = vor.u32 %v9206_v33, %v7634_v16  ;;  %v9358_v56 = vld [vmem:[#allocation8 + $0x5e4] sm:$0xf0] }
 0x2b3   :  { %4885 = vmatpush.bf16.msrb.mxu0 %v7567_v59  ;;  %v8303_v59 = vor.u32 %v9369_v9, %v8300_v58  ;;  %v9361_v32 = vld [vmem:[#allocation8 + $0x604] sm:$0xf]  ;;  %v9190_v58 = vld [vmem:[#allocation8 + $0xa4] sm:$0xf0] }
 0x2b4   :  { %v8268_v61 = vld [vmem:[#allocation8 + $0x620] sm:$0xf0]  ;;  %v9246_v16 = vld [vmem:[#allocation8 + $0x264] sm:$0xf0] }
 0x2b5   :  { %v8271_v0 = vor.u32 %v9361_v32, %v8268_v61  ;;  %v7858_v61 = vld [vmem:[#allocation8 + $0x2c8] sm:$0xf] }
 0x2b6   :  { %4895 = vmatpush.bf16.msrb.mxu1 %v7919_v34  ;;  %4921 = vmatpush.bf16.msrb.mxu3 %v8431_v51  ;;  %v9313_v34 = vld [vmem:[#allocation8 + $0x484] sm:$0xf]  ;;  %v7954_v51 = vld [vmem:[#allocation8 + $0x388] sm:$0xf] }
 0x2b7   :  { %4886 = vmatpush.bf16.msrb.mxu0 %v7535_v37  ;;  %v8079_v46 = vor.u32 %v9313_v34, %v8076_v44  ;;  %v9230_v37 = vld [vmem:[#allocation8 + $0x1e4] sm:$0xf0]  ;;  %v7955_v38 = vor.u32 %v9286_v11, %v7954_v51  ;;  %v2837_v44 = vperm.slane %v10272_v60, 3  ;;  %v9226_v51 = vld [vmem:[#allocation8 + $0x1cc] sm:$0xf] }
 0x2b8   :  { %v7731_v13 = vor.u32 %v9230_v37, %v7730_v8  ;;  %v9278_v34 = vld [vmem:[#allocation8 + $0x364] sm:$0xf0]  ;;  %v7732_v11 = vld [vmem:[#allocation8 + $0x1e8] sm:$0xf0] }
 0x2b9   :  { %4911 = vmatpush.bf16.msrb.mxu2 %v8079_v46  ;;  %v9350_v60 = vld [vmem:[#allocation8 + $0x5a4] sm:$0xf0] }
 0x2ba   :  { %4896 = vmatpush.bf16.msrb.mxu1 %v7887_v39  ;;  %4922 = vmatpush.bf16.msrb.mxu3 %v8399_v43  ;;  %v8015_v39 = vor.u32 %v9297_v54, %v8012_v21  ;;  %v7922_v43 = vld [vmem:[#allocation8 + $0x348] sm:$0xf]  ;;  %v8243_v21 = vor.u32 %v9358_v56, %v8242_v4 }
 0x2bb   :  { %4887 = vmatpush.bf16.msrb.mxu0 %v7503_v24  ;;  %v7699_v24 = vor.u32 %v9222_v17, %v7698_v15  ;;  %v9182_v8 = vld [vmem:[#allocation8 + $0x64] sm:$0xf0] }
 0x2bc   :  { %v7826_v17 = vld [vmem:[#allocation8 + $0x288] sm:$0xf] }
 0x2bd   :  { %4912 = vmatpush.bf16.msrb.mxu2 %v8047_v57  ;;  %v7923_v57 = vor.u32 %v9278_v34, %v7922_v43  ;;  %v8434_v33 = vld [vmem:[#allocation8 + $0x748] sm:$0xf] }
 0x2be   :  { %4897 = vmatpush.bf16.msrb.mxu1 %v7855_v3  ;;  %4923 = vmatpush.bf16.msrb.mxu3 %v8367_v50  ;;  %v8114_v43 = vld [vmem:[#allocation8 + $0x4c8] sm:$0xf] }
 0x2bf   :  { %v9326_v34 = vld [vmem:[#allocation8 + $0x4e4] sm:$0xf0] }
 0x2c0   :  { %v8402_v4 = vld [vmem:[#allocation8 + $0x708] sm:$0xf] }
 0x2c1   :  { %4913 = vmatpush.bf16.msrb.mxu2 %v8015_v39  ;;  %v7570_v39 = vld [vmem:[#allocation8 + $0x88] sm:$0xf] }
 0x2c2   :  { %4898 = vmatpush.bf16.msrb.mxu1 %v7823_v19  ;;  %4924 = vmatpush.bf16.msrb.mxu3 %v8335_v41  ;;  %v9270_v41 = vld [vmem:[#allocation8 + $0x324] sm:$0xf0] }
 0x2c3   :  { %v7891_v32 = vor.u32 %v9270_v41, %v7890_v26  ;;  %v9398_v56 = vld [vmem:[#allocation8 + $0x724] sm:$0xf0]  ;;  %v7988_v26 = vld [vmem:[#allocation8 + $0x3e8] sm:$0xf0] }
 0x2c6   :  { %4899 = vmatpush.bf16.msrb.mxu1 %v7791_v18  ;;  %4925 = vmatpush.bf16.msrb.mxu3 %v8303_v59  ;;  %v7987_v18 = vor.u32 %v9294_v47, %v7986_v23  ;;  %v8210_v59 = vld [vmem:[#allocation8 + $0x588] sm:$0xf] }
 0x2c7   :  { %v9414_v23 = vld [vmem:[#allocation8 + $0x7a4] sm:$0xf0] }
 0x2ca   :  { %4900 = vmatpush.bf16.msrb.mxu1 %v7759_v55  ;;  %4926 = vmatpush.bf16.msrb.mxu3 %v8271_v0  ;;  %v9262_v0 = vld [vmem:[#allocation8 + $0x2e4] sm:$0xf0] }
 0x2f9   :  { %v3171_v52 = vpop.f32.mrf.mxu0 }
 0x2fa   :  { %v3172_v2 = vadd.f32 %v3171_v52, %v2834_v62  ;;  %v9198_v52 = vld [vmem:[#allocation8 + $0xe4] sm:$0xf0] }
 0x2fb   :  { %v7603_v54 = vor.u32 %v9198_v52, %v7602_v49  ;;  %v7700_v49 = vld [vmem:[#allocation8 + $0x1a8] sm:$0xf0]  ;;  %v9238_v52 = vld [vmem:[#allocation8 + $0x224] sm:$0xf0] }
 0x2ff   :  { %v3197_v40 = vpop.f32.mrf.mxu2 }
 0x300   :  { %v3198_v36 = vadd.f32 %v3197_v40, %v2835_v5  ;;  %v7571_v5 = vor.u32 %v9190_v58, %v7570_v39  ;;  %v9210_v58 = vld [vmem:[#allocation8 + $0x14c] sm:$0xf] }
 0x301   :  { %v3173_v45 = vpop.f32.mrf.mxu0 }
 0x307   :  { %v3199_v1 = vpop.f32.mrf.mxu2 }
 0x308   :  { %v8498_v1 = vld [vmem:[#allocation8 + $0x7c8] sm:$0xf] }
 0x309   :  { %v3184_v3 = vpop.f32.mrf.mxu1 }
 0x30a   :  { %v3185_v6 = vadd.f32 %v3184_v3, %v3172_v2  ;;  %v3223_v7 = vpop.f32.mrf.mxu0  ;;  %v9422_v2 = vld [vmem:[#allocation8 + $0x7e4] sm:$0xf0] }
 0x30b   :  { %v3224_v55 = vadd.f32 %v3223_v7, %v2836_v29  ;;  %v7538_v7 = vld [vmem:[#allocation8 + $0x48] sm:$0xf]  ;;  %v8499_v15 = vor.u32 %v9422_v2, %v8498_v1 }
 0x30c   :  { %v3266_v12 = vmax.f32 %v3185_v6, 0.0  ;;  %v8211_v6 = vor.u32 %v9350_v60, %v8210_v59  ;;  %v7539_v47 = vor.u32 %v9182_v8, %v7538_v7  ;;  %v7668_v59 = vld [vmem:[#allocation8 + $0x168] sm:$0xf0]  ;;  %v8050_v2 = vld [vmem:[#allocation8 + $0x448] sm:$0xf] }
 0x30d   :  { %v7671_v1 = vor.u32 %v9210_v58, %v7668_v59  ;;  %v7636_v7 = vld [vmem:[#allocation8 + $0x128] sm:$0xf0] }
 0x30e   :  { %v10276_v14 = vpack.c.bf16 %v3266_v12, %v3266_v12  ;;  %v8178_v12 = vld [vmem:[#allocation8 + $0x548] sm:$0xf]  ;;  %v8468_v58 = vld [vmem:[#allocation8 + $0x7a8] sm:$0xf0] }
 0x30f   :  { %v3210_v19 = vpop.f32.mrf.mxu3 }
 0x310   :  { %v3211_v20 = vadd.f32 %v3210_v19, %v3198_v36  ;;  %v3249_v22 = vpop.f32.mrf.mxu2  ;;  %4836 = vmatmul.bf16.vlgmr.msra.gmra.mxu0 %v10276_v14  ;;  %v7859_v36 = vor.u32 %v9262_v0, %v7858_v61  ;;  %v7956_v0 = vld [vmem:[#allocation8 + $0x3a8] sm:$0xf0] }
 0x311   :  { %4932 = vmatpush.bf16.msra.mxu0 %v7731_v13  ;;  %v3186_v25 = vpop.f32.mrf.mxu1  ;;  %v3250_v40 = vadd.f32 %v3249_v22, %v2837_v44  ;;  %v9342_v13 = vld [vmem:[#allocation8 + $0x564] sm:$0xf0] }
 0x312   :  { %v3267_v63 = vmax.f32 %v3211_v20, 0.0  ;;  %v3225_v27 = vpop.f32.mrf.mxu0  ;;  %v9254_v20 = vld [vmem:[#allocation8 + $0x2a4] sm:$0xf0]  ;;  %v8179_v25 = vor.u32 %v9342_v13, %v8178_v12 }
 0x313   :  { %v8466_v22 = vld [vmem:[#allocation8 + $0x788] sm:$0xf] }
 0x314   :  { %v10280_v30 = vpack.c.bf16 %v3267_v63, %v3267_v63  ;;  %v9174_v63 = vld [vmem:[#allocation8 + $0x24] sm:$0xf0]  ;;  %v8467_v29 = vor.u32 %v9414_v23, %v8466_v22  ;;  %v9194_v23 = vld [vmem:[#allocation8 + $0xcc] sm:$0xf] }
 0x315   :  { %4933 = vmatpush.bf16.msra.mxu0 %v7699_v24  ;;  %v7506_v24 = vld [vmem:[#allocation8 + $0x8] sm:$0xf] }
 0x316   :  { %4849 = vmatmul.bf16.vlgmr.msra.gmra.mxu1 %v10280_v30  ;;  %v8146_v27 = vld [vmem:[#allocation8 + $0x508] sm:$0xf] }
 0x317   :  { %4945 = vmatpush.bf16.msra.mxu1 %v7987_v18  ;;  %v3212_v35 = vpop.f32.mrf.mxu3  ;;  %v7827_v18 = vor.u32 %v9254_v20, %v7826_v17  ;;  %v9382_v12 = vld [vmem:[#allocation8 + $0x6a4] sm:$0xf0] }
 0x318   :  { %v3251_v42 = vpop.f32.mrf.mxu2  ;;  %v9406_v35 = vld [vmem:[#allocation8 + $0x764] sm:$0xf0] }
 0x319   :  { %4934 = vmatpush.bf16.msra.mxu0 %v7667_v31  ;;  %v3236_v46 = vpop.f32.mrf.mxu1  ;;  %v7794_v31 = vld [vmem:[#allocation8 + $0x248] sm:$0xf]  ;;  %v7735_v42 = vor.u32 %v9226_v51, %v7732_v11  ;;  %v7892_v51 = vld [vmem:[#allocation8 + $0x328] sm:$0xf0] }
 0x31a   :  { %v3237_v50 = vadd.f32 %v3236_v46, %v3224_v55  ;;  %v8147_v55 = vor.u32 %v9334_v28, %v8146_v27  ;;  %v7795_v44 = vor.u32 %v9246_v16, %v7794_v31  ;;  %v8435_v46 = vor.u32 %v9406_v35, %v8434_v33  ;;  %v8018_v20 = vld [vmem:[#allocation8 + $0x408] sm:$0xf]  ;;  %v9186_v16 = vld [vmem:[#allocation8 + $0x8c] sm:$0xf] }
 0x31b   :  { %4946 = vmatpush.bf16.msra.mxu1 %v7955_v38  ;;  %v7507_v38 = vor.u32 %v9174_v63, %v7506_v24  ;;  %v9302_v22 = vld [vmem:[#allocation8 + $0x424] sm:$0xf0]  ;;  %v9354_v24 = vld [vmem:[#allocation8 + $0x5cc] sm:$0xf] }
 0x31c   :  { %v3268_v10 = vmax.f32 %v3237_v50, 0.0  ;;  %v7762_v50 = vld [vmem:[#allocation8 + $0x208] sm:$0xf]  ;;  %v8244_v63 = vld [vmem:[#allocation8 + $0x5e8] sm:$0xf0] }
 0x31d   :  { %4935 = vmatpush.bf16.msra.mxu0 %v7635_v48  ;;  %v9218_v48 = vld [vmem:[#allocation8 + $0x18c] sm:$0xf]  ;;  %v7763_v39 = vor.u32 %v9238_v52, %v7762_v50  ;;  %v8306_v28 = vld [vmem:[#allocation8 + $0x648] sm:$0xf]  ;;  %v8247_v31 = vor.u32 %v9354_v24, %v8244_v63 }
 0x31e   :  { %v10284_v9 = vpack.c.bf16 %v3268_v10, %v3268_v10  ;;  %v9290_v10 = vld [vmem:[#allocation8 + $0x3cc] sm:$0xf]  ;;  %v7703_v41 = vor.u32 %v9218_v48, %v7700_v49 }
 0x31f   :  { %4947 = vmatpush.bf16.msra.mxu1 %v7923_v57  ;;  %v3262_v45 = vpop.f32.mrf.mxu3  ;;  %v8115_v57 = vor.u32 %v9326_v34, %v8114_v43  ;;  %v7991_v60 = vor.u32 %v9290_v10, %v7988_v26  ;;  %v7572_v35 = vld [vmem:[#allocation8 + $0xa8] sm:$0xf0]  ;;  %v8274_v43 = vld [vmem:[#allocation8 + $0x608] sm:$0xf] }
 0x320   :  { %v3263_v62 = vadd.f32 %v3262_v45, %v3250_v40  ;;  %4862 = vmatmul.bf16.vlgmr.msra.gmra.mxu2 %v10284_v9  ;;  %4888 = vmatmul.bf16.vlgmr.msrb.gmra.mxu0 %v10276_v14  ;;  %v8403_v40 = vor.u32 %v9398_v56, %v8402_v4  ;;  %v8370_v45 = vld [vmem:[#allocation8 + $0x6c8] sm:$0xf]  ;;  %v9418_v48 = vld [vmem:[#allocation8 + $0x7cc] sm:$0xf]  ;;  %v7575_v50 = vor.u32 %v9186_v16, %v7572_v35  ;;  %v7674_v16 = vld [vmem:[#allocation8 + $0x150] sm:$0xf] }
 0x321   :  { %4936 = vmatpush.bf16.msra.mxu0 %v7603_v54  ;;  %4958 = vmatpush.bf16.msra.mxu2 %v8243_v21  ;;  %v3238_v3 = vpop.f32.mrf.mxu1  ;;  %v8082_v54 = vld [vmem:[#allocation8 + $0x488] sm:$0xf]  ;;  %v8500_v49 = vld [vmem:[#allocation8 + $0x7e8] sm:$0xf0] }
 0x322   :  { %v3269_v37 = vmax.f32 %v3263_v62, 0.0  ;;  %v9318_v21 = vld [vmem:[#allocation8 + $0x4a4] sm:$0xf0]  ;;  %v9282_v62 = vld [vmem:[#allocation8 + $0x38c] sm:$0xf] }
 0x323   :  { %4948 = vmatpush.bf16.msra.mxu1 %v7891_v32  ;;  %v9390_v32 = vld [vmem:[#allocation8 + $0x6e4] sm:$0xf0]  ;;  %v8083_v61 = vor.u32 %v9318_v21, %v8082_v54  ;;  %v7959_v8 = vor.u32 %v9282_v62, %v7956_v0  ;;  %v9178_v4 = vld [vmem:[#allocation8 + $0x4c] sm:$0xf]  ;;  %v8503_v54 = vor.u32 %v9418_v48, %v8500_v49 }
 0x324   :  { %v10288_v19 = vpack.c.bf16 %v3269_v37, %v3269_v37  ;;  %v9310_v3 = vld [vmem:[#allocation8 + $0x464] sm:$0xf0]  ;;  %v9338_v10 = vld [vmem:[#allocation8 + $0x54c] sm:$0xf] }
 0x325   :  { %4937 = vmatpush.bf16.msra.mxu0 %v7571_v5  ;;  %4959 = vmatpush.bf16.msra.mxu2 %v8211_v6  ;;  %v8371_v5 = vor.u32 %v9390_v32, %v8370_v45  ;;  %v9202_v6 = vld [vmem:[#allocation8 + $0x10c] sm:$0xf]  ;;  %v8338_v37 = vld [vmem:[#allocation8 + $0x688] sm:$0xf]  ;;  %v8051_v13 = vor.u32 %v9310_v3, %v8050_v2  ;;  %v7738_v2 = vld [vmem:[#allocation8 + $0x1d0] sm:$0xf] }
 0x326   :  { %4875 = vmatmul.bf16.vlgmr.msra.gmra.mxu3 %v10288_v19  ;;  %4901 = vmatmul.bf16.vlgmr.msrb.gmra.mxu1 %v10280_v30  ;;  %v7639_v17 = vor.u32 %v9202_v6, %v7636_v7  ;;  %v9366_v34 = vld [vmem:[#allocation8 + $0x624] sm:$0xf0]  ;;  %v8180_v26 = vld [vmem:[#allocation8 + $0x568] sm:$0xf0]  ;;  %v9231_v3 = vld [vmem:[#allocation8 + $0x1ec] sm:$0xf0] }
 0x327   :  { %4949 = vmatpush.bf16.msra.mxu1 %v7859_v36  ;;  %4971 = vmatpush.bf16.msra.mxu3 %v8499_v15  ;;  %v3264_v53 = vpop.f32.mrf.mxu3  ;;  %v9274_v36 = vld [vmem:[#allocation8 + $0x34c] sm:$0xf]  ;;  %v8275_v56 = vor.u32 %v9366_v34, %v8274_v43  ;;  %v7962_v43 = vld [vmem:[#allocation8 + $0x390] sm:$0xf] }
 0x328   :  { %v7924_v15 = vld [vmem:[#allocation8 + $0x368] sm:$0xf0]  ;;  %v9374_v53 = vld [vmem:[#allocation8 + $0x664] sm:$0xf0]  ;;  %v9287_v34 = vld [vmem:[#allocation8 + $0x3ac] sm:$0xf0] }
 0x329   :  { %4938 = vmatpush.bf16.msra.mxu0 %v7539_v47  ;;  %4960 = vmatpush.bf16.msra.mxu2 %v8179_v25  ;;  %v8339_v47 = vor.u32 %v9382_v12, %v8338_v37  ;;  %v7604_v25 = vld [vmem:[#allocation8 + $0xe8] sm:$0xf0]  ;;  %v7927_v27 = vor.u32 %v9274_v36, %v7924_v15  ;;  %v8307_v33 = vor.u32 %v9374_v53, %v8306_v28  ;;  %v7994_v28 = vld [vmem:[#allocation8 + $0x3d0] sm:$0xf] }
 0x32a   :  { %v7607_v11 = vor.u32 %v9194_v23, %v7604_v25  ;;  %v9250_v21 = vld [vmem:[#allocation8 + $0x28c] sm:$0xf]  ;;  %v9223_v23 = vld [vmem:[#allocation8 + $0x1ac] sm:$0xf0] }
 0x32b   :  { %4950 = vmatpush.bf16.msra.mxu1 %v7827_v18  ;;  %4972 = vmatpush.bf16.msra.mxu3 %v8467_v29  ;;  %v8019_v18 = vor.u32 %v9302_v22, %v8018_v20  ;;  %v9266_v29 = vld [vmem:[#allocation8 + $0x30c] sm:$0xf]  ;;  %v7706_v22 = vld [vmem:[#allocation8 + $0x190] sm:$0xf] }
 0x32c   :  { %v9170_v45 = vld [vmem:[#allocation8 + $0xc] sm:$0xf]  ;;  %v9295_v53 = vld [vmem:[#allocation8 + $0x3ec] sm:$0xf0] }
 0x32d   :  { %4939 = vmatpush.bf16.msra.mxu0 %v7507_v38  ;;  %4961 = vmatpush.bf16.msra.mxu2 %v8147_v55  ;;  %v9346_v38 = vld [vmem:[#allocation8 + $0x58c] sm:$0xf]  ;;  %v7995_v35 = vor.u32 %v9295_v53, %v7994_v28 }
 0x32e   :  { %v8212_v55 = vld [vmem:[#allocation8 + $0x5a8] sm:$0xf0] }
 0x32f   :  { %4951 = vmatpush.bf16.msra.mxu1 %v7795_v44  ;;  %4973 = vmatpush.bf16.msra.mxu3 %v8435_v46  ;;  %v9258_v44 = vld [vmem:[#allocation8 + $0x2cc] sm:$0xf]  ;;  %v8215_v52 = vor.u32 %v9346_v38, %v8212_v55 }
 0x330   :  { %4914 = vmatmul.bf16.vlgmr.msrb.gmra.mxu2 %v10284_v9  ;;  %4940 = vmatmul.bf16.vlgmr.msra.gmra.mxu0 %v10276_v14  ;;  %v7860_v46 = vld [vmem:[#allocation8 + $0x2e8] sm:$0xf0] }
 0x331   :  { %4984 = vmatpush.bf16.msrb.mxu0 %v7735_v42  ;;  %4962 = vmatpush.bf16.msra.mxu2 %v8115_v57  ;;  %v7895_v42 = vor.u32 %v9266_v29, %v7892_v51  ;;  %v7540_v57 = vld [vmem:[#allocation8 + $0x68] sm:$0xf0] }
 0x332   :  { %v7543_v59 = vor.u32 %v9178_v4, %v7540_v57  ;;  %v7508_v32 = vld [vmem:[#allocation8 + $0x28] sm:$0xf0]  ;;  %v7963_v4 = vor.u32 %v9287_v34, %v7962_v43  ;;  %v9335_v43 = vld [vmem:[#allocation8 + $0x52c] sm:$0xf0] }
 0x333   :  { %4952 = vmatpush.bf16.msra.mxu1 %v7763_v39  ;;  %4974 = vmatpush.bf16.msra.mxu3 %v8403_v40  ;;  %v7828_v39 = vld [vmem:[#allocation8 + $0x2a8] sm:$0xf0]  ;;  %v7511_v37 = vor.u32 %v9170_v45, %v7508_v32  ;;  %v9359_v45 = vld [vmem:[#allocation8 + $0x5ec] sm:$0xf0] }
 0x334   :  { %v9410_v40 = vld [vmem:[#allocation8 + $0x78c] sm:$0xf]  ;;  %v7831_v0 = vor.u32 %v9250_v21, %v7828_v39 }
 0x335   :  { %4985 = vmatpush.bf16.msrb.mxu0 %v7703_v41  ;;  %4963 = vmatpush.bf16.msra.mxu2 %v8083_v61  ;;  %v7863_v41 = vor.u32 %v9258_v44, %v7860_v46  ;;  %v9330_v61 = vld [vmem:[#allocation8 + $0x50c] sm:$0xf] }
 0x336   :  { %4927 = vmatmul.bf16.vlgmr.msrb.gmra.mxu3 %v10288_v19  ;;  %4953 = vmatmul.bf16.vlgmr.msra.gmra.mxu1 %v10280_v30  ;;  %v8148_v62 = vld [vmem:[#allocation8 + $0x528] sm:$0xf0] }
 0x337   :  { %4997 = vmatpush.bf16.msrb.mxu1 %v7991_v60  ;;  %4975 = vmatpush.bf16.msra.mxu3 %v8371_v5  ;;  %v8183_v60 = vor.u32 %v9338_v10, %v8180_v26  ;;  %v9242_v5 = vld [vmem:[#allocation8 + $0x24c] sm:$0xf]  ;;  %v8151_v12 = vor.u32 %v9330_v61, %v8148_v62  ;;  %v7930_v26 = vld [vmem:[#allocation8 + $0x350] sm:$0xf] }
 0x338   :  { %v7796_v6 = vld [vmem:[#allocation8 + $0x268] sm:$0xf0] }
 0x339   :  { %4986 = vmatpush.bf16.msrb.mxu0 %v7671_v1  ;;  %4964 = vmatpush.bf16.msra.mxu2 %v8051_v13  ;;  %v8471_v1 = vor.u32 %v9410_v40, %v8468_v58  ;;  %v9402_v7 = vld [vmem:[#allocation8 + $0x74c] sm:$0xf]  ;;  %v7739_v13 = vor.u32 %v9231_v3, %v7738_v2  ;;  %v7610_v40 = vld [vmem:[#allocation8 + $0xd0] sm:$0xf] }
 0x33a   :  { %v9322_v36 = vld [vmem:[#allocation8 + $0x4cc] sm:$0xf]  ;;  %v9271_v2 = vld [vmem:[#allocation8 + $0x32c] sm:$0xf0] }
 0x33b   :  { %4998 = vmatpush.bf16.msrb.mxu1 %v7959_v8  ;;  %4976 = vmatpush.bf16.msra.mxu3 %v8339_v47  ;;  %v8436_v8 = vld [vmem:[#allocation8 + $0x768] sm:$0xf0] }
 0x33c   :  { %v8116_v15 = vld [vmem:[#allocation8 + $0x4e8] sm:$0xf0]  ;;  %v8439_v20 = vor.u32 %v9402_v7, %v8436_v8  ;;  %v9191_v8 = vld [vmem:[#allocation8 + $0xac] sm:$0xf0] }
 0x33d   :  { %4987 = vmatpush.bf16.msrb.mxu0 %v7639_v17  ;;  %4965 = vmatpush.bf16.msra.mxu2 %v8019_v18  ;;  %v7799_v17 = vor.u32 %v9242_v5, %v7796_v6  ;;  %v9234_v47 = vld [vmem:[#allocation8 + $0x20c] sm:$0xf]  ;;  %v7707_v18 = vor.u32 %v9223_v23, %v7706_v22  ;;  %v7578_v6 = vld [vmem:[#allocation8 + $0x90] sm:$0xf] }
 0x33e   :  { %v7764_v25 = vld [vmem:[#allocation8 + $0x228] sm:$0xf0]  ;;  %v8506_v22 = vld [vmem:[#allocation8 + $0x7d0] sm:$0xf] }
 0x33f   :  { %4999 = vmatpush.bf16.msrb.mxu1 %v7927_v27  ;;  %4977 = vmatpush.bf16.msra.mxu3 %v8307_v33  ;;  %v9394_v24 = vld [vmem:[#allocation8 + $0x70c] sm:$0xf]  ;;  %v8119_v27 = vor.u32 %v9322_v36, %v8116_v15  ;;  %v9215_v33 = vld [vmem:[#allocation8 + $0x16c] sm:$0xf0] }
 0x340   :  { %4966 = vmatmul.bf16.vlgmr.msra.gmra.mxu2 %v10284_v9  ;;  %v8404_v63 = vld [vmem:[#allocation8 + $0x728] sm:$0xf0]  ;;  %v7675_v44 = vor.u32 %v9215_v33, %v7674_v16  ;;  %v9423_v23 = vld [vmem:[#allocation8 + $0x7ec] sm:$0xf0] }
 0x341   :  { %4988 = vmatpush.bf16.msrb.mxu0 %v7607_v11  ;;  %5010 = vmatpush.bf16.msrb.mxu2 %v8247_v31  ;;  %v9314_v29 = vld [vmem:[#allocation8 + $0x48c] sm:$0xf]  ;;  %v7767_v11 = vor.u32 %v9234_v47, %v7764_v25  ;;  %v8407_v31 = vor.u32 %v9394_v24, %v8404_v63  ;;  %v7579_v47 = vor.u32 %v9191_v8, %v7578_v6  ;;  %v7546_v63 = vld [vmem:[#allocation8 + $0x50] sm:$0xf]  ;;  %v9211_v6 = vld [vmem:[#allocation8 + $0x154] sm:$0xf] }
 0x342   :  { %v8084_v51 = vld [vmem:[#allocation8 + $0x4a8] sm:$0xf0]  ;;  %v8507_v53 = vor.u32 %v9423_v23, %v8506_v22  ;;  %v9415_v16 = vld [vmem:[#allocation8 + $0x7ac] sm:$0xf0]  ;;  %v7676_v8 = vld [vmem:[#allocation8 + $0x170] sm:$0xf0] }
 0x343   :  { %5000 = vmatpush.bf16.msrb.mxu1 %v7895_v42  ;;  %4978 = vmatpush.bf16.msra.mxu3 %v8275_v56  ;;  %v9386_v38 = vld [vmem:[#allocation8 + $0x6cc] sm:$0xf]  ;;  %v8087_v42 = vor.u32 %v9314_v29, %v8084_v51  ;;  %v9343_v29 = vld [vmem:[#allocation8 + $0x56c] sm:$0xf0] }
 0x344   :  { %v8372_v55 = vld [vmem:[#allocation8 + $0x6e8] sm:$0xf0]  ;;  %v7834_v51 = vld [vmem:[#allocation8 + $0x290] sm:$0xf] }
 0x345   :  { %4989 = vmatpush.bf16.msrb.mxu0 %v7575_v50  ;;  %5011 = vmatpush.bf16.msrb.mxu2 %v8215_v52  ;;  %v9306_v46 = vld [vmem:[#allocation8 + $0x44c] sm:$0xf]  ;;  %v8375_v49 = vor.u32 %v9386_v38, %v8372_v55  ;;  %v7642_v50 = vld [vmem:[#allocation8 + $0x110] sm:$0xf] }
 0x346   :  { %4979 = vmatmul.bf16.vlgmr.msra.gmra.mxu3 %v10288_v19  ;;  %v8052_v48 = vld [vmem:[#allocation8 + $0x468] sm:$0xf0]  ;;  %v9207_v52 = vld [vmem:[#allocation8 + $0x12c] sm:$0xf0] }
 0x347   :  { %5001 = vmatpush.bf16.msrb.mxu1 %v7863_v41  ;;  %5023 = vmatpush.bf16.msrb.mxu3 %v8503_v54  ;;  %v9378_v56 = vld [vmem:[#allocation8 + $0x68c] sm:$0xf]  ;;  %v8055_v10 = vor.u32 %v9306_v46, %v8052_v48  ;;  %v9279_v41 = vld [vmem:[#allocation8 + $0x36c] sm:$0xf0]  ;;  %v7643_v54 = vor.u32 %v9207_v52, %v7642_v50  ;;  %v9227_v46 = vld [vmem:[#allocation8 + $0x1d4] sm:$0xf] }
 0x348   :  { %v8340_v57 = vld [vmem:[#allocation8 + $0x6a8] sm:$0xf0]  ;;  %v7931_v32 = vor.u32 %v9279_v41, %v7930_v26  ;;  %v9175_v55 = vld [vmem:[#allocation8 + $0x2c] sm:$0xf0]  ;;  %v7740_v48 = vld [vmem:[#allocation8 + $0x1f0] sm:$0xf0] }
 0x349   :  { %4990 = vmatpush.bf16.msrb.mxu0 %v7543_v59  ;;  %5012 = vmatpush.bf16.msrb.mxu2 %v8183_v60  ;;  %v9298_v21 = vld [vmem:[#allocation8 + $0x40c] sm:$0xf]  ;;  %v8343_v58 = vor.u32 %v9378_v56, %v8340_v57  ;;  %v9199_v59 = vld [vmem:[#allocation8 + $0xec] sm:$0xf0] }
 0x34a   :  { %v8020_v39 = vld [vmem:[#allocation8 + $0x428] sm:$0xf0]  ;;  %v8250_v60 = vld [vmem:[#allocation8 + $0x5d0] sm:$0xf]  ;;  %v7611_v3 = vor.u32 %v9199_v59, %v7610_v40  ;;  %v7708_v40 = vld [vmem:[#allocation8 + $0x1b0] sm:$0xf0] }
 0x34b   :  { %5002 = vmatpush.bf16.msrb.mxu1 %v7831_v0  ;;  %5024 = vmatpush.bf16.msrb.mxu3 %v8471_v1  ;;  %v9370_v61 = vld [vmem:[#allocation8 + $0x64c] sm:$0xf]  ;;  %v8023_v0 = vor.u32 %v9298_v21, %v8020_v39  ;;  %v7898_v1 = vld [vmem:[#allocation8 + $0x310] sm:$0xf]  ;;  %v8251_v5 = vor.u32 %v9359_v45, %v8250_v60  ;;  %v9219_v39 = vld [vmem:[#allocation8 + $0x194] sm:$0xf] }
 0x34c   :  { %v8308_v62 = vld [vmem:[#allocation8 + $0x668] sm:$0xf0]  ;;  %v9247_v50 = vld [vmem:[#allocation8 + $0x26c] sm:$0xf0] }
 0x34d   :  { %4991 = vmatpush.bf16.msrb.mxu0 %v7511_v37  ;;  %5013 = vmatpush.bf16.msrb.mxu2 %v8151_v12  ;;  %v8311_v7 = vor.u32 %v9370_v61, %v8308_v62  ;;  %v8218_v37 = vld [vmem:[#allocation8 + $0x590] sm:$0xf]  ;;  %v9362_v36 = vld [vmem:[#allocation8 + $0x60c] sm:$0xf]  ;;  %v7996_v61 = vld [vmem:[#allocation8 + $0x3f0] sm:$0xf0] }
 0x34e   :  { %v9351_v12 = vld [vmem:[#allocation8 + $0x5ac] sm:$0xf0]  ;;  %v8276_v15 = vld [vmem:[#allocation8 + $0x628] sm:$0xf0] }
 0x34f   :  { %5003 = vmatpush.bf16.msrb.mxu1 %v7799_v17  ;;  %5025 = vmatpush.bf16.msrb.mxu3 %v8439_v20  ;;  %v7866_v17 = vld [vmem:[#allocation8 + $0x2d0] sm:$0xf]  ;;  %v8219_v25 = vor.u32 %v9351_v12, %v8218_v37  ;;  %v8279_v24 = vor.u32 %v9362_v36, %v8276_v15  ;;  %v7964_v36 = vld [vmem:[#allocation8 + $0x3b0] sm:$0xf0] }
 0x350   :  { %4992 = vmatmul.bf16.vlgmr.msrb.gmra.mxu0 %v10276_v14  ;;  %v9263_v20 = vld [vmem:[#allocation8 + $0x2ec] sm:$0xf0] }
 0x351   :  { %5036 = vmatpush.bf16.msra.mxu0 %v7739_v13  ;;  %5014 = vmatpush.bf16.msrb.mxu2 %v8119_v27  ;;  %v7899_v13 = vor.u32 %v9271_v2, %v7898_v1  ;;  %v9183_v27 = vld [vmem:[#allocation8 + $0x6c] sm:$0xf0]  ;;  %v7867_v28 = vor.u32 %v9263_v20, %v7866_v17  ;;  %v7679_v17 = vor.u32 %v9211_v6, %v7676_v8  ;;  %v8476_v6 = vld [vmem:[#allocation8 + $0x7b0] sm:$0xf0] }
 0x352   :  { %v7547_v33 = vor.u32 %v9183_v27, %v7546_v63  ;;  %v8442_v52 = vld [vmem:[#allocation8 + $0x750] sm:$0xf]  ;;  %v9171_v8 = vld [vmem:[#allocation8 + $0x14] sm:$0xf] }
 0x353   :  { %5004 = vmatpush.bf16.msrb.mxu1 %v7767_v11  ;;  %5026 = vmatpush.bf16.msrb.mxu3 %v8407_v31  ;;  %v9255_v11 = vld [vmem:[#allocation8 + $0x2ac] sm:$0xf0] }
 0x354   :  { %v8474_v31 = vld [vmem:[#allocation8 + $0x790] sm:$0xf]  ;;  %v7835_v34 = vor.u32 %v9255_v11, %v7834_v51 }
 0x355   :  { %5037 = vmatpush.bf16.msra.mxu0 %v7707_v18  ;;  %5015 = vmatpush.bf16.msrb.mxu2 %v8087_v42  ;;  %v8186_v18 = vld [vmem:[#allocation8 + $0x550] sm:$0xf] }
 0x356   :  { %5005 = vmatmul.bf16.vlgmr.msrb.gmra.mxu1 %v10280_v30  ;;  %v8187_v38 = vor.u32 %v9343_v29, %v8186_v18  ;;  %v8154_v42 = vld [vmem:[#allocation8 + $0x510] sm:$0xf] }
 0x357   :  { %5049 = vmatpush.bf16.msra.mxu1 %v7995_v35  ;;  %5027 = vmatpush.bf16.msrb.mxu3 %v8375_v49  ;;  %v7514_v35 = vld [vmem:[#allocation8 + $0x10] sm:$0xf]  ;;  %v8155_v57 = vor.u32 %v9335_v43, %v8154_v42 }
 0x358   :  { %v7802_v49 = vld [vmem:[#allocation8 + $0x250] sm:$0xf]  ;;  %v7515_v56 = vor.u32 %v9175_v55, %v7514_v35  ;;  %v8252_v55 = vld [vmem:[#allocation8 + $0x5f0] sm:$0xf0] }
 0x359   :  { %5038 = vmatpush.bf16.msra.mxu0 %v7675_v44  ;;  %5016 = vmatpush.bf16.msrb.mxu2 %v8055_v10  ;;  %v8475_v44 = vor.u32 %v9415_v16, %v8474_v31  ;;  %v7743_v10 = vor.u32 %v9227_v46, %v7740_v48  ;;  %v8122_v26 = vld [vmem:[#allocation8 + $0x4d0] sm:$0xf]  ;;  %v9195_v16 = vld [vmem:[#allocation8 + $0xd4] sm:$0xf] }
 0x35a   :  { %v9327_v41 = vld [vmem:[#allocation8 + $0x4ec] sm:$0xf0] }
 0x35b   :  { %5050 = vmatpush.bf16.msra.mxu1 %v7963_v4  ;;  %5028 = vmatpush.bf16.msrb.mxu3 %v8343_v58  ;;  %v9407_v4 = vld [vmem:[#allocation8 + $0x76c] sm:$0xf0]  ;;  %v8123_v62 = vor.u32 %v9327_v41, %v8122_v26 }
 0x35c   :  { %v8443_v21 = vor.u32 %v9407_v4, %v8442_v52  ;;  %v7770_v58 = vld [vmem:[#allocation8 + $0x210] sm:$0xf]  ;;  %v7580_v52 = vld [vmem:[#allocation8 + $0xb0] sm:$0xf0] }
 0x35d   :  { %5039 = vmatpush.bf16.msra.mxu0 %v7643_v54  ;;  %5017 = vmatpush.bf16.msrb.mxu2 %v8023_v0  ;;  %v7803_v54 = vor.u32 %v9247_v50, %v7802_v49  ;;  %v9239_v59 = vld [vmem:[#allocation8 + $0x22c] sm:$0xf0]  ;;  %v7711_v0 = vor.u32 %v9219_v39, %v7708_v40  ;;  %v9187_v50 = vld [vmem:[#allocation8 + $0x94] sm:$0xf] }
 0x35e   :  { %v8410_v60 = vld [vmem:[#allocation8 + $0x710] sm:$0xf]  ;;  %v7771_v1 = vor.u32 %v9239_v59, %v7770_v58  ;;  %v9419_v39 = vld [vmem:[#allocation8 + $0x7d4] sm:$0xf]  ;;  %v7583_v58 = vor.u32 %v9187_v50, %v7580_v52  ;;  %v7682_v50 = vld [vmem:[#allocation8 + $0x158] sm:$0xf] }
 0x35f   :  { %5051 = vmatpush.bf16.msra.mxu1 %v7931_v32  ;;  %5029 = vmatpush.bf16.msrb.mxu3 %v8311_v7  ;;  %v9399_v45 = vld [vmem:[#allocation8 + $0x72c] sm:$0xf0]  ;;  %v9291_v32 = vld [vmem:[#allocation8 + $0x3d4] sm:$0xf] }
 0x360   :  { %5018 = vmatmul.bf16.vlgmr.msrb.gmra.mxu2 %v10284_v9  ;;  %v8411_v2 = vor.u32 %v9399_v45, %v8410_v60  ;;  %v7999_v7 = vor.u32 %v9291_v32, %v7996_v61  ;;  %v8378_v37 = vld [vmem:[#allocation8 + $0x6d0] sm:$0xf]  ;;  %v8508_v40 = vld [vmem:[#allocation8 + $0x7f0] sm:$0xf0] }
 0x361   :  { %5040 = vmatpush.bf16.msra.mxu0 %v7611_v3  ;;  %5062 = vmatpush.bf16.msra.mxu2 %v8251_v5  ;;  %v8090_v3 = vld [vmem:[#allocation8 + $0x490] sm:$0xf]  ;;  %v9179_v32 = vld [vmem:[#allocation8 + $0x54] sm:$0xf] }
 0x362   :  { %v9319_v5 = vld [vmem:[#allocation8 + $0x4ac] sm:$0xf0]  ;;  %v7548_v61 = vld [vmem:[#allocation8 + $0x70] sm:$0xf0] }
 0x363   :  { %5052 = vmatpush.bf16.msra.mxu1 %v7899_v13  ;;  %5030 = vmatpush.bf16.msrb.mxu3 %v8279_v24  ;;  %v9391_v12 = vld [vmem:[#allocation8 + $0x6ec] sm:$0xf0]  ;;  %v9283_v13 = vld [vmem:[#allocation8 + $0x394] sm:$0xf]  ;;  %v8091_v15 = vor.u32 %v9319_v5, %v8090_v3 }
 0x364   :  { %v8379_v20 = vor.u32 %v9391_v12, %v8378_v37  ;;  %v8058_v22 = vld [vmem:[#allocation8 + $0x450] sm:$0xf]  ;;  %v7644_v24 = vld [vmem:[#allocation8 + $0x130] sm:$0xf0] }
 0x365   :  { %5041 = vmatpush.bf16.msra.mxu0 %v7579_v47  ;;  %5063 = vmatpush.bf16.msra.mxu2 %v8219_v25  ;;  %v9311_v23 = vld [vmem:[#allocation8 + $0x46c] sm:$0xf0]  ;;  %v9203_v47 = vld [vmem:[#allocation8 + $0x114] sm:$0xf]  ;;  %v7967_v25 = vor.u32 %v9283_v13, %v7964_v36 }
 0x366   :  { %5031 = vmatmul.bf16.vlgmr.msrb.gmra.mxu3 %v10288_v19  ;;  %v8346_v63 = vld [vmem:[#allocation8 + $0x690] sm:$0xf]  ;;  %v8059_v18 = vor.u32 %v9311_v23, %v8058_v22  ;;  %v7647_v51 = vor.u32 %v9203_v47, %v7644_v24  ;;  %v7836_v3 = vld [vmem:[#allocation8 + $0x2b0] sm:$0xf0]  ;;  %v9232_v22 = vld [vmem:[#allocation8 + $0x1f4] sm:$0xf0] }
 0x367   :  { %5053 = vmatpush.bf16.msra.mxu1 %v7867_v28  ;;  %5075 = vmatpush.bf16.msra.mxu3 %v8507_v53  ;;  %v9383_v27 = vld [vmem:[#allocation8 + $0x6ac] sm:$0xf0]  ;;  %v9275_v28 = vld [vmem:[#allocation8 + $0x354] sm:$0xf] }
 0x368   :  { %v7932_v53 = vld [vmem:[#allocation8 + $0x370] sm:$0xf0]  ;;  %v8026_v29 = vld [vmem:[#allocation8 + $0x410] sm:$0xf]  ;;  %v8347_v11 = vor.u32 %v9383_v27, %v8346_v63 }
 0x369   :  { %5042 = vmatpush.bf16.msra.mxu0 %v7547_v33  ;;  %5064 = vmatpush.bf16.msra.mxu2 %v8187_v38  ;;  %v9303_v31 = vld [vmem:[#allocation8 + $0x42c] sm:$0xf0]  ;;  %v7612_v33 = vld [vmem:[#allocation8 + $0xf0] sm:$0xf0]  ;;  %v7935_v35 = vor.u32 %v9275_v28, %v7932_v53 }
 0x36a   :  { %v9355_v38 = vld [vmem:[#allocation8 + $0x5d4] sm:$0xf]  ;;  %v8314_v42 = vld [vmem:[#allocation8 + $0x650] sm:$0xf]  ;;  %v8027_v46 = vor.u32 %v9303_v31, %v8026_v29  ;;  %v7615_v48 = vor.u32 %v9195_v16, %v7612_v33  ;;  %v9224_v31 = vld [vmem:[#allocation8 + $0x1b4] sm:$0xf0] }
 0x36b   :  { %5054 = vmatpush.bf16.msra.mxu1 %v7835_v34  ;;  %5076 = vmatpush.bf16.msra.mxu3 %v8475_v44  ;;  %v9375_v43 = vld [vmem:[#allocation8 + $0x66c] sm:$0xf0]  ;;  %v9267_v34 = vld [vmem:[#allocation8 + $0x314] sm:$0xf]  ;;  %v8255_v49 = vor.u32 %v9355_v38, %v8252_v55  ;;  %v8002_v55 = vld [vmem:[#allocation8 + $0x3d8] sm:$0xf] }
 0x36c   :  { %v7900_v44 = vld [vmem:[#allocation8 + $0x330] sm:$0xf0]  ;;  %v8315_v4 = vor.u32 %v9375_v43, %v8314_v42  ;;  %v8282_v26 = vld [vmem:[#allocation8 + $0x610] sm:$0xf]  ;;  %v9296_v42 = vld [vmem:[#allocation8 + $0x3f4] sm:$0xf0] }
 0x36d   :  { %5043 = vmatpush.bf16.msra.mxu0 %v7515_v56  ;;  %5065 = vmatpush.bf16.msra.mxu2 %v8155_v57  ;;  %v7903_v56 = vor.u32 %v9267_v34, %v7900_v44  ;;  %v9347_v57 = vld [vmem:[#allocation8 + $0x594] sm:$0xf]  ;;  %v9367_v41 = vld [vmem:[#allocation8 + $0x62c] sm:$0xf0]  ;;  %v8003_v52 = vor.u32 %v9296_v42, %v8002_v55  ;;  %v9264_v55 = vld [vmem:[#allocation8 + $0x2f4] sm:$0xf0] }
 0x36e   :  { %v8283_v60 = vor.u32 %v9367_v41, %v8282_v26  ;;  %v9411_v5 = vld [vmem:[#allocation8 + $0x794] sm:$0xf]  ;;  %v9288_v26 = vld [vmem:[#allocation8 + $0x3b4] sm:$0xf0] }
 0x36f   :  { %5055 = vmatpush.bf16.msra.mxu1 %v7803_v54  ;;  %5077 = vmatpush.bf16.msra.mxu3 %v8443_v21  ;;  %v9259_v54 = vld [vmem:[#allocation8 + $0x2d4] sm:$0xf]  ;;  %v8514_v42 = vld [vmem:[#allocation8 + $0x7d8] sm:$0xf] }
 0x370   :  { %5044 = vmatmul.bf16.vlgmr.msra.gmra.mxu0 %v10276_v14  ;;  %v7868_v21 = vld [vmem:[#allocation8 + $0x2f0] sm:$0xf0] }
 0x371   :  { %5088 = vmatpush.bf16.msrb.mxu0 %v7743_v10  ;;  %5066 = vmatpush.bf16.msra.mxu2 %v8123_v62  ;;  %v8220_v10 = vld [vmem:[#allocation8 + $0x5b0] sm:$0xf0]  ;;  %v7871_v45 = vor.u32 %v9259_v54, %v7868_v21  ;;  %v10310_v54 = vld [vmem:[%s10580_s10] sm:$0xff] }
 0x372   :  { %v8223_v59 = vor.u32 %v9347_v57, %v8220_v10  ;;  %v9339_v62 = vld [vmem:[#allocation8 + $0x554] sm:$0xf]  ;;  %v7970_v10 = vld [vmem:[#allocation8 + $0x398] sm:$0xf] }
 0x373   :  { %5056 = vmatpush.bf16.msra.mxu1 %v7771_v1  ;;  %5078 = vmatpush.bf16.msra.mxu3 %v8411_v2  ;;  %v8188_v1 = vld [vmem:[#allocation8 + $0x570] sm:$0xf0] }
 0x374   :  { %v9251_v2 = vld [vmem:[#allocation8 + $0x294] sm:$0xf]  ;;  %v8191_v37 = vor.u32 %v9339_v62, %v8188_v1  ;;  %v9280_v1 = vld [vmem:[#allocation8 + $0x374] sm:$0xf0] }
 0x375   :  { %5089 = vmatpush.bf16.msrb.mxu0 %v7711_v0  ;;  %5067 = vmatpush.bf16.msra.mxu2 %v8091_v15  ;;  %v8511_v0 = vor.u32 %v9419_v39, %v8508_v40  ;;  %v7839_v12 = vor.u32 %v9251_v2, %v7836_v3  ;;  %v7516_v13 = vld [vmem:[#allocation8 + $0x30] sm:$0xf0]  ;;  %v3532_v2 = vperm.slane %v10310_v54, 0 }
 0x376   :  { %5057 = vmatmul.bf16.vlgmr.msra.gmra.mxu1 %v10280_v30  ;;  %v9331_v36 = vld [vmem:[#allocation8 + $0x514] sm:$0xf]  ;;  %v7519_v63 = vor.u32 %v9171_v8, %v7516_v13 }
 0x377   :  { %5101 = vmatpush.bf16.msrb.mxu1 %v7999_v7  ;;  %5079 = vmatpush.bf16.msra.mxu3 %v8379_v20  ;;  %v7551_v7 = vor.u32 %v9179_v32, %v7548_v61  ;;  %v8156_v15 = vld [vmem:[#allocation8 + $0x530] sm:$0xf0]  ;;  %v7746_v20 = vld [vmem:[#allocation8 + $0x1d8] sm:$0xf] }
 0x378   :  { %v9243_v23 = vld [vmem:[#allocation8 + $0x254] sm:$0xf]  ;;  %v8159_v27 = vor.u32 %v9331_v36, %v8156_v15  ;;  %v7747_v28 = vor.u32 %v9232_v22, %v7746_v20  ;;  %v8258_v36 = vld [vmem:[#allocation8 + $0x5d8] sm:$0xf] }
 0x379   :  { %5090 = vmatpush.bf16.msrb.mxu0 %v7679_v17  ;;  %5068 = vmatpush.bf16.msra.mxu2 %v8059_v18  ;;  %v8479_v17 = vor.u32 %v9411_v5, %v8476_v6  ;;  %v7804_v47 = vld [vmem:[#allocation8 + $0x270] sm:$0xf0]  ;;  %v9360_v15 = vld [vmem:[#allocation8 + $0x5f4] sm:$0xf0] }
 0x37a   :  { %v8444_v24 = vld [vmem:[#allocation8 + $0x770] sm:$0xf0]  ;;  %v7807_v29 = vor.u32 %v9243_v23, %v7804_v47  ;;  %v7906_v22 = vld [vmem:[#allocation8 + $0x318] sm:$0xf] }
 0x37b   :  { %5102 = vmatpush.bf16.msrb.mxu1 %v7967_v25  ;;  %5080 = vmatpush.bf16.msra.mxu3 %v8347_v11  ;;  %v9403_v25 = vld [vmem:[#allocation8 + $0x754] sm:$0xf]  ;;  %v7714_v11 = vld [vmem:[#allocation8 + $0x198] sm:$0xf] }
 0x37c   :  { %v9323_v53 = vld [vmem:[#allocation8 + $0x4d4] sm:$0xf]  ;;  %v7715_v34 = vor.u32 %v9224_v31, %v7714_v11  ;;  %v9272_v23 = vld [vmem:[#allocation8 + $0x334] sm:$0xf0] }
 0x37d   :  { %5091 = vmatpush.bf16.msrb.mxu0 %v7647_v51  ;;  %5069 = vmatpush.bf16.msra.mxu2 %v8027_v46  ;;  %v8124_v18 = vld [vmem:[#allocation8 + $0x4f0] sm:$0xf0]  ;;  %v8447_v51 = vor.u32 %v9403_v25, %v8444_v24  ;;  %v8226_v11 = vld [vmem:[#allocation8 + $0x598] sm:$0xf] }
 0x37e   :  { %v9235_v16 = vld [vmem:[#allocation8 + $0x214] sm:$0xf]  ;;  %v8127_v43 = vor.u32 %v9323_v53, %v8124_v18  ;;  %v9192_v53 = vld [vmem:[#allocation8 + $0xb4] sm:$0xf0] }
 0x37f   :  { %5103 = vmatpush.bf16.msrb.mxu1 %v7935_v35  ;;  %5081 = vmatpush.bf16.msra.mxu3 %v8315_v4  ;;  %v7772_v33 = vld [vmem:[#allocation8 + $0x230] sm:$0xf0]  ;;  %v9216_v4 = vld [vmem:[#allocation8 + $0x174] sm:$0xf0] }
 0x380   :  { %5070 = vmatmul.bf16.vlgmr.msra.gmra.mxu2 %v10284_v9  ;;  %v9395_v35 = vld [vmem:[#allocation8 + $0x714] sm:$0xf]  ;;  %v7775_v44 = vor.u32 %v9235_v16, %v7772_v33  ;;  %v7683_v21 = vor.u32 %v9216_v4, %v7682_v50  ;;  %v9352_v31 = vld [vmem:[#allocation8 + $0x5b4] sm:$0xf0] }
 0x381   :  { %5092 = vmatpush.bf16.msrb.mxu0 %v7615_v48  ;;  %5114 = vmatpush.bf16.msrb.mxu2 %v8255_v49  ;;  %v8412_v38 = vld [vmem:[#allocation8 + $0x730] sm:$0xf0]  ;;  %v9184_v50 = vld [vmem:[#allocation8 + $0x74] sm:$0xf0] }
 0x382   :  { %v8415_v46 = vor.u32 %v9395_v35, %v8412_v38  ;;  %v9315_v48 = vld [vmem:[#allocation8 + $0x494] sm:$0xf]  ;;  %v7874_v38 = vld [vmem:[#allocation8 + $0x2d8] sm:$0xf] }
 0x383   :  { %5104 = vmatpush.bf16.msrb.mxu1 %v7903_v56  ;;  %5082 = vmatpush.bf16.msra.mxu3 %v8283_v60  ;;  %v8092_v49 = vld [vmem:[#allocation8 + $0x4b0] sm:$0xf0]  ;;  %v7971_v60 = vor.u32 %v9288_v26, %v7970_v10  ;;  %v9256_v10 = vld [vmem:[#allocation8 + $0x2b4] sm:$0xf0] }
 0x384   :  { %v9387_v56 = vld [vmem:[#allocation8 + $0x6d4] sm:$0xf]  ;;  %v8095_v41 = vor.u32 %v9315_v48, %v8092_v49  ;;  %v7875_v48 = vor.u32 %v9264_v55, %v7874_v38  ;;  %v7554_v49 = vld [vmem:[#allocation8 + $0x58] sm:$0xf]  ;;  %v7684_v55 = vld [vmem:[#allocation8 + $0x178] sm:$0xf0] }
 0x385   :  { %5093 = vmatpush.bf16.msrb.mxu0 %v7583_v58  ;;  %5115 = vmatpush.bf16.msrb.mxu2 %v8223_v59  ;;  %v8380_v57 = vld [vmem:[#allocation8 + $0x6f0] sm:$0xf0]  ;;  %v7650_v59 = vld [vmem:[#allocation8 + $0x118] sm:$0xf] }
 0x386   :  { %5083 = vmatmul.bf16.vlgmr.msra.gmra.mxu3 %v10288_v19  ;;  %v8383_v39 = vor.u32 %v9387_v56, %v8380_v57  ;;  %v9307_v40 = vld [vmem:[#allocation8 + $0x454] sm:$0xf]  ;;  %v9344_v56 = vld [vmem:[#allocation8 + $0x574] sm:$0xf0] }
 0x387   :  { %5105 = vmatpush.bf16.msrb.mxu1 %v7871_v45  ;;  %5127 = vmatpush.bf16.msrb.mxu3 %v8511_v0  ;;  %v8060_v58 = vld [vmem:[#allocation8 + $0x470] sm:$0xf0]  ;;  %v9208_v45 = vld [vmem:[#allocation8 + $0x134] sm:$0xf0] }
 0x388   :  { %v9379_v32 = vld [vmem:[#allocation8 + $0x694] sm:$0xf]  ;;  %v7938_v0 = vld [vmem:[#allocation8 + $0x358] sm:$0xf]  ;;  %v8063_v3 = vor.u32 %v9307_v40, %v8060_v58  ;;  %v7651_v6 = vor.u32 %v9208_v45, %v7650_v59 }
 0x389   :  { %5094 = vmatpush.bf16.msrb.mxu0 %v7551_v7  ;;  %5116 = vmatpush.bf16.msrb.mxu2 %v8191_v37  ;;  %v8348_v61 = vld [vmem:[#allocation8 + $0x6b0] sm:$0xf0]  ;;  %v7618_v37 = vld [vmem:[#allocation8 + $0xd8] sm:$0xf]  ;;  %v7939_v13 = vor.u32 %v9280_v1, %v7938_v0  ;;  %v9228_v0 = vld [vmem:[#allocation8 + $0x1dc] sm:$0xf] }
 0x38a   :  { %v9299_v5 = vld [vmem:[#allocation8 + $0x414] sm:$0xf]  ;;  %v8351_v7 = vor.u32 %v9379_v32, %v8348_v61  ;;  %v7842_v57 = vld [vmem:[#allocation8 + $0x298] sm:$0xf]  ;;  %v7748_v1 = vld [vmem:[#allocation8 + $0x1f8] sm:$0xf0] }
 0x38b   :  { %5106 = vmatpush.bf16.msrb.mxu1 %v7839_v12  ;;  %5128 = vmatpush.bf16.msrb.mxu3 %v8479_v17  ;;  %v8028_v8 = vld [vmem:[#allocation8 + $0x430] sm:$0xf0]  ;;  %v9200_v12 = vld [vmem:[#allocation8 + $0xf4] sm:$0xf0]  ;;  %v7843_v59 = vor.u32 %v9256_v10, %v7842_v57  ;;  %v7652_v10 = vld [vmem:[#allocation8 + $0x138] sm:$0xf0] }
 0x38c   :  { %v9371_v17 = vld [vmem:[#allocation8 + $0x654] sm:$0xf]  ;;  %v8031_v25 = vor.u32 %v9299_v5, %v8028_v8  ;;  %v8482_v26 = vld [vmem:[#allocation8 + $0x798] sm:$0xf] }
 0x38d   :  { %5095 = vmatpush.bf16.msrb.mxu0 %v7519_v63  ;;  %5117 = vmatpush.bf16.msrb.mxu2 %v8159_v27  ;;  %v4837_v62 = vpop.f32.mrf.mxu0  ;;  %v8316_v20 = vld [vmem:[#allocation8 + $0x670] sm:$0xf0]  ;;  %v7619_v63 = vor.u32 %v9200_v12, %v7618_v37  ;;  %v8259_v27 = vor.u32 %v9360_v15, %v8258_v36  ;;  %v7522_v40 = vld [vmem:[#allocation8 + $0x18] sm:$0xf]  ;;  %v7751_v37 = vor.u32 %v9228_v0, %v7748_v1  ;;  %v9196_v1 = vld [vmem:[#allocation8 + $0xdc] sm:$0xf] }
 0x38e   :  { %v4838_v47 = vadd.f32 %v4837_v62, %v3532_v2  ;;  %v9363_v16 = vld [vmem:[#allocation8 + $0x614] sm:$0xf]  ;;  %v8162_v45 = vld [vmem:[#allocation8 + $0x518] sm:$0xf] }
 0x38f   :  { %5107 = vmatpush.bf16.msrb.mxu1 %v7807_v29  ;;  %5129 = vmatpush.bf16.msrb.mxu3 %v8447_v51  ;;  %v8319_v29 = vor.u32 %v9371_v17, %v8316_v20  ;;  %v7907_v51 = vor.u32 %v9272_v23, %v7906_v22  ;;  %v8284_v35 = vld [vmem:[#allocation8 + $0x630] sm:$0xf0]  ;;  %v9336_v32 = vld [vmem:[#allocation8 + $0x534] sm:$0xf0]  ;;  %v9220_v17 = vld [vmem:[#allocation8 + $0x19c] sm:$0xf] }
 0x390   :  { %5096 = vmatmul.bf16.vlgmr.msrb.gmra.mxu0 %v10276_v14  ;;  %v7810_v2 = vld [vmem:[#allocation8 + $0x258] sm:$0xf]  ;;  %v8163_v8 = vor.u32 %v9336_v32, %v8162_v45  ;;  %v7716_v20 = vld [vmem:[#allocation8 + $0x1b8] sm:$0xf0] }
 0x391   :  { %5140 = vmatpush.bf16.msra.mxu0 %v7747_v28  ;;  %5118 = vmatpush.bf16.msrb.mxu2 %v8127_v43  ;;  %v7586_v28 = vld [vmem:[#allocation8 + $0x98] sm:$0xf] }
 0x392   :  { %v9424_v43 = vld [vmem:[#allocation8 + $0x7f4] sm:$0xf0] }
 0x393   :  { %5108 = vmatpush.bf16.msrb.mxu1 %v7775_v44  ;;  %5130 = vmatpush.bf16.msrb.mxu3 %v8415_v46  ;;  %v4850_v24 = vpop.f32.mrf.mxu1  ;;  %v8227_v44 = vor.u32 %v9352_v31, %v8226_v11  ;;  %v8287_v46 = vor.u32 %v9363_v16, %v8284_v35  ;;  %v8515_v4 = vor.u32 %v9424_v43, %v8514_v42  ;;  %v8450_v5 = vld [vmem:[#allocation8 + $0x758] sm:$0xf]  ;;  %v9212_v35 = vld [vmem:[#allocation8 + $0x15c] sm:$0xf] }
 0x394   :  { %v10314_v18 = vadd.f32 %v4850_v24, %v4838_v47  ;;  %v8130_v12 = vld [vmem:[#allocation8 + $0x4d8] sm:$0xf] }
 0x395   :  { %5141 = vmatpush.bf16.msra.mxu0 %v7715_v34  ;;  %5119 = vmatpush.bf16.msrb.mxu2 %v8095_v41  ;;  %v4839_v33 = vpop.f32.mrf.mxu0  ;;  %v7587_v34 = vor.u32 %v9192_v53, %v7586_v28  ;;  %v9416_v41 = vld [vmem:[#allocation8 + $0x7b4] sm:$0xf0]  ;;  %v8004_v28 = vld [vmem:[#allocation8 + $0x3f8] sm:$0xf0] }
 0x396   :  { %5109 = vmatmul.bf16.vlgmr.msrb.gmra.mxu1 %v10280_v30  ;;  %v8483_v62 = vor.u32 %v9416_v41, %v8482_v26  ;;  %v7778_v22 = vld [vmem:[#allocation8 + $0x218] sm:$0xf] }
 0x397   :  { %5153 = vmatpush.bf16.msra.mxu1 %v8003_v52  ;;  %5131 = vmatpush.bf16.msrb.mxu3 %v8383_v39  ;;  %v8194_v52 = vld [vmem:[#allocation8 + $0x558] sm:$0xf]  ;;  %v7555_v39 = vor.u32 %v9184_v50, %v7554_v49  ;;  %v7687_v49 = vor.u32 %v9212_v35, %v7684_v55 }
 0x398   :  { %v8195_v58 = vor.u32 %v9344_v56, %v8194_v52  ;;  %v9240_v23 = vld [vmem:[#allocation8 + $0x234] sm:$0xf0]  ;;  %v9204_v56 = vld [vmem:[#allocation8 + $0x11c] sm:$0xf] }
 0x399   :  { %5142 = vmatpush.bf16.msra.mxu0 %v7683_v21  ;;  %5120 = vmatpush.bf16.msrb.mxu2 %v8063_v3  ;;  %v9248_v3 = vld [vmem:[#allocation8 + $0x274] sm:$0xf0]  ;;  %v7779_v11 = vor.u32 %v9240_v23, %v7778_v22  ;;  %v7655_v32 = vor.u32 %v9204_v56, %v7652_v10  ;;  %v7588_v22 = vld [vmem:[#allocation8 + $0xb8] sm:$0xf0] }
 0x39a   :  { %v7811_v36 = vor.u32 %v9248_v3, %v7810_v2  ;;  %v8418_v47 = vld [vmem:[#allocation8 + $0x718] sm:$0xf]  ;;  %v7620_v2 = vld [vmem:[#allocation8 + $0xf8] sm:$0xf0] }
 0x39b   :  { %5154 = vmatpush.bf16.msra.mxu1 %v7971_v60  ;;  %5132 = vmatpush.bf16.msrb.mxu3 %v8351_v7  ;;  %v4852_v21 = vpop.f32.mrf.mxu1  ;;  %v9176_v60 = vld [vmem:[#allocation8 + $0x34] sm:$0xf0]  ;;  %v9412_v56 = vld [vmem:[#allocation8 + $0x79c] sm:$0xf] }
 0x39c   :  { %v7523_v7 = vor.u32 %v9176_v60, %v7522_v40  ;;  %v8098_v16 = vld [vmem:[#allocation8 + $0x498] sm:$0xf]  ;;  %v9276_v40 = vld [vmem:[#allocation8 + $0x35c] sm:$0xf] }
 0x39d   :  { %5143 = vmatpush.bf16.msra.mxu0 %v7651_v6  ;;  %5121 = vmatpush.bf16.msrb.mxu2 %v8031_v25  ;;  %v10317_v61 = vpop.f32.mrf.mxu0  ;;  %v9408_v6 = vld [vmem:[#allocation8 + $0x774] sm:$0xf0] }
 0x39e   :  { %v8451_v15 = vor.u32 %v9408_v6, %v8450_v5  ;;  %v9400_v25 = vld [vmem:[#allocation8 + $0x734] sm:$0xf0]  ;;  %v9356_v5 = vld [vmem:[#allocation8 + $0x5dc] sm:$0xf] }
 0x39f   :  { %5155 = vmatpush.bf16.msra.mxu1 %v7939_v13  ;;  %5133 = vmatpush.bf16.msrb.mxu3 %v8319_v29  ;;  %v9328_v13 = vld [vmem:[#allocation8 + $0x4f4] sm:$0xf0]  ;;  %v7719_v29 = vor.u32 %v9220_v17, %v7716_v20  ;;  %v8419_v31 = vor.u32 %v9400_v25, %v8418_v47  ;;  %v8260_v6 = vld [vmem:[#allocation8 + $0x5f8] sm:$0xf0] }
 0x3a0   :  { %5122 = vmatmul.bf16.vlgmr.msrb.gmra.mxu2 %v10284_v9  ;;  %v8131_v53 = vor.u32 %v9328_v13, %v8130_v12  ;;  %v9320_v33 = vld [vmem:[#allocation8 + $0x4b4] sm:$0xf0]  ;;  %v7908_v12 = vld [vmem:[#allocation8 + $0x338] sm:$0xf0]  ;;  %v8263_v17 = vor.u32 %v9356_v5, %v8260_v6 }
 0x3a1   :  { %5144 = vmatpush.bf16.msra.mxu0 %v7619_v63  ;;  %5166 = vmatpush.bf16.msra.mxu2 %v8259_v27  ;;  %v9292_v27 = vld [vmem:[#allocation8 + $0x3dc] sm:$0xf]  ;;  %v8386_v42 = vld [vmem:[#allocation8 + $0x6d8] sm:$0xf] }
 0x3a2   :  { %v8007_v38 = vor.u32 %v9292_v27, %v8004_v28  ;;  %v9392_v43 = vld [vmem:[#allocation8 + $0x6f4] sm:$0xf0]  ;;  %v9188_v20 = vld [vmem:[#allocation8 + $0x9c] sm:$0xf] }
 0x3a3   :  { %5156 = vmatpush.bf16.msra.mxu1 %v7907_v51  ;;  %5134 = vmatpush.bf16.msrb.mxu3 %v8287_v46  ;;  %v10320_v24 = vpop.f32.mrf.mxu2  ;;  %v10322_v63 = vpop.f32.mrf.mxu1  ;;  %v8099_v46 = vor.u32 %v9320_v33, %v8098_v16  ;;  %v8387_v50 = vor.u32 %v9392_v43, %v8386_v42  ;;  %v8066_v52 = vld [vmem:[#allocation8 + $0x458] sm:$0xf]  ;;  %v9348_v25 = vld [vmem:[#allocation8 + $0x59c] sm:$0xf] }
 0x3a4   :  { %v8354_v26 = vld [vmem:[#allocation8 + $0x698] sm:$0xf]  ;;  %v8228_v27 = vld [vmem:[#allocation8 + $0x5b8] sm:$0xf0] }
 0x3a5   :  { %5145 = vmatpush.bf16.msra.mxu0 %v7587_v34  ;;  %5167 = vmatpush.bf16.msra.mxu2 %v8227_v44  ;;  %v4891_v51 = vpop.f32.mrf.mxu0  ;;  %v9284_v34 = vld [vmem:[#allocation8 + $0x39c] sm:$0xf]  ;;  %v9384_v41 = vld [vmem:[#allocation8 + $0x6b4] sm:$0xf0]  ;;  %v8231_v55 = vor.u32 %v9348_v25, %v8228_v27 }
 0x3a6   :  { %5135 = vmatmul.bf16.vlgmr.msrb.gmra.mxu3 %v10288_v19  ;;  %v7972_v44 = vld [vmem:[#allocation8 + $0x3b8] sm:$0xf0]  ;;  %v8034_v60 = vld [vmem:[#allocation8 + $0x418] sm:$0xf] }
 0x3a7   :  { %5157 = vmatpush.bf16.msra.mxu1 %v7875_v48  ;;  %5179 = vmatpush.bf16.msra.mxu3 %v8515_v4  ;;  %v9312_v4 = vld [vmem:[#allocation8 + $0x474] sm:$0xf0]  ;;  %v7975_v57 = vor.u32 %v9284_v34, %v7972_v44  ;;  %v9260_v51 = vld [vmem:[#allocation8 + $0x2dc] sm:$0xf] }
 0x3a8   :  { %v9304_v0 = vld [vmem:[#allocation8 + $0x434] sm:$0xf0]  ;;  %v9420_v16 = vld [vmem:[#allocation8 + $0x7dc] sm:$0xf] }
 0x3a9   :  { %5146 = vmatpush.bf16.msra.mxu0 %v7555_v39  ;;  %5168 = vmatpush.bf16.msra.mxu2 %v8195_v58  ;;  %v10325_v48 = vpop.f32.mrf.mxu3  ;;  %v7940_v58 = vld [vmem:[#allocation8 + $0x378] sm:$0xf0]  ;;  %v8035_v13 = vor.u32 %v9304_v0, %v8034_v60  ;;  %v8290_v28 = vld [vmem:[#allocation8 + $0x618] sm:$0xf] }
 0x3aa   :  { %v7943_v3 = vor.u32 %v9276_v40, %v7940_v58  ;;  %v8516_v33 = vld [vmem:[#allocation8 + $0x7f8] sm:$0xf0] }
 0x3ab   :  { %5158 = vmatpush.bf16.msra.mxu1 %v7843_v59  ;;  %5180 = vmatpush.bf16.msra.mxu3 %v8483_v62  ;;  %v4865_v21 = vpop.f32.mrf.mxu2  ;;  %v4904_v39 = vpop.f32.mrf.mxu1  ;;  %v8067_v59 = vor.u32 %v9312_v4, %v8066_v52  ;;  %v8355_v62 = vor.u32 %v9384_v41, %v8354_v26  ;;  %v9180_v34 = vld [vmem:[#allocation8 + $0x5c] sm:$0xf] }
 0x3ac   :  { %v7556_v44 = vld [vmem:[#allocation8 + $0x78] sm:$0xf0] }
 0x3ad   :  { %5147 = vmatpush.bf16.msra.mxu0 %v7523_v7  ;;  %5169 = vmatpush.bf16.msra.mxu2 %v8163_v8  ;;  %v10328_v45 = vpop.f32.mrf.mxu0  ;;  %v8322_v7 = vld [vmem:[#allocation8 + $0x658] sm:$0xf]  ;;  %v9252_v52 = vld [vmem:[#allocation8 + $0x29c] sm:$0xf]  ;;  %v7559_v26 = vor.u32 %v9180_v34, %v7556_v44 }
 0x3ae   :  { %v9376_v8 = vld [vmem:[#allocation8 + $0x674] sm:$0xf0]  ;;  %v7844_v4 = vld [vmem:[#allocation8 + $0x2b8] sm:$0xf0] }
 0x3af   :  { %5159 = vmatpush.bf16.msra.mxu1 %v7811_v36  ;;  %5181 = vmatpush.bf16.msra.mxu3 %v8451_v15  ;;  %v7623_v15 = vor.u32 %v9196_v1, %v7620_v2  ;;  %v8323_v23 = vor.u32 %v9376_v8, %v8322_v7  ;;  %v7847_v21 = vor.u32 %v9252_v52, %v7844_v4  ;;  %v9172_v39 = vld [vmem:[#allocation8 + $0x1c] sm:$0xf]  ;;  %v9429_v52 = vld [vmem:[%s10581_s11 + $0x20] sm:$0xff] }
 0x3b0   :  { %5148 = vmatmul.bf16.vlgmr.msra.gmra.mxu0 %v10276_v14  ;;  %v7524_v40 = vld [vmem:[#allocation8 + $0x38] sm:$0xf0] }
 0x3b1   :  { %5192 = vmatpush.bf16.msrb.mxu0 %v7751_v37  ;;  %5170 = vmatpush.bf16.msra.mxu2 %v8131_v53  ;;  %v9268_v37 = vld [vmem:[#allocation8 + $0x31c] sm:$0xf]  ;;  %v4878_v36 = vpop.f32.mrf.mxu3  ;;  %v7527_v5 = vor.u32 %v9172_v39, %v7524_v40 }
 0x3b2   :  { %v7911_v47 = vor.u32 %v9268_v37, %v7908_v12  ;;  %v9332_v60 = vld [vmem:[#allocation8 + $0x51c] sm:$0xf] }
 0x3b3   :  { %5160 = vmatpush.bf16.msra.mxu1 %v7779_v11  ;;  %5182 = vmatpush.bf16.msra.mxu3 %v8419_v31  ;;  %v10330_v53 = vpop.f32.mrf.mxu2  ;;  %v7876_v11 = vld [vmem:[#allocation8 + $0x2f8] sm:$0xf0]  ;;  %v10332_v31 = vpop.f32.mrf.mxu1 }
 0x3b4   :  { %v7879_v43 = vor.u32 %v9260_v51, %v7876_v11  ;;  %v7812_v1 = vld [vmem:[#allocation8 + $0x278] sm:$0xf0] }
 0x3b5   :  { %5193 = vmatpush.bf16.msrb.mxu0 %v7719_v29  ;;  %5171 = vmatpush.bf16.msra.mxu2 %v8099_v46  ;;  %v9368_v29 = vld [vmem:[#allocation8 + $0x634] sm:$0xf0]  ;;  %v4943_v35 = vpop.f32.mrf.mxu0  ;;  %v9340_v46 = vld [vmem:[#allocation8 + $0x55c] sm:$0xf] }
 0x3b6   :  { %5161 = vmatmul.bf16.vlgmr.msra.gmra.mxu1 %v10280_v30  ;;  %v8291_v42 = vor.u32 %v9368_v29, %v8290_v28  ;;  %v9404_v2 = vld [vmem:[#allocation8 + $0x75c] sm:$0xf] }
 0x3b7   :  { %5205 = vmatpush.bf16.msrb.mxu1 %v8007_v38  ;;  %5183 = vmatpush.bf16.msra.mxu3 %v8387_v50  ;;  %v7591_v38 = vor.u32 %v9188_v20, %v7588_v22  ;;  %v8196_v50 = vld [vmem:[#allocation8 + $0x578] sm:$0xf0] }
 0x3b8   :  { %v8199_v41 = vor.u32 %v9340_v46, %v8196_v50  ;;  %v9432_v7 = vld [vmem:[%s10581_s11 + $0x38] sm:$0xff] }
 0x3b9   :  { %5194 = vmatpush.bf16.msrb.mxu0 %v7687_v49  ;;  %5172 = vmatpush.bf16.msra.mxu2 %v8067_v59  ;;  %v8519_v49 = vor.u32 %v9420_v16, %v8516_v33  ;;  %v10335_v10 = vpop.f32.mrf.mxu3  ;;  %v9324_v12 = vld [vmem:[#allocation8 + $0x4dc] sm:$0xf] }
 0x3ba   :  { %v9236_v36 = vld [vmem:[#allocation8 + $0x21c] sm:$0xf] }
 0x3bb   :  { %5206 = vmatpush.bf16.msrb.mxu1 %v7975_v57  ;;  %5184 = vmatpush.bf16.msra.mxu3 %v8355_v62  ;;  %v8484_v57 = vld [vmem:[#allocation8 + $0x7b8] sm:$0xf0]  ;;  %v4917_v58 = vpop.f32.mrf.mxu2  ;;  %v4956_v0 = vpop.f32.mrf.mxu1 }
 0x3bc   :  { %v8487_v59 = vor.u32 %v9412_v56, %v8484_v57  ;;  %v9244_v62 = vld [vmem:[#allocation8 + $0x25c] sm:$0xf] }
 0x3bd   :  { %5195 = vmatpush.bf16.msrb.mxu0 %v7655_v32  ;;  %5173 = vmatpush.bf16.msra.mxu2 %v8035_v13  ;;  %v8164_v32 = vld [vmem:[#allocation8 + $0x538] sm:$0xf0]  ;;  %v7815_v8 = vor.u32 %v9244_v62, %v7812_v1 }
 0x3be   :  { %v8167_v6 = vor.u32 %v9332_v60, %v8164_v32  ;;  %v8132_v13 = vld [vmem:[#allocation8 + $0x4f8] sm:$0xf0]  ;;  %v9437_v32 = vld [vmem:[%s10581_s11 + $0x60] sm:$0xff] }
 0x3bf   :  { %5207 = vmatpush.bf16.msrb.mxu1 %v7943_v3  ;;  %5185 = vmatpush.bf16.msra.mxu3 %v8323_v23  ;;  %v8452_v3 = vld [vmem:[#allocation8 + $0x778] sm:$0xf0]  ;;  %v8135_v23 = vor.u32 %v9324_v12, %v8132_v13  ;;  %v4864_v12 = vadd.f32 %v10320_v24, %v10314_v18  ;;  %v9435_v18 = vld [vmem:[%s10581_s11 + $0x50] sm:$0xff] }
 0x3c0   :  { %5174 = vmatmul.bf16.vlgmr.msra.gmra.mxu2 %v10284_v9  ;;  %v8455_v37 = vor.u32 %v9404_v2, %v8452_v3  ;;  %v8420_v20 = vld [vmem:[#allocation8 + $0x738] sm:$0xf0]  ;;  %v3533_v3 = vperm.slane %v10310_v54, 1  ;;  %v9455_v24 = vld [vmem:[%s10581_s11 + $0xf0] sm:$0xff] }
 0x3c1   :  { %5196 = vmatpush.bf16.msrb.mxu0 %v7623_v15  ;;  %5218 = vmatpush.bf16.msrb.mxu2 %v8263_v17  ;;  %v7780_v15 = vld [vmem:[#allocation8 + $0x238] sm:$0xf0]  ;;  %v4930_v22 = vpop.f32.mrf.mxu3 }
 0x3c2   :  { %v9396_v17 = vld [vmem:[#allocation8 + $0x71c] sm:$0xf]  ;;  %v7783_v27 = vor.u32 %v9236_v36, %v7780_v15  ;;  %v4890_v13 = vadd.f32 %v10317_v61, %v3533_v3  ;;  %v9426_v36 = vld [vmem:[%s10581_s11 + $0x8] sm:$0xff]  ;;  %v4877_v15 = vadd.f32 %v10325_v48, %v4864_v12  ;;  %v9457_v12 = vld [vmem:[%s10581_s11 + $0x100] sm:$0xff] }
 0x3c3   :  { %5208 = vmatpush.bf16.msrb.mxu1 %v7911_v47  ;;  %5186 = vmatpush.bf16.msra.mxu3 %v8291_v42  ;;  %v9431_v47 = vld [vmem:[%s10581_s11 + $0x30] sm:$0xff]  ;;  %v10344_v25 = vpop.f32.mrf.mxu2  ;;  %v8423_v28 = vor.u32 %v9396_v17, %v8420_v20  ;;  %v9316_v29 = vld [vmem:[#allocation8 + $0x49c] sm:$0xf]  ;;  %v9425_v20 = vld [vmem:[%s10581_s11] sm:$0xff] }
 0x3c4   :  { %v8100_v51 = vld [vmem:[#allocation8 + $0x4b8] sm:$0xf0]  ;;  %v4903_v61 = vadd.f32 %v10322_v63, %v4890_v13  ;;  %v5244_v22 = vmax.f32 %v4877_v15, 0.0  ;;  %v9445_v63 = vld [vmem:[%s10581_s11 + $0xa0] sm:$0xff]  ;;  %v3536_v13 = vperm.slane %v10310_v54, 4 }
 0x3c5   :  { %5197 = vmatpush.bf16.msrb.mxu0 %v7591_v38  ;;  %5219 = vmatpush.bf16.msrb.mxu2 %v8231_v55  ;;  %v9440_v11 = vld [vmem:[%s10581_s11 + $0x78] sm:$0xff]  ;;  %v8103_v35 = vor.u32 %v9316_v29, %v8100_v51  ;;  %v9430_v38 = vld [vmem:[%s10581_s11 + $0x28] sm:$0xff]  ;;  %v9433_v51 = vld [vmem:[%s10581_s11 + $0x40] sm:$0xff] }
 0x3c6   :  { %5187 = vmatmul.bf16.vlgmr.msra.gmra.mxu3 %v10288_v19  ;;  %v9388_v16 = vld [vmem:[#allocation8 + $0x6dc] sm:$0xf]  ;;  %v4916_v48 = vadd.f32 %v10330_v53, %v4903_v61  ;;  %v9466_v61 = vld [vmem:[%s10581_s11 + $0x148] sm:$0xff] }
 0x3c7   :  { %5209 = vmatpush.bf16.msrb.mxu1 %v7879_v43  ;;  %5231 = vmatpush.bf16.msrb.mxu3 %v8519_v49  ;;  %v8388_v33 = vld [vmem:[#allocation8 + $0x6f8] sm:$0xf0] }
 0x3c8   :  { %v8391_v55 = vor.u32 %v9388_v16, %v8388_v33  ;;  %v9308_v42 = vld [vmem:[#allocation8 + $0x45c] sm:$0xf]  ;;  %v4929_v53 = vadd.f32 %v10335_v10, %v4916_v48  ;;  %v9453_v16 = vld [vmem:[%s10581_s11 + $0xe0] sm:$0xff]  ;;  %v9463_v33 = vld [vmem:[%s10581_s11 + $0x130] sm:$0xff] }
 0x3c9   :  { %5198 = vmatpush.bf16.msrb.mxu0 %v7559_v26  ;;  %5220 = vmatpush.bf16.msrb.mxu2 %v8199_v41  ;;  %v8068_v43 = vld [vmem:[#allocation8 + $0x478] sm:$0xf0]  ;;  %v10357_v46 = vpop.f32.mrf.mxu3 }
 0x3ca   :  { %v9380_v34 = vld [vmem:[#allocation8 + $0x69c] sm:$0xf]  ;;  %v8071_v50 = vor.u32 %v9308_v42, %v8068_v43 }
 0x3cb   :  { %5210 = vmatpush.bf16.msrb.mxu1 %v7847_v21  ;;  %5232 = vmatpush.bf16.msrb.mxu3 %v8487_v59  ;;  %v8356_v44 = vld [vmem:[#allocation8 + $0x6b8] sm:$0xf0]  ;;  %v4969_v4 = vpop.f32.mrf.mxu2 }
 0x3cc   :  { %v8359_v56 = vor.u32 %v9380_v34, %v8356_v44  ;;  %v9300_v57 = vld [vmem:[#allocation8 + $0x41c] sm:$0xf] }
 0x3cd   :  { %5199 = vmatpush.bf16.msrb.mxu0 %v7527_v5  ;;  %5221 = vmatpush.bf16.msrb.mxu2 %v8167_v6  ;;  %v10359_v49 = vpop.f32.mrf.mxu0  ;;  %v8036_v26 = vld [vmem:[#allocation8 + $0x438] sm:$0xf0]  ;;  %v9427_v5 = vld [vmem:[%s10581_s11 + $0x10] sm:$0xff] }
 0x3ce   :  { %v9372_v41 = vld [vmem:[#allocation8 + $0x65c] sm:$0xf]  ;;  %v8039_v39 = vor.u32 %v9300_v57, %v8036_v26  ;;  %v9447_v6 = vld [vmem:[%s10581_s11 + $0xb0] sm:$0xff] }
 0x3cf   :  { %5211 = vmatpush.bf16.msrb.mxu1 %v7815_v8  ;;  %5233 = vmatpush.bf16.msrb.mxu3 %v8455_v37  ;;  %v8324_v21 = vld [vmem:[#allocation8 + $0x678] sm:$0xf0]  ;;  %v9451_v57 = vld [vmem:[%s10581_s11 + $0xd0] sm:$0xff] }
 0x3d0   :  { %5200 = vmatmul.bf16.vlgmr.msrb.gmra.mxu0 %v10276_v14  ;;  %v9439_v14 = vld [vmem:[%s10581_s11 + $0x70] sm:$0xff]  ;;  %v9428_v40 = vld [vmem:[%s10581_s11 + $0x18] sm:$0xff]  ;;  %v8327_v60 = vor.u32 %v9372_v41, %v8324_v21 }
 0x3d1   :  { %5776 = vmatpush.bf16.msra.mxu0 %v9432_v7  ;;  %5222 = vmatpush.bf16.msrb.mxu2 %v8135_v23  ;;  %v9448_v58 = vld [vmem:[%s10581_s11 + $0xb8] sm:$0xff]  ;;  %v4982_v1 = vpop.f32.mrf.mxu3  ;;  %v9434_v23 = vld [vmem:[%s10581_s11 + $0x48] sm:$0xff] }
 0x3d2   :  { %v9364_v62 = vld [vmem:[#allocation8 + $0x61c] sm:$0xf]  ;;  %v9449_v1 = vld [vmem:[%s10581_s11 + $0xc0] sm:$0xff] }
 0x3d3   :  { %5212 = vmatpush.bf16.msrb.mxu1 %v7783_v27  ;;  %5234 = vmatpush.bf16.msrb.mxu3 %v8423_v28  ;;  %v10373_v59 = vpop.f32.mrf.mxu1  ;;  %v8292_v0 = vld [vmem:[#allocation8 + $0x638] sm:$0xf0]  ;;  %v3534_v27 = vperm.slane %v10310_v54, 2  ;;  %v5252_v28 = vpack.c.bf16 %v5244_v22, %v5244_v22 }
 0x3d4   :  { %v8295_v7 = vor.u32 %v9364_v62, %v8292_v0  ;;  %v9436_v8 = vld [vmem:[%s10581_s11 + $0x58] sm:$0xff]  ;;  %v9470_v62 = vld [vmem:[%s10581_s11 + $0x168] sm:$0xff] }
 0x3d5   :  { %5777 = vmatpush.bf16.msra.mxu0 %v9431_v47  ;;  %5223 = vmatpush.bf16.msrb.mxu2 %v8103_v35  ;;  %v4995_v2 = vpop.f32.mrf.mxu0  ;;  %v9456_v37 = vld [vmem:[%s10581_s11 + $0xf8] sm:$0xff]  ;;  %v4942_v35 = vadd.f32 %v10328_v45, %v3534_v27  ;;  %v9462_v45 = vld [vmem:[%s10581_s11 + $0x128] sm:$0xff]  ;;  %v9479_v27 = vld [vmem:[%s10581_s11 + $0x1b0] sm:$0xff] }
 0x3d6   :  { %5213 = vmatmul.bf16.vlgmr.msrb.gmra.mxu1 %v10280_v30  ;;  %v9438_v30 = vld [vmem:[%s10581_s11 + $0x68] sm:$0xff]  ;;  %v9464_v47 = vld [vmem:[%s10581_s11 + $0x138] sm:$0xff]  ;;  %v9459_v2 = vld [vmem:[%s10581_s11 + $0x110] sm:$0xff] }
 0x3d7   :  { %5789 = vmatpush.bf16.msra.mxu1 %v9440_v11  ;;  %5235 = vmatpush.bf16.msrb.mxu3 %v8391_v55  ;;  %v9444_v29 = vld [vmem:[%s10581_s11 + $0x98] sm:$0xff]  ;;  %v5245_v11 = vmax.f32 %v4929_v53, 0.0  ;;  %v9443_v55 = vld [vmem:[%s10581_s11 + $0x90] sm:$0xff]  ;;  %v4955_v42 = vadd.f32 %v10332_v31, %v4942_v35  ;;  %v9442_v31 = vld [vmem:[%s10581_s11 + $0x88] sm:$0xff] }
 0x3d8   :  { %v9480_v53 = vld [vmem:[%s10581_s11 + $0x1b8] sm:$0xff]  ;;  %v9475_v35 = vld [vmem:[%s10581_s11 + $0x190] sm:$0xff] }
 0x3d9   :  { %5778 = vmatpush.bf16.msra.mxu0 %v9430_v38  ;;  %5224 = vmatpush.bf16.msrb.mxu2 %v8071_v50  ;;  %v3535_v38 = vperm.slane %v10310_v54, 3  ;;  %v5253_v43 = vpack.c.bf16 %v5245_v11, %v5245_v11  ;;  %v4968_v44 = vadd.f32 %v10344_v25, %v4955_v42  ;;  %v9461_v25 = vld [vmem:[%s10581_s11 + $0x120] sm:$0xff] }
 0x3db   :  { %5790 = vmatpush.bf16.msra.mxu1 %v9439_v14  ;;  %5236 = vmatpush.bf16.msrb.mxu3 %v8359_v56  ;;  %v5008_v17 = vpop.f32.mrf.mxu1  ;;  %v9452_v14 = vld [vmem:[%s10581_s11 + $0xd8] sm:$0xff]  ;;  %v4981_v56 = vadd.f32 %v10357_v46, %v4968_v44  ;;  %v9441_v46 = vld [vmem:[%s10581_s11 + $0x80] sm:$0xff] }
 0x3dd   :  { %5779 = vmatpush.bf16.msra.mxu0 %v9429_v52  ;;  %5225 = vmatpush.bf16.msrb.mxu2 %v8039_v39  ;;  %v4994_v52 = vadd.f32 %v10359_v49, %v3535_v38  ;;  %v9472_v49 = vld [vmem:[%s10581_s11 + $0x178] sm:$0xff]  ;;  %v5246_v41 = vmax.f32 %v4981_v56, 0.0  ;;  %v9450_v39 = vld [vmem:[%s10581_s11 + $0xc8] sm:$0xff] }
 0x3df   :  { %5791 = vmatpush.bf16.msra.mxu1 %v9438_v30  ;;  %5237 = vmatpush.bf16.msrb.mxu3 %v8327_v60  ;;  %v5007_v26 = vadd.f32 %v10373_v59, %v4994_v52  ;;  %v5254_v0 = vpack.c.bf16 %v5246_v41, %v5246_v41  ;;  %v9473_v52 = vld [vmem:[%s10581_s11 + $0x180] sm:$0xff] }
 0x3e0   :  { %5226 = vmatmul.bf16.vlgmr.msrb.gmra.mxu2 %v10284_v9  ;;  %v9446_v9 = vld [vmem:[%s10581_s11 + $0xa8] sm:$0xff] }
 0x3e1   :  { %5780 = vmatpush.bf16.msra.mxu0 %v9428_v40  ;;  %5802 = vmatpush.bf16.msra.mxu2 %v9448_v58  ;;  %v9460_v40 = vld [vmem:[%s10581_s11 + $0x118] sm:$0xff]  ;;  %v9471_v58 = vld [vmem:[%s10581_s11 + $0x170] sm:$0xff] }
 0x3e3   :  { %5792 = vmatpush.bf16.msra.mxu1 %v9437_v32  ;;  %5238 = vmatpush.bf16.msrb.mxu3 %v8295_v7  ;;  %v5019_v10 = vpop.f32.mrf.mxu2  ;;  %v9458_v7 = vld [vmem:[%s10581_s11 + $0x108] sm:$0xff] }
 0x3e4   :  { %v5020_v30 = vadd.f32 %v5019_v10, %v5007_v26  ;;  %v9478_v10 = vld [vmem:[%s10581_s11 + $0x1a8] sm:$0xff] }
 0x3e5   :  { %5781 = vmatpush.bf16.msra.mxu0 %v9427_v5  ;;  %5803 = vmatpush.bf16.msra.mxu2 %v9447_v6  ;;  %v9469_v5 = vld [vmem:[%s10581_s11 + $0x160] sm:$0xff] }
 0x3e6   :  { %5239 = vmatmul.bf16.vlgmr.msrb.gmra.mxu3 %v10288_v19  ;;  %v9454_v19 = vld [vmem:[%s10581_s11 + $0xe8] sm:$0xff] }
 0x3e7   :  { %5793 = vmatpush.bf16.msra.mxu1 %v9436_v8  ;;  %5815 = vmatpush.bf16.msra.mxu3 %v9456_v37  ;;  %v9468_v37 = vld [vmem:[%s10581_s11 + $0x158] sm:$0xff] }
 0x3e9   :  { %5782 = vmatpush.bf16.msra.mxu0 %v9426_v36  ;;  %5804 = vmatpush.bf16.msra.mxu2 %v9446_v9  ;;  %v5032_v34 = vpop.f32.mrf.mxu3  ;;  %v9467_v36 = vld [vmem:[%s10581_s11 + $0x150] sm:$0xff] }
 0x3ea   :  { %v5033_v59 = vadd.f32 %v5032_v34, %v5020_v30  ;;  %v9486_v30 = vld [vmem:[%s10581_s11 + $0x1e8] sm:$0xff] }
 0x3eb   :  { %5794 = vmatpush.bf16.msra.mxu1 %v9435_v18  ;;  %5816 = vmatpush.bf16.msra.mxu3 %v9455_v24  ;;  %v5021_v4 = vpop.f32.mrf.mxu2 }
 0x3ec   :  { %v5247_v3 = vmax.f32 %v5033_v59, 0.0  ;;  %v9488_v4 = vld [vmem:[%s10581_s11 + $0x1f8] sm:$0xff] }
 0x3ed   :  { %5783 = vmatpush.bf16.msra.mxu0 %v9425_v20  ;;  %5805 = vmatpush.bf16.msra.mxu2 %v9445_v63  ;;  %v5045_v50 = vpop.f32.mrf.mxu0 }
 0x3ee   :  { %v5255_v8 = vpack.c.bf16 %v5247_v3, %v5247_v3  ;;  %v5046_v9 = vadd.f32 %v5045_v50, %v3536_v13  ;;  %v9503_v13 = vld [vmem:[%s10580_s10] sm:$0xff]  ;;  %s9640_s10 = smov [#allocation10]  }
 0x3ef   :  { %5795 = vmatpush.bf16.msra.mxu1 %v9434_v23  ;;  %5817 = vmatpush.bf16.msra.mxu3 %v9454_v19  ;;  %v9465_v23 = vld [vmem:[%s10581_s11 + $0x140] sm:$0xff] }
 0x3f0   :  { %5784 = vmatmul.bf16.vlgmr.msra.gmra.mxu0 %v5252_v28 }
 0x3f1   :  { %5828 = vmatpush.bf16.msrb.mxu0 %v9464_v47  ;;  %5806 = vmatpush.bf16.msra.mxu2 %v9444_v29  ;;  %v5034_v60 = vpop.f32.mrf.mxu3 }
 0x3f3   :  { %5796 = vmatpush.bf16.msra.mxu1 %v9433_v51  ;;  %5818 = vmatpush.bf16.msra.mxu3 %v9453_v16  ;;  %v5058_v21 = vpop.f32.mrf.mxu1  ;;  %v9477_v51 = vld [vmem:[%s10581_s11 + $0x1a0] sm:$0xff]  ;;  %v9476_v16 = vld [vmem:[%s10581_s11 + $0x198] sm:$0xff] }
 0x3f4   :  { %v5059_v17 = vadd.f32 %v5058_v21, %v5046_v9  ;;  %v9484_v21 = vld [vmem:[%s10581_s11 + $0x1d8] sm:$0xff] }
 0x3f5   :  { %5829 = vmatpush.bf16.msrb.mxu0 %v9463_v33  ;;  %5807 = vmatpush.bf16.msra.mxu2 %v9443_v55  ;;  %v5047_v32 = vpop.f32.mrf.mxu0  ;;  %v3537_v33 = vperm.slane %v10310_v54, 5 }
 0x3f6   :  { %5797 = vmatmul.bf16.vlgmr.msra.gmra.mxu1 %v5253_v43  ;;  %v9474_v43 = vld [vmem:[%s10581_s11 + $0x188] sm:$0xff] }
 0x3f7   :  { %5819 = vmatpush.bf16.msra.mxu3 %v9452_v14  ;;  %5841 = vmatpush.bf16.msrb.mxu1 %v9472_v49  ;;  %v9482_v32 = vld [vmem:[%s10581_s11 + $0x1c8] sm:$0xff] }
 0x3f9   :  { %5830 = vmatpush.bf16.msrb.mxu0 %v9462_v45  ;;  %5808 = vmatpush.bf16.msra.mxu2 %v9442_v31 }
 0x3fb   :  { %5820 = vmatpush.bf16.msra.mxu3 %v9451_v57  ;;  %5842 = vmatpush.bf16.msrb.mxu1 %v9471_v58  ;;  %v5060_v6 = vpop.f32.mrf.mxu1 }
 0x3fd   :  { %5831 = vmatpush.bf16.msrb.mxu0 %v9461_v25  ;;  %5809 = vmatpush.bf16.msra.mxu2 %v9441_v46  ;;  %v9487_v25 = vld [vmem:[%s10581_s11 + $0x1f0] sm:$0xff]  ;;  %v9485_v46 = vld [vmem:[%s10581_s11 + $0x1e0] sm:$0xff] }
 0x3ff   :  { %5821 = vmatpush.bf16.msra.mxu3 %v9450_v39  ;;  %5843 = vmatpush.bf16.msrb.mxu1 %v9470_v62  ;;  %v3538_v39 = vperm.slane %v10310_v54, 6  ;;  %v9481_v54 = vld [vmem:[%s10581_s11 + $0x1c0] sm:$0xff] }
 0x400   :  { %5810 = vmatmul.bf16.vlgmr.msra.gmra.mxu2 %v5254_v0 }
 0x401   :  { %5832 = vmatpush.bf16.msrb.mxu0 %v9460_v40  ;;  %5854 = vmatpush.bf16.msrb.mxu2 %v9480_v53  ;;  %v9483_v40 = vld [vmem:[%s10581_s11 + $0x1d0] sm:$0xff] }
 0x403   :  { %5822 = vmatpush.bf16.msra.mxu3 %v9449_v1  ;;  %5844 = vmatpush.bf16.msrb.mxu1 %v9469_v5  ;;  %v5071_v15 = vpop.f32.mrf.mxu2 }
 0x404   :  { %v5072_v18 = vadd.f32 %v5071_v15, %v5059_v17 }
 0x405   :  { %5833 = vmatpush.bf16.msrb.mxu0 %v9459_v2  ;;  %5855 = vmatpush.bf16.msrb.mxu2 %v9479_v27 }
 0x406   :  { %5823 = vmatmul.bf16.vlgmr.msra.gmra.mxu3 %v5255_v8 }
 0x407   :  { %5845 = vmatpush.bf16.msrb.mxu1 %v9468_v37  ;;  %5867 = vmatpush.bf16.msrb.mxu3 %v9488_v4 }
 0x409   :  { %5834 = vmatpush.bf16.msrb.mxu0 %v9458_v7  ;;  %v5084_v24 = vpop.f32.mrf.mxu3  ;;  %5856 = vmatpush.bf16.msrb.mxu2 %v9478_v10 }
 0x40a   :  { %v5085_v48 = vadd.f32 %v5084_v24, %v5072_v18 }
 0x40b   :  { %5846 = vmatpush.bf16.msrb.mxu1 %v9467_v36  ;;  %v5073_v22 = vpop.f32.mrf.mxu2  ;;  %5868 = vmatpush.bf16.msrb.mxu3 %v9487_v25  ;;  %v3539_v36 = vperm.slane %v9503_v13, 7 }
 0x40c   :  { %v5248_v63 = vmax.f32 %v5085_v48, 0.0  ;;  %v9498_v48 = vld [vmem:[%s10582_s12] ss:$0 sm:$0xff]  ;;  %s5906_s12 = sshll.u32 %s9640_s10, 4  ;;  %s5907_s12 = int_to_ptr.vmem [resolvable:$true] %s5906_s12 }
 0x40d   :  { %5835 = vmatpush.bf16.msrb.mxu0 %v9457_v12  ;;  %v5097_v20 = vpop.f32.mrf.mxu0  ;;  %5857 = vmatpush.bf16.msrb.mxu2 %v9477_v51 }
 0x40e   :  { %v5256_v19 = vpack.c.bf16 %v5248_v63, %v5248_v63  ;;  %v5098_v55 = vadd.f32 %v5097_v20, %v3537_v33 }
 0x40f   :  { %5847 = vmatpush.bf16.msrb.mxu1 %v9466_v61  ;;  %5869 = vmatpush.bf16.msrb.mxu3 %v9486_v30 }
 0x410   :  { %5836 = vmatmul.bf16.vlgmr.msrb.gmra.mxu0 %v5256_v19 }
 0x411   :  { %v5086_v28 = vpop.f32.mrf.mxu3  ;;  %5858 = vmatpush.bf16.msrb.mxu2 %v9476_v16 }
 0x413   :  { %5848 = vmatpush.bf16.msrb.mxu1 %v9465_v23  ;;  %v5110_v47 = vpop.f32.mrf.mxu1  ;;  %5870 = vmatpush.bf16.msrb.mxu3 %v9485_v46 }
 0x414   :  { %v5111_v42 = vadd.f32 %v5110_v47, %v5098_v55 }
 0x415   :  { %v5099_v29 = vpop.f32.mrf.mxu0  ;;  %5859 = vmatpush.bf16.msrb.mxu2 %v9475_v35 }
 0x417   :  { %5871 = vmatpush.bf16.msrb.mxu3 %v9484_v21 }
 0x419   :  { %5860 = vmatpush.bf16.msrb.mxu2 %v9474_v43 }
 0x41b   :  { %v5112_v11 = vpop.f32.mrf.mxu1  ;;  %5872 = vmatpush.bf16.msrb.mxu3 %v9483_v40 }
 0x41d   :  { %5861 = vmatpush.bf16.msrb.mxu2 %v9473_v52 }
 0x41f   :  { %5873 = vmatpush.bf16.msrb.mxu3 %v9482_v32 }
 0x423   :  { %v5123_v38 = vpop.f32.mrf.mxu2  ;;  %5874 = vmatpush.bf16.msrb.mxu3 %v9481_v54 }
 0x424   :  { %v5124_v14 = vadd.f32 %v5123_v38, %v5111_v42 }
 0x429   :  { %v5136_v45 = vpop.f32.mrf.mxu3 }
 0x42a   :  { %v5137_v34 = vadd.f32 %v5136_v45, %v5124_v14 }
 0x42b   :  { %v5125_v50 = vpop.f32.mrf.mxu2 }
 0x42c   :  { %v5249_v31 = vmax.f32 %v5137_v34, 0.0 }
 0x42d   :  { %v5149_v44 = vpop.f32.mrf.mxu0 }
 0x42e   :  { %v5257_v56 = vpack.c.bf16 %v5249_v31, %v5249_v31  ;;  %v5150_v59 = vadd.f32 %v5149_v44, %v3538_v39 }
 0x430   :  { %5849 = vmatmul.bf16.vlgmr.msrb.gmra.mxu1 %v5257_v56 }
 0x431   :  { %v5138_v49 = vpop.f32.mrf.mxu3 }
 0x433   :  { %v5162_v57 = vpop.f32.mrf.mxu1 }
 0x434   :  { %v5163_v60 = vadd.f32 %v5162_v57, %v5150_v59 }
 0x435   :  { %v5151_v26 = vpop.f32.mrf.mxu0 }
 0x43b   :  { %v5164_v41 = vpop.f32.mrf.mxu1 }
 0x443   :  { %v5175_v58 = vpop.f32.mrf.mxu2 }
 0x444   :  { %v5176_v62 = vadd.f32 %v5175_v58, %v5163_v60 }
 0x449   :  { %v5188_v0 = vpop.f32.mrf.mxu3 }
 0x44a   :  { %v5189_v1 = vadd.f32 %v5188_v0, %v5176_v62 }
 0x44b   :  { %v5177_v3 = vpop.f32.mrf.mxu2 }
 0x44c   :  { %v5250_v5 = vmax.f32 %v5189_v1, 0.0 }
 0x44d   :  { %v5201_v2 = vpop.f32.mrf.mxu0 }
 0x44e   :  { %v5258_v6 = vpack.c.bf16 %v5250_v5, %v5250_v5  ;;  %v5202_v9 = vadd.f32 %v5201_v2, %v3539_v36 }
 0x450   :  { %5862 = vmatmul.bf16.vlgmr.msrb.gmra.mxu2 %v5258_v6 }
 0x451   :  { %v5190_v8 = vpop.f32.mrf.mxu3 }
 0x453   :  { %v5214_v7 = vpop.f32.mrf.mxu1 }
 0x454   :  { %v5215_v17 = vadd.f32 %v5214_v7, %v5202_v9 }
 0x455   :  { %v5203_v37 = vpop.f32.mrf.mxu0 }
 0x45b   :  { %v5216_v12 = vpop.f32.mrf.mxu1 }
 0x463   :  { %v5227_v15 = vpop.f32.mrf.mxu2 }
 0x464   :  { %v5228_v18 = vadd.f32 %v5227_v15, %v5215_v17 }
 0x469   :  { %v5240_v61 = vpop.f32.mrf.mxu3 }
 0x46a   :  { %v5241_v24 = vadd.f32 %v5240_v61, %v5228_v18 }
 0x46b   :  { %v5229_v22 = vpop.f32.mrf.mxu2 }
 0x46c   :  { %v5251_v63 = vmax.f32 %v5241_v24, 0.0 }
 0x46d   :  { %v5785_v20 = vpop.f32.mrf.mxu0 }
 0x46e   :  { %v5259_v23 = vpack.c.bf16 %v5251_v63, %v5251_v63  ;;  %v5786_v53 = vadd.f32 %v9498_v48, %v5785_v20 }
 0x470   :  { %5875 = vmatmul.bf16.vlgmr.msrb.gmra.mxu3 %v5259_v23 }
 0x471   :  { %v5242_v27 = vpop.f32.mrf.mxu3 }
 0x473   :  { %v5798_v19 = vpop.f32.mrf.mxu1 }
 0x474   :  { %v5799_v47 = vadd.f32 %v5798_v19, %v5786_v53 }
 0x475   :  { %v5787_v28 = vpop.f32.mrf.mxu0 }
 0x47b   :  { %v5800_v29 = vpop.f32.mrf.mxu1 }
 0x483   :  { %v5811_v10 = vpop.f32.mrf.mxu2 }
 0x484   :  { %v5812_v51 = vadd.f32 %v5811_v10, %v5799_v47 }
 0x489   :  { %v5824_v11 = vpop.f32.mrf.mxu3 }
 0x48a   :  { %v5825_v16 = vadd.f32 %v5824_v11, %v5812_v51 }
 0x48b   :  { %v5813_v33 = vpop.f32.mrf.mxu2 }
 0x48d   :  { %v5837_v38 = vpop.f32.mrf.mxu0 }
 0x48e   :  { %v5838_v55 = vadd.f32 %v5837_v38, %v5825_v16 }
 0x491   :  { %v5826_v35 = vpop.f32.mrf.mxu3 }
 0x495   :  { %v5839_v42 = vpop.f32.mrf.mxu0 }
 0x4ad   :  { %v5850_v43 = vpop.f32.mrf.mxu1 }
 0x4ae   :  { %v5851_v44 = vadd.f32 %v5850_v43, %v5838_v55 }
 0x4b5   :  { %v5852_v14 = vpop.f32.mrf.mxu1 }
 0x4d3   :  { %v5863_v45 = vpop.f32.mrf.mxu2 }
 0x4d4   :  { %v5864_v50 = vadd.f32 %v5863_v45, %v5851_v44 }
 0x4db   :  { %v5865_v34 = vpop.f32.mrf.mxu2 }
 0x4f3   :  { %v5876_v52 = vpop.f32.mrf.mxu3 }
 0x4f4   :  { %v5877_v31 = vadd.f32 %v5876_v52, %v5864_v50 }
 0x4f6   :  { %v8776_v4 = vmul.f32 -1.442695, %v5877_v31 }
 0x4f8   :  { %9499 = vpow2.f32 %v8776_v4 }
 0x4fb   :  { %v5878_v56 = vpop.f32.mrf.mxu3 }
 0x4fe   :  { %v9500_v57 = vpop.eup %9499 }
 0x4ff   :  { %v5883_v25 = vadd.f32 1.0, %v9500_v57 }
 0x501   :  { %9501 = vrcp.f32 %v5883_v25  ;;  %v5895_v46 = vand.u32 2147483648, %v5883_v25  ;;  %v5893_v21 = vand.u32 2147483647, %v5883_v25  ;;  %vm5889_vm2 = vweird.f32 %v5883_v25 }
 0x503   :  { %v5896_v40 = vor.u32 1.1754944e-38, %v5895_v46  ;;  %vm5894_vm5 = vcmp.eq.f32.partialorder %v5893_v21, 8.507059e+37 }
 0x507   :  { %v9502_v49 = vpop.eup %9501 }
 0x508   :  { %v5885_v26 = vmul.f32 %v9502_v49, %v5883_v25  ;;  %vm5890_vm1 = vweird.f32 %v9502_v49 }
 0x509   :  { %vm5891_vm3 = vmor %vm5889_vm2, %vm5890_vm1 }
 0x50a   :  { %v5886_v30 = vsub.f32 1.0, %v5885_v26 }
 0x50c   :  { %v5887_v41 = vmul.f32 %v9502_v49, %v5886_v30 }
 0x50e   :  { %v5888_v39 = vadd.f32 %v9502_v49, %v5887_v41 }
 0x510   :  { %v5892_v58 = vsel %vm5891_vm3, %v9502_v49, %v5888_v39 }
 0x511   :  { %v5897_v59 = vsel %vm5894_vm5, %v5896_v40, %v5892_v58 }
 0x512   :  { %5900 = vst.msk [vmem:[#allocation10] sm:$0xff] %vm5899_vm4, %v5897_v59 }
 0x513   :  { %5911 = dma.vmem_to_hbm [thread:$0]  %s5907_s12, 128, %s5909_s8, [#allocation4]  }
 0x514   :  { %9630 = dma.done.wait [#allocation4], 128  }
 0x515   :  { %9631 = vsyncadd [#allocation4], 4294967168 }
 0x516   :  { %5916 = vsyncpa [#allocation3], 1 }
 0x517   :  { %5917 = vsyncpa [#allocation6], 1 }
 0x518   :  { %5918 = vsyncpa [#allocation9], 1 }
 0x519   :  { %5919 = vsyncpa [#allocation4], 1 }

</bundles_post_ra>
